<compile_context>
chip_gen: v6e
topology: v6e:2x2x1
jax: 0.10.0
libtpu: 0.0.40
codegen_flags: <defaults>
</compile_context>

<pallas_src>
import jax
import jax.numpy as jnp
from jax.experimental import pallas as pl
from jax.experimental.pallas import tpu as pltpu

NUM_RK4_STEPS = 16  # fixed-step RK4 substitute for adaptive dopri5


def ghb_kernel(t_ref, x_ref, gc_ref,
               w1h_ref, w1m_ref, w1x_ref, b1_ref,
               w3h_ref, w3m_ref, b3h_ref, b3m_ref,
               wdfe_ref, bdf_ref,
               hseq_ref):
    n_t = x_ref.shape[0]
    n_b = x_ref.shape[1]
    nhid = wdfe_ref.shape[0]

    # Scalar from SMEM; hoist its vreg broadcast once for the whole sequence.
    sig_gamma = gc_ref[0]                               # sigmoid(gamma)
    sig_b = jnp.full((n_b, nhid), sig_gamma, jnp.float32)

    # Only the derivative weight (wdf + softplus(corr)*I) and its bias stay
    # vreg-resident across the time loop; everything else is read per step.
    wdfe = wdfe_ref[...]                                # (nhid, nhid)
    bdf = bdf_ref[...]                                  # (1, nhid)

    inv_n = 1.0 / NUM_RK4_STEPS

    def time_step(i, carry):
        h0, m0 = carry                                  # (n_b, nhid) each
        x_i = x_ref[i]                                  # (n_b, modes)
        elem_t = t_ref[i]                               # (n_b, 1)

        # ---- temprnn (fused, no concat / lane slicing; weights read from
        #      VMEM at point of use to keep vreg pressure low) ----
        z = jnp.tanh(
            jnp.dot(h0, w1h_ref[...], preferred_element_type=jnp.float32)
            + jnp.dot(m0, w1m_ref[...], preferred_element_type=jnp.float32)
            + jnp.dot(x_i, w1x_ref[...], preferred_element_type=jnp.float32)
            + b1_ref[...])
        h = (jnp.dot(z, w3h_ref[...], preferred_element_type=jnp.float32)
             + b3h_ref[...] + h0)
        m = (jnp.dot(z, w3m_ref[...], preferred_element_type=jnp.float32)
             + b3m_ref[...] + m0)

        # elem_t folded into the step size; broadcasts hoisted out of RK4 loop.
        dt_eff = elem_t * inv_n                         # (n_b, 1)
        dt_b = jnp.broadcast_to(dt_eff, (n_b, nhid))    # (n_b, nhid)
        half_dt = 0.5 * dt_b
        sixth_dt = dt_b * (1.0 / 6.0)

        # HeavyBallNODE derivative (actv_h = Identity -> dh = -m;
        # sp_corr*h folded into wdfe; single-add post-matmul tail).
        def deriv(hc, mc):
            dh = -mc
            a = bdf - sig_b * mc                        # overlaps with matmul
            dm = jnp.dot(hc, wdfe, preferred_element_type=jnp.float32) + a
            return dh, dm

        # ---- fully unrolled fixed-step RK4 over [0, 1] ----
        for _ in range(NUM_RK4_STEPS):
            k1h, k1m = deriv(h, m)
            k2h, k2m = deriv(h + half_dt * k1h, m + half_dt * k1m)
            k3h, k3m = deriv(h + half_dt * k2h, m + half_dt * k2m)
            k4h, k4m = deriv(h + dt_b * k3h, m + dt_b * k3m)
            h = h + sixth_dt * (k1h + 2.0 * k2h + 2.0 * k3h + k4h)
            m = m + sixth_dt * (k1m + 2.0 * k2m + 2.0 * k3m + k4m)

        # Emit h_ode[i+1][:, 0]; output projection happens outside the kernel.
        hseq_ref[i] = h
        return h, m

    h_init = jnp.zeros((n_b, nhid), jnp.float32)        # ic is None -> zeros
    m_init = jnp.zeros((n_b, nhid), jnp.float32)
    jax.lax.fori_loop(0, n_t, time_step, (h_init, m_init))


def ghb_forward(t, x, params):
    n_t, n_b, modes = x.shape
    nhid = params['wdf'].shape[0]

    # Pad batch to a multiple of 8 sublanes (rows are independent -> safe).
    n_b_pad = -(-n_b // 8) * 8
    pad = n_b_pad - n_b
    t3 = t.reshape(n_t, n_b, 1).astype(jnp.float32)
    x32 = x.astype(jnp.float32)
    if pad:
        t3 = jnp.pad(t3, ((0, 0), (0, pad), (0, 0)))
        x32 = jnp.pad(x32, ((0, 0), (0, pad), (0, 0)))

    # Wrapper-side (one-time) weight plumbing:
    #   * split temprnn weights so the kernel never concats or lane-slices,
    #   * fold softplus(corr)*I into the derivative weight.
    w1 = params['w1']                                  # (2*nhid+modes, 2*nhid)
    w1h, w1m, w1x = w1[:nhid], w1[nhid:2 * nhid], w1[2 * nhid:]
    w3 = params['w3']                                  # (2*nhid, 2*nhid)
    w3h, w3m = w3[:, :nhid], w3[:, nhid:]
    b3 = params['b3']                                  # (1, 2*nhid)
    b3h, b3m = b3[:, :nhid], b3[:, nhid:]
    sp_corr = jnp.asarray(params['sp_corr'], jnp.float32)
    wdf_eff = params['wdf'] + sp_corr * jnp.eye(nhid, dtype=jnp.float32)

    gc = jnp.asarray(params['sig_gamma'], jnp.float32).reshape(1)  # -> SMEM

    inputs = [t3, x32, gc,
              w1h, w1m, w1x, params['b1'],
              w3h, w3m, b3h, b3m,
              wdf_eff, params['bdf']]

    def vmem_full(a):
        nd = a.ndim
        return pl.BlockSpec(a.shape, lambda i, _nd=nd: (0,) * _nd)

    in_specs = [vmem_full(t3), vmem_full(x32),
                pl.BlockSpec(memory_space=pltpu.MemorySpace.SMEM),
                vmem_full(w1h), vmem_full(w1m), vmem_full(w1x),
                vmem_full(params['b1']),
                vmem_full(w3h), vmem_full(w3m),
                vmem_full(b3h), vmem_full(b3m),
                vmem_full(wdf_eff), vmem_full(params['bdf'])]

    out_spec = pl.BlockSpec((n_t, n_b_pad, nhid), lambda i: (0, 0, 0))

    hseq = pl.pallas_call(
        ghb_kernel,
        out_shape=jax.ShapeDtypeStruct((n_t, n_b_pad, nhid), jnp.float32),
        grid_spec=pltpu.PrefetchScalarGridSpec(
            num_scalar_prefetch=0,
            grid=(1,),                      # whole recurrence runs in-kernel
            in_specs=in_specs,
            out_specs=out_spec,
        ),
        compiler_params=pltpu.CompilerParams(
            dimension_semantics=("arbitrary",),
        ),
    )(*inputs)

    # Output projection once, lane-dense, outside the sequential hot path.
    out = jnp.einsum('tbh,hm->tbm', hseq, params['wout']) + params['bout']
    return out[:, :n_b, :]


def init_params(key, modes, nhid, gamma_guess=-3.0, corr=-3.0):
    ks = jax.random.split(key, 8)
    din_rnn = modes + 2 * nhid
    # PyTorch Linear weights are (out, in); build that way then transpose.
    W1 = jax.random.normal(ks[0], (2 * nhid, din_rnn), jnp.float32) * 0.1   # temprnn.dense1
    b1 = jax.random.normal(ks[1], (2 * nhid,), jnp.float32) * 0.1
    W3 = jax.random.normal(ks[2], (2 * nhid, 2 * nhid), jnp.float32) * 0.1  # temprnn.dense3
    b3 = jax.random.normal(ks[3], (2 * nhid,), jnp.float32) * 0.1
    Wdf = jax.random.normal(ks[4], (nhid, nhid), jnp.float32) * 0.1         # tempf.dense1
    bdf = jax.random.normal(ks[5], (nhid,), jnp.float32) * 0.1
    Wout = jax.random.normal(ks[6], (modes, nhid), jnp.float32) * 0.1       # outlayer
    bout = jax.random.normal(ks[7], (modes,), jnp.float32) * 0.1

    return dict(
        # cat order for dense1 input is [h[:,0], h[:,1], x]
        w1=W1.T,                              # (2*nhid + modes, 2*nhid)
        b1=b1.reshape(1, 2 * nhid),
        # dense3 output columns: [:nhid] -> h update, [nhid:] -> m update
        w3=W3.T,                              # (2*nhid, 2*nhid)
        b3=b3.reshape(1, 2 * nhid),
        wdf=Wdf.T, bdf=bdf.reshape(1, nhid),
        wout=Wout.T, bout=bout.reshape(1, modes),
        sig_gamma=jax.nn.sigmoid(jnp.float32(gamma_guess)),
        sp_corr=jax.nn.softplus(jnp.float32(corr)),
    )


def ghb_reference(t, x, params):
    """Pure-JAX reference (same fixed-step RK4) for correctness checking."""
    n_t, n_b, modes = x.shape
    nhid = params['wdf'].shape[0]
    dt = 1.0 / NUM_RK4_STEPS
    sig = params['sig_gamma']
    spc = params['sp_corr']

    def deriv(h, m, elem_t):
        dh = -m                                       # actv_h = Identity
        dm = h @ params['wdf'] + params['bdf'] - sig * m + spc * h
        return elem_t * dh, elem_t * dm

    def step(carry, inp):
        h0, m0 = carry
        t_i, x_i = inp
        cat = jnp.concatenate([h0, m0, x_i], axis=-1)
        z = jnp.tanh(cat @ params['w1'] + params['b1'])
        hm = z @ params['w3'] + params['b3']
        h = hm[:, :nhid] + h0
        m = hm[:, nhid:] + m0
        elem_t = t_i[:, None]
        for _ in range(NUM_RK4_STEPS):
            k1h, k1m = deriv(h, m, elem_t)
            k2h, k2m = deriv(h + 0.5 * dt * k1h, m + 0.5 * dt * k1m, elem_t)
            k3h, k3m = deriv(h + 0.5 * dt * k2h, m + 0.5 * dt * k2m, elem_t)
            k4h, k4m = deriv(h + dt * k3h, m + dt * k3m, elem_t)
            h = h + (dt / 6.0) * (k1h + 2 * k2h + 2 * k3h + k4h)
            m = m + (dt / 6.0) * (k1m + 2 * k2m + 2 * k3m + k4m)
        return (h, m), h @ params['wout'] + params['bout']

    init = (jnp.zeros((n_b, nhid), jnp.float32), jnp.zeros((n_b, nhid), jnp.float32))
    _, outs = jax.lax.scan(step, init, (t, x))
    return outs


if __name__ == "__main__":
    modes, layers = 8, 4
    nhid = modes * layers          # 32
    n_t, n_b = 8, 8                # batch chosen sublane-dense (multiple of 8)

    key = jax.random.PRNGKey(0)
    kp, kt, kx = jax.random.split(key, 3)
    params = init_params(kp, modes, nhid)
    t = jax.random.uniform(kt, (n_t, n_b), jnp.float32, minval=0.1, maxval=1.0)
    x = jax.random.normal(kx, (n_t, n_b, modes), jnp.float32)

    out = jax.block_until_ready(jax.jit(ghb_forward)(t, x, params))
    ref = ghb_reference(t, x, params)

    assert out.shape == (n_t, n_b, modes), out.shape
    max_err = float(jnp.max(jnp.abs(out - ref)))
    assert max_err < 1e-4, f"mismatch vs reference: {max_err}"
    print("KERNEL_OK")
</pallas_src>

<mosaic_0001>
module attributes {stable_mosaic.version = 11 : i64} {
  func.func @ghb_kernel(%arg0: i32, %arg1: memref<8x8x1xf32, #tpu.memory_space<vmem>>, %arg2: memref<8x8x8xf32, #tpu.memory_space<vmem>>, %arg3: memref<1xf32, #tpu.memory_space<smem>>, %arg4: memref<32x64xf32, #tpu.memory_space<vmem>>, %arg5: memref<32x64xf32, #tpu.memory_space<vmem>>, %arg6: memref<8x64xf32, #tpu.memory_space<vmem>>, %arg7: memref<1x64xf32, #tpu.memory_space<vmem>>, %arg8: memref<64x32xf32, #tpu.memory_space<vmem>>, %arg9: memref<64x32xf32, #tpu.memory_space<vmem>>, %arg10: memref<1x32xf32, #tpu.memory_space<vmem>>, %arg11: memref<1x32xf32, #tpu.memory_space<vmem>>, %arg12: memref<32x32xf32, #tpu.memory_space<vmem>>, %arg13: memref<1x32xf32, #tpu.memory_space<vmem>>, %arg14: memref<8x8x32xf32, #tpu.memory_space<vmem>>) attributes {dimension_semantics = [#tpu.dimension_semantics<arbitrary>], iteration_bounds = array<i64: 1>, scalar_prefetch = 0 : i64, scratch_operands = 0 : i64, tpu.core_type = #tpu.core_type<tc>, window_params = [{pipeline_mode = #tpu.pipeline_mode<synchronous>, transform_indices = @transform_0, window_bounds = array<i64: 8, 8, 1>}, {pipeline_mode = #tpu.pipeline_mode<synchronous>, transform_indices = @transform_1, window_bounds = array<i64: 8, 8, 8>}, {transform_indices = @transform_2, window_bounds = array<i64: 1>}, {pipeline_mode = #tpu.pipeline_mode<synchronous>, transform_indices = @transform_3, window_bounds = array<i64: 32, 64>}, {pipeline_mode = #tpu.pipeline_mode<synchronous>, transform_indices = @transform_4, window_bounds = array<i64: 32, 64>}, {pipeline_mode = #tpu.pipeline_mode<synchronous>, transform_indices = @transform_5, window_bounds = array<i64: 8, 64>}, {pipeline_mode = #tpu.pipeline_mode<synchronous>, transform_indices = @transform_6, window_bounds = array<i64: 1, 64>}, {pipeline_mode = #tpu.pipeline_mode<synchronous>, transform_indices = @transform_7, window_bounds = array<i64: 64, 32>}, {pipeline_mode = #tpu.pipeline_mode<synchronous>, transform_indices = @transform_8, window_bounds = array<i64: 64, 32>}, {pipeline_mode = #tpu.pipeline_mode<synchronous>, transform_indices = @transform_9, window_bounds = array<i64: 1, 32>}, {pipeline_mode = #tpu.pipeline_mode<synchronous>, transform_indices = @transform_10, window_bounds = array<i64: 1, 32>}, {pipeline_mode = #tpu.pipeline_mode<synchronous>, transform_indices = @transform_11, window_bounds = array<i64: 32, 32>}, {pipeline_mode = #tpu.pipeline_mode<synchronous>, transform_indices = @transform_12, window_bounds = array<i64: 1, 32>}, {pipeline_mode = #tpu.pipeline_mode<synchronous>, transform_indices = @transform_13, window_bounds = array<i64: 8, 8, 32>}]} {
    %c0 = arith.constant 0 : index
    %0 = memref.load %arg3[%c0] : memref<1xf32, #tpu.memory_space<smem>>
    %1 = vector.broadcast %0 : f32 to vector<8x32xf32>
    %c0_0 = arith.constant 0 : index
    %c0_1 = arith.constant 0 : index
    %2 = vector.load %arg12[%c0_0, %c0_1] : memref<32x32xf32, #tpu.memory_space<vmem>>, vector<32x32xf32>
    %c0_2 = arith.constant 0 : index
    %c0_3 = arith.constant 0 : index
    %3 = vector.load %arg13[%c0_2, %c0_3] : memref<1x32xf32, #tpu.memory_space<vmem>>, vector<1x32xf32>
    %cst = arith.constant 0.000000e+00 : f32
    %4 = vector.broadcast %cst : f32 to vector<8x32xf32>
    %cst_4 = arith.constant 0.000000e+00 : f32
    %5 = vector.broadcast %cst_4 : f32 to vector<8x32xf32>
    %c0_i32 = arith.constant 0 : i32
    %c8_i32 = arith.constant 8 : i32
    %6 = arith.addi %c0_i32, %c8_i32 : i32
    %c1_i32 = arith.constant 1 : i32
    %7:2 = scf.for %arg15 = %c0_i32 to %6 step %c1_i32 iter_args(%arg16 = %4, %arg17 = %5) -> (vector<8x32xf32>, vector<8x32xf32>)  : i32 {
      %8 = arith.index_cast %arg15 : i32 to index
      %c0_6 = arith.constant 0 : index
      %c0_7 = arith.constant 0 : index
      %9 = vector.load %arg2[%8, %c0_6, %c0_7] : memref<8x8x8xf32, #tpu.memory_space<vmem>>, vector<1x8x8xf32>
      %10 = vector.shape_cast %9 : vector<1x8x8xf32> to vector<8x8xf32>
      %11 = arith.index_cast %arg15 : i32 to index
      %c0_8 = arith.constant 0 : index
      %c0_9 = arith.constant 0 : index
      %12 = vector.load %arg1[%11, %c0_8, %c0_9] : memref<8x8x1xf32, #tpu.memory_space<vmem>>, vector<1x8x1xf32>
      %13 = vector.shape_cast %12 : vector<1x8x1xf32> to vector<8x1xf32>
      %c0_10 = arith.constant 0 : index
      %c0_11 = arith.constant 0 : index
      %14 = vector.load %arg4[%c0_10, %c0_11] : memref<32x64xf32, #tpu.memory_space<vmem>>, vector<32x64xf32>
      %cst_12 = arith.constant dense<0.000000e+00> : vector<8x64xf32>
      %15 = tpu.matmul %arg16, %14, %cst_12 {dimension_numbers = #tpu.dot_dimension_numbers<[1], [0], [0], [1], [0, 0, 1, 1], [], []>} : vector<8x32xf32>, vector<32x64xf32>, vector<8x64xf32> -> vector<8x64xf32>
      %c0_13 = arith.constant 0 : index
      %c0_14 = arith.constant 0 : index
      %16 = vector.load %arg5[%c0_13, %c0_14] : memref<32x64xf32, #tpu.memory_space<vmem>>, vector<32x64xf32>
      %cst_15 = arith.constant dense<0.000000e+00> : vector<8x64xf32>
      %17 = tpu.matmul %arg17, %16, %cst_15 {dimension_numbers = #tpu.dot_dimension_numbers<[1], [0], [0], [1], [0, 0, 1, 1], [], []>} : vector<8x32xf32>, vector<32x64xf32>, vector<8x64xf32> -> vector<8x64xf32>
      %18 = arith.addf %15, %17 : vector<8x64xf32>
      %c0_16 = arith.constant 0 : index
      %c0_17 = arith.constant 0 : index
      %19 = vector.load %arg6[%c0_16, %c0_17] : memref<8x64xf32, #tpu.memory_space<vmem>>, vector<8x64xf32>
      %cst_18 = arith.constant dense<0.000000e+00> : vector<8x64xf32>
      %20 = tpu.matmul %10, %19, %cst_18 {dimension_numbers = #tpu.dot_dimension_numbers<[1], [0], [0], [1], [0, 0, 1, 1], [], []>} : vector<8x8xf32>, vector<8x64xf32>, vector<8x64xf32> -> vector<8x64xf32>
      %21 = arith.addf %18, %20 : vector<8x64xf32>
      %c0_19 = arith.constant 0 : index
      %c0_20 = arith.constant 0 : index
      %22 = vector.load %arg7[%c0_19, %c0_20] : memref<1x64xf32, #tpu.memory_space<vmem>>, vector<1x64xf32>
      %23 = vector.broadcast %22 : vector<1x64xf32> to vector<8x64xf32>
      %24 = arith.addf %21, %23 : vector<8x64xf32>
      %25 = math.tanh %24 : vector<8x64xf32>
      %c0_21 = arith.constant 0 : index
      %c0_22 = arith.constant 0 : index
      %26 = vector.load %arg8[%c0_21, %c0_22] : memref<64x32xf32, #tpu.memory_space<vmem>>, vector<64x32xf32>
      %cst_23 = arith.constant dense<0.000000e+00> : vector<8x32xf32>
      %27 = tpu.matmul %25, %26, %cst_23 {dimension_numbers = #tpu.dot_dimension_numbers<[1], [0], [0], [1], [0, 0, 1, 1], [], []>} : vector<8x64xf32>, vector<64x32xf32>, vector<8x32xf32> -> vector<8x32xf32>
      %c0_24 = arith.constant 0 : index
      %c0_25 = arith.constant 0 : index
      %28 = vector.load %arg10[%c0_24, %c0_25] : memref<1x32xf32, #tpu.memory_space<vmem>>, vector<1x32xf32>
      %29 = vector.broadcast %28 : vector<1x32xf32> to vector<8x32xf32>
      %30 = arith.addf %27, %29 : vector<8x32xf32>
      %31 = arith.addf %30, %arg16 : vector<8x32xf32>
      %c0_26 = arith.constant 0 : index
      %c0_27 = arith.constant 0 : index
      %32 = vector.load %arg9[%c0_26, %c0_27] : memref<64x32xf32, #tpu.memory_space<vmem>>, vector<64x32xf32>
      %cst_28 = arith.constant dense<0.000000e+00> : vector<8x32xf32>
      %33 = tpu.matmul %25, %32, %cst_28 {dimension_numbers = #tpu.dot_dimension_numbers<[1], [0], [0], [1], [0, 0, 1, 1], [], []>} : vector<8x64xf32>, vector<64x32xf32>, vector<8x32xf32> -> vector<8x32xf32>
      %c0_29 = arith.constant 0 : index
      %c0_30 = arith.constant 0 : index
      %34 = vector.load %arg11[%c0_29, %c0_30] : memref<1x32xf32, #tpu.memory_space<vmem>>, vector<1x32xf32>
      %35 = vector.broadcast %34 : vector<1x32xf32> to vector<8x32xf32>
      %36 = arith.addf %33, %35 : vector<8x32xf32>
      %37 = arith.addf %36, %arg17 : vector<8x32xf32>
      %cst_31 = arith.constant 6.250000e-02 : f32
      %38 = vector.broadcast %cst_31 : f32 to vector<8x1xf32>
      %39 = arith.mulf %13, %38 : vector<8x1xf32>
      %40 = vector.shape_cast %39 : vector<8x1xf32> to vector<8x1xf32>
      %41 = vector.broadcast %40 : vector<8x1xf32> to vector<8x32xf32>
      %cst_32 = arith.constant 5.000000e-01 : f32
      %42 = vector.broadcast %cst_32 : f32 to vector<8x32xf32>
      %43 = arith.mulf %42, %41 : vector<8x32xf32>
      %cst_33 = arith.constant 0.166666672 : f32
      %44 = vector.broadcast %cst_33 : f32 to vector<8x32xf32>
      %45 = arith.mulf %41, %44 : vector<8x32xf32>
      %cst_34 = arith.constant 0.000000e+00 : f32
      %46 = vector.broadcast %cst_34 : f32 to vector<8x32xf32>
      %47 = arith.subf %46, %37 : vector<8x32xf32>
      %48 = arith.mulf %1, %37 : vector<8x32xf32>
      %49 = vector.broadcast %3 : vector<1x32xf32> to vector<8x32xf32>
      %50 = arith.subf %49, %48 : vector<8x32xf32>
      %cst_35 = arith.constant dense<0.000000e+00> : vector<8x32xf32>
      %51 = tpu.matmul %31, %2, %cst_35 {dimension_numbers = #tpu.dot_dimension_numbers<[1], [0], [0], [1], [0, 0, 1, 1], [], []>} : vector<8x32xf32>, vector<32x32xf32>, vector<8x32xf32> -> vector<8x32xf32>
      %52 = arith.addf %51, %50 : vector<8x32xf32>
      %53 = arith.mulf %43, %47 : vector<8x32xf32>
      %54 = arith.addf %31, %53 : vector<8x32xf32>
      %55 = arith.mulf %43, %52 : vector<8x32xf32>
      %56 = arith.addf %37, %55 : vector<8x32xf32>
      %cst_36 = arith.constant 0.000000e+00 : f32
      %57 = vector.broadcast %cst_36 : f32 to vector<8x32xf32>
      %58 = arith.subf %57, %56 : vector<8x32xf32>
      %59 = arith.mulf %1, %56 : vector<8x32xf32>
      %60 = vector.broadcast %3 : vector<1x32xf32> to vector<8x32xf32>
      %61 = arith.subf %60, %59 : vector<8x32xf32>
      %cst_37 = arith.constant dense<0.000000e+00> : vector<8x32xf32>
      %62 = tpu.matmul %54, %2, %cst_37 {dimension_numbers = #tpu.dot_dimension_numbers<[1], [0], [0], [1], [0, 0, 1, 1], [], []>} : vector<8x32xf32>, vector<32x32xf32>, vector<8x32xf32> -> vector<8x32xf32>
      %63 = arith.addf %62, %61 : vector<8x32xf32>
      %64 = arith.mulf %43, %58 : vector<8x32xf32>
      %65 = arith.addf %31, %64 : vector<8x32xf32>
      %66 = arith.mulf %43, %63 : vector<8x32xf32>
      %67 = arith.addf %37, %66 : vector<8x32xf32>
      %cst_38 = arith.constant 0.000000e+00 : f32
      %68 = vector.broadcast %cst_38 : f32 to vector<8x32xf32>
      %69 = arith.subf %68, %67 : vector<8x32xf32>
      %70 = arith.mulf %1, %67 : vector<8x32xf32>
      %71 = vector.broadcast %3 : vector<1x32xf32> to vector<8x32xf32>
      %72 = arith.subf %71, %70 : vector<8x32xf32>
      %cst_39 = arith.constant dense<0.000000e+00> : vector<8x32xf32>
      %73 = tpu.matmul %65, %2, %cst_39 {dimension_numbers = #tpu.dot_dimension_numbers<[1], [0], [0], [1], [0, 0, 1, 1], [], []>} : vector<8x32xf32>, vector<32x32xf32>, vector<8x32xf32> -> vector<8x32xf32>
      %74 = arith.addf %73, %72 : vector<8x32xf32>
      %75 = arith.mulf %41, %69 : vector<8x32xf32>
      %76 = arith.addf %31, %75 : vector<8x32xf32>
      %77 = arith.mulf %41, %74 : vector<8x32xf32>
      %78 = arith.addf %37, %77 : vector<8x32xf32>
      %cst_40 = arith.constant 0.000000e+00 : f32
      %79 = vector.broadcast %cst_40 : f32 to vector<8x32xf32>
      %80 = arith.subf %79, %78 : vector<8x32xf32>
      %81 = arith.mulf %1, %78 : vector<8x32xf32>
      %82 = vector.broadcast %3 : vector<1x32xf32> to vector<8x32xf32>
      %83 = arith.subf %82, %81 : vector<8x32xf32>
      %cst_41 = arith.constant dense<0.000000e+00> : vector<8x32xf32>
      %84 = tpu.matmul %76, %2, %cst_41 {dimension_numbers = #tpu.dot_dimension_numbers<[1], [0], [0], [1], [0, 0, 1, 1], [], []>} : vector<8x32xf32>, vector<32x32xf32>, vector<8x32xf32> -> vector<8x32xf32>
      %85 = arith.addf %84, %83 : vector<8x32xf32>
      %cst_42 = arith.constant 2.000000e+00 : f32
      %86 = vector.broadcast %cst_42 : f32 to vector<8x32xf32>
      %87 = arith.mulf %86, %58 : vector<8x32xf32>
      %88 = arith.addf %47, %87 : vector<8x32xf32>
      %cst_43 = arith.constant 2.000000e+00 : f32
      %89 = vector.broadcast %cst_43 : f32 to vector<8x32xf32>
      %90 = arith.mulf %89, %69 : vector<8x32xf32>
      %91 = arith.addf %88, %90 : vector<8x32xf32>
      %92 = arith.addf %91, %80 : vector<8x32xf32>
      %93 = arith.mulf %45, %92 : vector<8x32xf32>
      %94 = arith.addf %31, %93 : vector<8x32xf32>
      %cst_44 = arith.constant 2.000000e+00 : f32
      %95 = vector.broadcast %cst_44 : f32 to vector<8x32xf32>
      %96 = arith.mulf %95, %63 : vector<8x32xf32>
      %97 = arith.addf %52, %96 : vector<8x32xf32>
      %cst_45 = arith.constant 2.000000e+00 : f32
      %98 = vector.broadcast %cst_45 : f32 to vector<8x32xf32>
      %99 = arith.mulf %98, %74 : vector<8x32xf32>
      %100 = arith.addf %97, %99 : vector<8x32xf32>
      %101 = arith.addf %100, %85 : vector<8x32xf32>
      %102 = arith.mulf %45, %101 : vector<8x32xf32>
      %103 = arith.addf %37, %102 : vector<8x32xf32>
      %cst_46 = arith.constant 0.000000e+00 : f32
      %104 = vector.broadcast %cst_46 : f32 to vector<8x32xf32>
      %105 = arith.subf %104, %103 : vector<8x32xf32>
      %106 = arith.mulf %1, %103 : vector<8x32xf32>
      %107 = vector.broadcast %3 : vector<1x32xf32> to vector<8x32xf32>
      %108 = arith.subf %107, %106 : vector<8x32xf32>
      %cst_47 = arith.constant dense<0.000000e+00> : vector<8x32xf32>
      %109 = tpu.matmul %94, %2, %cst_47 {dimension_numbers = #tpu.dot_dimension_numbers<[1], [0], [0], [1], [0, 0, 1, 1], [], []>} : vector<8x32xf32>, vector<32x32xf32>, vector<8x32xf32> -> vector<8x32xf32>
      %110 = arith.addf %109, %108 : vector<8x32xf32>
      %111 = arith.mulf %43, %105 : vector<8x32xf32>
      %112 = arith.addf %94, %111 : vector<8x32xf32>
      %113 = arith.mulf %43, %110 : vector<8x32xf32>
      %114 = arith.addf %103, %113 : vector<8x32xf32>
      %cst_48 = arith.constant 0.000000e+00 : f32
      %115 = vector.broadcast %cst_48 : f32 to vector<8x32xf32>
      %116 = arith.subf %115, %114 : vector<8x32xf32>
      %117 = arith.mulf %1, %114 : vector<8x32xf32>
      %118 = vector.broadcast %3 : vector<1x32xf32> to vector<8x32xf32>
      %119 = arith.subf %118, %117 : vector<8x32xf32>
      %cst_49 = arith.constant dense<0.000000e+00> : vector<8x32xf32>
      %120 = tpu.matmul %112, %2, %cst_49 {dimension_numbers = #tpu.dot_dimension_numbers<[1], [0], [0], [1], [0, 0, 1, 1], [], []>} : vector<8x32xf32>, vector<32x32xf32>, vector<8x32xf32> -> vector<8x32xf32>
      %121 = arith.addf %120, %119 : vector<8x32xf32>
      %122 = arith.mulf %43, %116 : vector<8x32xf32>
      %123 = arith.addf %94, %122 : vector<8x32xf32>
      %124 = arith.mulf %43, %121 : vector<8x32xf32>
      %125 = arith.addf %103, %124 : vector<8x32xf32>
      %cst_50 = arith.constant 0.000000e+00 : f32
      %126 = vector.broadcast %cst_50 : f32 to vector<8x32xf32>
      %127 = arith.subf %126, %125 : vector<8x32xf32>
      %128 = arith.mulf %1, %125 : vector<8x32xf32>
      %129 = vector.broadcast %3 : vector<1x32xf32> to vector<8x32xf32>
      %130 = arith.subf %129, %128 : vector<8x32xf32>
      %cst_51 = arith.constant dense<0.000000e+00> : vector<8x32xf32>
      %131 = tpu.matmul %123, %2, %cst_51 {dimension_numbers = #tpu.dot_dimension_numbers<[1], [0], [0], [1], [0, 0, 1, 1], [], []>} : vector<8x32xf32>, vector<32x32xf32>, vector<8x32xf32> -> vector<8x32xf32>
      %132 = arith.addf %131, %130 : vector<8x32xf32>
      %133 = arith.mulf %41, %127 : vector<8x32xf32>
      %134 = arith.addf %94, %133 : vector<8x32xf32>
      %135 = arith.mulf %41, %132 : vector<8x32xf32>
      %136 = arith.addf %103, %135 : vector<8x32xf32>
      %cst_52 = arith.constant 0.000000e+00 : f32
      %137 = vector.broadcast %cst_52 : f32 to vector<8x32xf32>
      %138 = arith.subf %137, %136 : vector<8x32xf32>
      %139 = arith.mulf %1, %136 : vector<8x32xf32>
      %140 = vector.broadcast %3 : vector<1x32xf32> to vector<8x32xf32>
      %141 = arith.subf %140, %139 : vector<8x32xf32>
      %cst_53 = arith.constant dense<0.000000e+00> : vector<8x32xf32>
      %142 = tpu.matmul %134, %2, %cst_53 {dimension_numbers = #tpu.dot_dimension_numbers<[1], [0], [0], [1], [0, 0, 1, 1], [], []>} : vector<8x32xf32>, vector<32x32xf32>, vector<8x32xf32> -> vector<8x32xf32>
      %143 = arith.addf %142, %141 : vector<8x32xf32>
      %cst_54 = arith.constant 2.000000e+00 : f32
      %144 = vector.broadcast %cst_54 : f32 to vector<8x32xf32>
      %145 = arith.mulf %144, %116 : vector<8x32xf32>
      %146 = arith.addf %105, %145 : vector<8x32xf32>
      %cst_55 = arith.constant 2.000000e+00 : f32
      %147 = vector.broadcast %cst_55 : f32 to vector<8x32xf32>
      %148 = arith.mulf %147, %127 : vector<8x32xf32>
      %149 = arith.addf %146, %148 : vector<8x32xf32>
      %150 = arith.addf %149, %138 : vector<8x32xf32>
      %151 = arith.mulf %45, %150 : vector<8x32xf32>
      %152 = arith.addf %94, %151 : vector<8x32xf32>
      %cst_56 = arith.constant 2.000000e+00 : f32
      %153 = vector.broadcast %cst_56 : f32 to vector<8x32xf32>
      %154 = arith.mulf %153, %121 : vector<8x32xf32>
      %155 = arith.addf %110, %154 : vector<8x32xf32>
      %cst_57 = arith.constant 2.000000e+00 : f32
      %156 = vector.broadcast %cst_57 : f32 to vector<8x32xf32>
      %157 = arith.mulf %156, %132 : vector<8x32xf32>
      %158 = arith.addf %155, %157 : vector<8x32xf32>
      %159 = arith.addf %158, %143 : vector<8x32xf32>
      %160 = arith.mulf %45, %159 : vector<8x32xf32>
      %161 = arith.addf %103, %160 : vector<8x32xf32>
      %cst_58 = arith.constant 0.000000e+00 : f32
      %162 = vector.broadcast %cst_58 : f32 to vector<8x32xf32>
      %163 = arith.subf %162, %161 : vector<8x32xf32>
      %164 = arith.mulf %1, %161 : vector<8x32xf32>
      %165 = vector.broadcast %3 : vector<1x32xf32> to vector<8x32xf32>
      %166 = arith.subf %165, %164 : vector<8x32xf32>
      %cst_59 = arith.constant dense<0.000000e+00> : vector<8x32xf32>
      %167 = tpu.matmul %152, %2, %cst_59 {dimension_numbers = #tpu.dot_dimension_numbers<[1], [0], [0], [1], [0, 0, 1, 1], [], []>} : vector<8x32xf32>, vector<32x32xf32>, vector<8x32xf32> -> vector<8x32xf32>
      %168 = arith.addf %167, %166 : vector<8x32xf32>
      %169 = arith.mulf %43, %163 : vector<8x32xf32>
      %170 = arith.addf %152, %169 : vector<8x32xf32>
      %171 = arith.mulf %43, %168 : vector<8x32xf32>
      %172 = arith.addf %161, %171 : vector<8x32xf32>
      %cst_60 = arith.constant 0.000000e+00 : f32
      %173 = vector.broadcast %cst_60 : f32 to vector<8x32xf32>
      %174 = arith.subf %173, %172 : vector<8x32xf32>
      %175 = arith.mulf %1, %172 : vector<8x32xf32>
      %176 = vector.broadcast %3 : vector<1x32xf32> to vector<8x32xf32>
      %177 = arith.subf %176, %175 : vector<8x32xf32>
      %cst_61 = arith.constant dense<0.000000e+00> : vector<8x32xf32>
      %178 = tpu.matmul %170, %2, %cst_61 {dimension_numbers = #tpu.dot_dimension_numbers<[1], [0], [0], [1], [0, 0, 1, 1], [], []>} : vector<8x32xf32>, vector<32x32xf32>, vector<8x32xf32> -> vector<8x32xf32>
      %179 = arith.addf %178, %177 : vector<8x32xf32>
      %180 = arith.mulf %43, %174 : vector<8x32xf32>
      %181 = arith.addf %152, %180 : vector<8x32xf32>
      %182 = arith.mulf %43, %179 : vector<8x32xf32>
      %183 = arith.addf %161, %182 : vector<8x32xf32>
      %cst_62 = arith.constant 0.000000e+00 : f32
      %184 = vector.broadcast %cst_62 : f32 to vector<8x32xf32>
      %185 = arith.subf %184, %183 : vector<8x32xf32>
      %186 = arith.mulf %1, %183 : vector<8x32xf32>
      %187 = vector.broadcast %3 : vector<1x32xf32> to vector<8x32xf32>
      %188 = arith.subf %187, %186 : vector<8x32xf32>
      %cst_63 = arith.constant dense<0.000000e+00> : vector<8x32xf32>
      %189 = tpu.matmul %181, %2, %cst_63 {dimension_numbers = #tpu.dot_dimension_numbers<[1], [0], [0], [1], [0, 0, 1, 1], [], []>} : vector<8x32xf32>, vector<32x32xf32>, vector<8x32xf32> -> vector<8x32xf32>
      %190 = arith.addf %189, %188 : vector<8x32xf32>
      %191 = arith.mulf %41, %185 : vector<8x32xf32>
      %192 = arith.addf %152, %191 : vector<8x32xf32>
      %193 = arith.mulf %41, %190 : vector<8x32xf32>
      %194 = arith.addf %161, %193 : vector<8x32xf32>
      %cst_64 = arith.constant 0.000000e+00 : f32
      %195 = vector.broadcast %cst_64 : f32 to vector<8x32xf32>
      %196 = arith.subf %195, %194 : vector<8x32xf32>
      %197 = arith.mulf %1, %194 : vector<8x32xf32>
      %198 = vector.broadcast %3 : vector<1x32xf32> to vector<8x32xf32>
      %199 = arith.subf %198, %197 : vector<8x32xf32>
      %cst_65 = arith.constant dense<0.000000e+00> : vector<8x32xf32>
      %200 = tpu.matmul %192, %2, %cst_65 {dimension_numbers = #tpu.dot_dimension_numbers<[1], [0], [0], [1], [0, 0, 1, 1], [], []>} : vector<8x32xf32>, vector<32x32xf32>, vector<8x32xf32> -> vector<8x32xf32>
      %201 = arith.addf %200, %199 : vector<8x32xf32>
      %cst_66 = arith.constant 2.000000e+00 : f32
      %202 = vector.broadcast %cst_66 : f32 to vector<8x32xf32>
      %203 = arith.mulf %202, %174 : vector<8x32xf32>
      %204 = arith.addf %163, %203 : vector<8x32xf32>
      %cst_67 = arith.constant 2.000000e+00 : f32
      %205 = vector.broadcast %cst_67 : f32 to vector<8x32xf32>
      %206 = arith.mulf %205, %185 : vector<8x32xf32>
      %207 = arith.addf %204, %206 : vector<8x32xf32>
      %208 = arith.addf %207, %196 : vector<8x32xf32>
      %209 = arith.mulf %45, %208 : vector<8x32xf32>
      %210 = arith.addf %152, %209 : vector<8x32xf32>
      %cst_68 = arith.constant 2.000000e+00 : f32
      %211 = vector.broadcast %cst_68 : f32 to vector<8x32xf32>
      %212 = arith.mulf %211, %179 : vector<8x32xf32>
      %213 = arith.addf %168, %212 : vector<8x32xf32>
      %cst_69 = arith.constant 2.000000e+00 : f32
      %214 = vector.broadcast %cst_69 : f32 to vector<8x32xf32>
      %215 = arith.mulf %214, %190 : vector<8x32xf32>
      %216 = arith.addf %213, %215 : vector<8x32xf32>
      %217 = arith.addf %216, %201 : vector<8x32xf32>
      %218 = arith.mulf %45, %217 : vector<8x32xf32>
      %219 = arith.addf %161, %218 : vector<8x32xf32>
      %cst_70 = arith.constant 0.000000e+00 : f32
      %220 = vector.broadcast %cst_70 : f32 to vector<8x32xf32>
      %221 = arith.subf %220, %219 : vector<8x32xf32>
      %222 = arith.mulf %1, %219 : vector<8x32xf32>
      %223 = vector.broadcast %3 : vector<1x32xf32> to vector<8x32xf32>
      %224 = arith.subf %223, %222 : vector<8x32xf32>
      %cst_71 = arith.constant dense<0.000000e+00> : vector<8x32xf32>
      %225 = tpu.matmul %210, %2, %cst_71 {dimension_numbers = #tpu.dot_dimension_numbers<[1], [0], [0], [1], [0, 0, 1, 1], [], []>} : vector<8x32xf32>, vector<32x32xf32>, vector<8x32xf32> -> vector<8x32xf32>
      %226 = arith.addf %225, %224 : vector<8x32xf32>
      %227 = arith.mulf %43, %221 : vector<8x32xf32>
      %228 = arith.addf %210, %227 : vector<8x32xf32>
      %229 = arith.mulf %43, %226 : vector<8x32xf32>
      %230 = arith.addf %219, %229 : vector<8x32xf32>
      %cst_72 = arith.constant 0.000000e+00 : f32
      %231 = vector.broadcast %cst_72 : f32 to vector<8x32xf32>
      %232 = arith.subf %231, %230 : vector<8x32xf32>
      %233 = arith.mulf %1, %230 : vector<8x32xf32>
      %234 = vector.broadcast %3 : vector<1x32xf32> to vector<8x32xf32>
      %235 = arith.subf %234, %233 : vector<8x32xf32>
      %cst_73 = arith.constant dense<0.000000e+00> : vector<8x32xf32>
      %236 = tpu.matmul %228, %2, %cst_73 {dimension_numbers = #tpu.dot_dimension_numbers<[1], [0], [0], [1], [0, 0, 1, 1], [], []>} : vector<8x32xf32>, vector<32x32xf32>, vector<8x32xf32> -> vector<8x32xf32>
      %237 = arith.addf %236, %235 : vector<8x32xf32>
      %238 = arith.mulf %43, %232 : vector<8x32xf32>
      %239 = arith.addf %210, %238 : vector<8x32xf32>
      %240 = arith.mulf %43, %237 : vector<8x32xf32>
      %241 = arith.addf %219, %240 : vector<8x32xf32>
      %cst_74 = arith.constant 0.000000e+00 : f32
      %242 = vector.broadcast %cst_74 : f32 to vector<8x32xf32>
      %243 = arith.subf %242, %241 : vector<8x32xf32>
      %244 = arith.mulf %1, %241 : vector<8x32xf32>
      %245 = vector.broadcast %3 : vector<1x32xf32> to vector<8x32xf32>
      %246 = arith.subf %245, %244 : vector<8x32xf32>
      %cst_75 = arith.constant dense<0.000000e+00> : vector<8x32xf32>
      %247 = tpu.matmul %239, %2, %cst_75 {dimension_numbers = #tpu.dot_dimension_numbers<[1], [0], [0], [1], [0, 0, 1, 1], [], []>} : vector<8x32xf32>, vector<32x32xf32>, vector<8x32xf32> -> vector<8x32xf32>
      %248 = arith.addf %247, %246 : vector<8x32xf32>
      %249 = arith.mulf %41, %243 : vector<8x32xf32>
      %250 = arith.addf %210, %249 : vector<8x32xf32>
      %251 = arith.mulf %41, %248 : vector<8x32xf32>
      %252 = arith.addf %219, %251 : vector<8x32xf32>
      %cst_76 = arith.constant 0.000000e+00 : f32
      %253 = vector.broadcast %cst_76 : f32 to vector<8x32xf32>
      %254 = arith.subf %253, %252 : vector<8x32xf32>
      %255 = arith.mulf %1, %252 : vector<8x32xf32>
      %256 = vector.broadcast %3 : vector<1x32xf32> to vector<8x32xf32>
      %257 = arith.subf %256, %255 : vector<8x32xf32>
      %cst_77 = arith.constant dense<0.000000e+00> : vector<8x32xf32>
      %258 = tpu.matmul %250, %2, %cst_77 {dimension_numbers = #tpu.dot_dimension_numbers<[1], [0], [0], [1], [0, 0, 1, 1], [], []>} : vector<8x32xf32>, vector<32x32xf32>, vector<8x32xf32> -> vector<8x32xf32>
      %259 = arith.addf %258, %257 : vector<8x32xf32>
      %cst_78 = arith.constant 2.000000e+00 : f32
      %260 = vector.broadcast %cst_78 : f32 to vector<8x32xf32>
      %261 = arith.mulf %260, %232 : vector<8x32xf32>
      %262 = arith.addf %221, %261 : vector<8x32xf32>
      %cst_79 = arith.constant 2.000000e+00 : f32
      %263 = vector.broadcast %cst_79 : f32 to vector<8x32xf32>
      %264 = arith.mulf %263, %243 : vector<8x32xf32>
      %265 = arith.addf %262, %264 : vector<8x32xf32>
      %266 = arith.addf %265, %254 : vector<8x32xf32>
      %267 = arith.mulf %45, %266 : vector<8x32xf32>
      %268 = arith.addf %210, %267 : vector<8x32xf32>
      %cst_80 = arith.constant 2.000000e+00 : f32
      %269 = vector.broadcast %cst_80 : f32 to vector<8x32xf32>
      %270 = arith.mulf %269, %237 : vector<8x32xf32>
      %271 = arith.addf %226, %270 : vector<8x32xf32>
      %cst_81 = arith.constant 2.000000e+00 : f32
      %272 = vector.broadcast %cst_81 : f32 to vector<8x32xf32>
      %273 = arith.mulf %272, %248 : vector<8x32xf32>
      %274 = arith.addf %271, %273 : vector<8x32xf32>
      %275 = arith.addf %274, %259 : vector<8x32xf32>
      %276 = arith.mulf %45, %275 : vector<8x32xf32>
      %277 = arith.addf %219, %276 : vector<8x32xf32>
      %cst_82 = arith.constant 0.000000e+00 : f32
      %278 = vector.broadcast %cst_82 : f32 to vector<8x32xf32>
      %279 = arith.subf %278, %277 : vector<8x32xf32>
      %280 = arith.mulf %1, %277 : vector<8x32xf32>
      %281 = vector.broadcast %3 : vector<1x32xf32> to vector<8x32xf32>
      %282 = arith.subf %281, %280 : vector<8x32xf32>
      %cst_83 = arith.constant dense<0.000000e+00> : vector<8x32xf32>
      %283 = tpu.matmul %268, %2, %cst_83 {dimension_numbers = #tpu.dot_dimension_numbers<[1], [0], [0], [1], [0, 0, 1, 1], [], []>} : vector<8x32xf32>, vector<32x32xf32>, vector<8x32xf32> -> vector<8x32xf32>
      %284 = arith.addf %283, %282 : vector<8x32xf32>
      %285 = arith.mulf %43, %279 : vector<8x32xf32>
      %286 = arith.addf %268, %285 : vector<8x32xf32>
      %287 = arith.mulf %43, %284 : vector<8x32xf32>
      %288 = arith.addf %277, %287 : vector<8x32xf32>
      %cst_84 = arith.constant 0.000000e+00 : f32
      %289 = vector.broadcast %cst_84 : f32 to vector<8x32xf32>
      %290 = arith.subf %289, %288 : vector<8x32xf32>
      %291 = arith.mulf %1, %288 : vector<8x32xf32>
      %292 = vector.broadcast %3 : vector<1x32xf32> to vector<8x32xf32>
      %293 = arith.subf %292, %291 : vector<8x32xf32>
      %cst_85 = arith.constant dense<0.000000e+00> : vector<8x32xf32>
      %294 = tpu.matmul %286, %2, %cst_85 {dimension_numbers = #tpu.dot_dimension_numbers<[1], [0], [0], [1], [0, 0, 1, 1], [], []>} : vector<8x32xf32>, vector<32x32xf32>, vector<8x32xf32> -> vector<8x32xf32>
      %295 = arith.addf %294, %293 : vector<8x32xf32>
      %296 = arith.mulf %43, %290 : vector<8x32xf32>
      %297 = arith.addf %268, %296 : vector<8x32xf32>
      %298 = arith.mulf %43, %295 : vector<8x32xf32>
      %299 = arith.addf %277, %298 : vector<8x32xf32>
      %cst_86 = arith.constant 0.000000e+00 : f32
      %300 = vector.broadcast %cst_86 : f32 to vector<8x32xf32>
      %301 = arith.subf %300, %299 : vector<8x32xf32>
      %302 = arith.mulf %1, %299 : vector<8x32xf32>
      %303 = vector.broadcast %3 : vector<1x32xf32> to vector<8x32xf32>
      %304 = arith.subf %303, %302 : vector<8x32xf32>
      %cst_87 = arith.constant dense<0.000000e+00> : vector<8x32xf32>
      %305 = tpu.matmul %297, %2, %cst_87 {dimension_numbers = #tpu.dot_dimension_numbers<[1], [0], [0], [1], [0, 0, 1, 1], [], []>} : vector<8x32xf32>, vector<32x32xf32>, vector<8x32xf32> -> vector<8x32xf32>
      %306 = arith.addf %305, %304 : vector<8x32xf32>
      %307 = arith.mulf %41, %301 : vector<8x32xf32>
      %308 = arith.addf %268, %307 : vector<8x32xf32>
      %309 = arith.mulf %41, %306 : vector<8x32xf32>
      %310 = arith.addf %277, %309 : vector<8x32xf32>
      %cst_88 = arith.constant 0.000000e+00 : f32
      %311 = vector.broadcast %cst_88 : f32 to vector<8x32xf32>
      %312 = arith.subf %311, %310 : vector<8x32xf32>
      %313 = arith.mulf %1, %310 : vector<8x32xf32>
      %314 = vector.broadcast %3 : vector<1x32xf32> to vector<8x32xf32>
      %315 = arith.subf %314, %313 : vector<8x32xf32>
      %cst_89 = arith.constant dense<0.000000e+00> : vector<8x32xf32>
      %316 = tpu.matmul %308, %2, %cst_89 {dimension_numbers = #tpu.dot_dimension_numbers<[1], [0], [0], [1], [0, 0, 1, 1], [], []>} : vector<8x32xf32>, vector<32x32xf32>, vector<8x32xf32> -> vector<8x32xf32>
      %317 = arith.addf %316, %315 : vector<8x32xf32>
      %cst_90 = arith.constant 2.000000e+00 : f32
      %318 = vector.broadcast %cst_90 : f32 to vector<8x32xf32>
      %319 = arith.mulf %318, %290 : vector<8x32xf32>
      %320 = arith.addf %279, %319 : vector<8x32xf32>
      %cst_91 = arith.constant 2.000000e+00 : f32
      %321 = vector.broadcast %cst_91 : f32 to vector<8x32xf32>
      %322 = arith.mulf %321, %301 : vector<8x32xf32>
      %323 = arith.addf %320, %322 : vector<8x32xf32>
      %324 = arith.addf %323, %312 : vector<8x32xf32>
      %325 = arith.mulf %45, %324 : vector<8x32xf32>
      %326 = arith.addf %268, %325 : vector<8x32xf32>
      %cst_92 = arith.constant 2.000000e+00 : f32
      %327 = vector.broadcast %cst_92 : f32 to vector<8x32xf32>
      %328 = arith.mulf %327, %295 : vector<8x32xf32>
      %329 = arith.addf %284, %328 : vector<8x32xf32>
      %cst_93 = arith.constant 2.000000e+00 : f32
      %330 = vector.broadcast %cst_93 : f32 to vector<8x32xf32>
      %331 = arith.mulf %330, %306 : vector<8x32xf32>
      %332 = arith.addf %329, %331 : vector<8x32xf32>
      %333 = arith.addf %332, %317 : vector<8x32xf32>
      %334 = arith.mulf %45, %333 : vector<8x32xf32>
      %335 = arith.addf %277, %334 : vector<8x32xf32>
      %cst_94 = arith.constant 0.000000e+00 : f32
      %336 = vector.broadcast %cst_94 : f32 to vector<8x32xf32>
      %337 = arith.subf %336, %335 : vector<8x32xf32>
      %338 = arith.mulf %1, %335 : vector<8x32xf32>
      %339 = vector.broadcast %3 : vector<1x32xf32> to vector<8x32xf32>
      %340 = arith.subf %339, %338 : vector<8x32xf32>
      %cst_95 = arith.constant dense<0.000000e+00> : vector<8x32xf32>
      %341 = tpu.matmul %326, %2, %cst_95 {dimension_numbers = #tpu.dot_dimension_numbers<[1], [0], [0], [1], [0, 0, 1, 1], [], []>} : vector<8x32xf32>, vector<32x32xf32>, vector<8x32xf32> -> vector<8x32xf32>
      %342 = arith.addf %341, %340 : vector<8x32xf32>
      %343 = arith.mulf %43, %337 : vector<8x32xf32>
      %344 = arith.addf %326, %343 : vector<8x32xf32>
      %345 = arith.mulf %43, %342 : vector<8x32xf32>
      %346 = arith.addf %335, %345 : vector<8x32xf32>
      %cst_96 = arith.constant 0.000000e+00 : f32
      %347 = vector.broadcast %cst_96 : f32 to vector<8x32xf32>
      %348 = arith.subf %347, %346 : vector<8x32xf32>
      %349 = arith.mulf %1, %346 : vector<8x32xf32>
      %350 = vector.broadcast %3 : vector<1x32xf32> to vector<8x32xf32>
      %351 = arith.subf %350, %349 : vector<8x32xf32>
      %cst_97 = arith.constant dense<0.000000e+00> : vector<8x32xf32>
      %352 = tpu.matmul %344, %2, %cst_97 {dimension_numbers = #tpu.dot_dimension_numbers<[1], [0], [0], [1], [0, 0, 1, 1], [], []>} : vector<8x32xf32>, vector<32x32xf32>, vector<8x32xf32> -> vector<8x32xf32>
      %353 = arith.addf %352, %351 : vector<8x32xf32>
      %354 = arith.mulf %43, %348 : vector<8x32xf32>
      %355 = arith.addf %326, %354 : vector<8x32xf32>
      %356 = arith.mulf %43, %353 : vector<8x32xf32>
      %357 = arith.addf %335, %356 : vector<8x32xf32>
      %cst_98 = arith.constant 0.000000e+00 : f32
      %358 = vector.broadcast %cst_98 : f32 to vector<8x32xf32>
      %359 = arith.subf %358, %357 : vector<8x32xf32>
      %360 = arith.mulf %1, %357 : vector<8x32xf32>
      %361 = vector.broadcast %3 : vector<1x32xf32> to vector<8x32xf32>
      %362 = arith.subf %361, %360 : vector<8x32xf32>
      %cst_99 = arith.constant dense<0.000000e+00> : vector<8x32xf32>
      %363 = tpu.matmul %355, %2, %cst_99 {dimension_numbers = #tpu.dot_dimension_numbers<[1], [0], [0], [1], [0, 0, 1, 1], [], []>} : vector<8x32xf32>, vector<32x32xf32>, vector<8x32xf32> -> vector<8x32xf32>
      %364 = arith.addf %363, %362 : vector<8x32xf32>
      %365 = arith.mulf %41, %359 : vector<8x32xf32>
      %366 = arith.addf %326, %365 : vector<8x32xf32>
      %367 = arith.mulf %41, %364 : vector<8x32xf32>
      %368 = arith.addf %335, %367 : vector<8x32xf32>
      %cst_100 = arith.constant 0.000000e+00 : f32
      %369 = vector.broadcast %cst_100 : f32 to vector<8x32xf32>
      %370 = arith.subf %369, %368 : vector<8x32xf32>
      %371 = arith.mulf %1, %368 : vector<8x32xf32>
      %372 = vector.broadcast %3 : vector<1x32xf32> to vector<8x32xf32>
      %373 = arith.subf %372, %371 : vector<8x32xf32>
      %cst_101 = arith.constant dense<0.000000e+00> : vector<8x32xf32>
      %374 = tpu.matmul %366, %2, %cst_101 {dimension_numbers = #tpu.dot_dimension_numbers<[1], [0], [0], [1], [0, 0, 1, 1], [], []>} : vector<8x32xf32>, vector<32x32xf32>, vector<8x32xf32> -> vector<8x32xf32>
      %375 = arith.addf %374, %373 : vector<8x32xf32>
      %cst_102 = arith.constant 2.000000e+00 : f32
      %376 = vector.broadcast %cst_102 : f32 to vector<8x32xf32>
      %377 = arith.mulf %376, %348 : vector<8x32xf32>
      %378 = arith.addf %337, %377 : vector<8x32xf32>
      %cst_103 = arith.constant 2.000000e+00 : f32
      %379 = vector.broadcast %cst_103 : f32 to vector<8x32xf32>
      %380 = arith.mulf %379, %359 : vector<8x32xf32>
      %381 = arith.addf %378, %380 : vector<8x32xf32>
      %382 = arith.addf %381, %370 : vector<8x32xf32>
      %383 = arith.mulf %45, %382 : vector<8x32xf32>
      %384 = arith.addf %326, %383 : vector<8x32xf32>
      %cst_104 = arith.constant 2.000000e+00 : f32
      %385 = vector.broadcast %cst_104 : f32 to vector<8x32xf32>
      %386 = arith.mulf %385, %353 : vector<8x32xf32>
      %387 = arith.addf %342, %386 : vector<8x32xf32>
      %cst_105 = arith.constant 2.000000e+00 : f32
      %388 = vector.broadcast %cst_105 : f32 to vector<8x32xf32>
      %389 = arith.mulf %388, %364 : vector<8x32xf32>
      %390 = arith.addf %387, %389 : vector<8x32xf32>
      %391 = arith.addf %390, %375 : vector<8x32xf32>
      %392 = arith.mulf %45, %391 : vector<8x32xf32>
      %393 = arith.addf %335, %392 : vector<8x32xf32>
      %cst_106 = arith.constant 0.000000e+00 : f32
      %394 = vector.broadcast %cst_106 : f32 to vector<8x32xf32>
      %395 = arith.subf %394, %393 : vector<8x32xf32>
      %396 = arith.mulf %1, %393 : vector<8x32xf32>
      %397 = vector.broadcast %3 : vector<1x32xf32> to vector<8x32xf32>
      %398 = arith.subf %397, %396 : vector<8x32xf32>
      %cst_107 = arith.constant dense<0.000000e+00> : vector<8x32xf32>
      %399 = tpu.matmul %384, %2, %cst_107 {dimension_numbers = #tpu.dot_dimension_numbers<[1], [0], [0], [1], [0, 0, 1, 1], [], []>} : vector<8x32xf32>, vector<32x32xf32>, vector<8x32xf32> -> vector<8x32xf32>
      %400 = arith.addf %399, %398 : vector<8x32xf32>
      %401 = arith.mulf %43, %395 : vector<8x32xf32>
      %402 = arith.addf %384, %401 : vector<8x32xf32>
      %403 = arith.mulf %43, %400 : vector<8x32xf32>
      %404 = arith.addf %393, %403 : vector<8x32xf32>
      %cst_108 = arith.constant 0.000000e+00 : f32
      %405 = vector.broadcast %cst_108 : f32 to vector<8x32xf32>
      %406 = arith.subf %405, %404 : vector<8x32xf32>
      %407 = arith.mulf %1, %404 : vector<8x32xf32>
      %408 = vector.broadcast %3 : vector<1x32xf32> to vector<8x32xf32>
      %409 = arith.subf %408, %407 : vector<8x32xf32>
      %cst_109 = arith.constant dense<0.000000e+00> : vector<8x32xf32>
      %410 = tpu.matmul %402, %2, %cst_109 {dimension_numbers = #tpu.dot_dimension_numbers<[1], [0], [0], [1], [0, 0, 1, 1], [], []>} : vector<8x32xf32>, vector<32x32xf32>, vector<8x32xf32> -> vector<8x32xf32>
      %411 = arith.addf %410, %409 : vector<8x32xf32>
      %412 = arith.mulf %43, %406 : vector<8x32xf32>
      %413 = arith.addf %384, %412 : vector<8x32xf32>
      %414 = arith.mulf %43, %411 : vector<8x32xf32>
      %415 = arith.addf %393, %414 : vector<8x32xf32>
      %cst_110 = arith.constant 0.000000e+00 : f32
      %416 = vector.broadcast %cst_110 : f32 to vector<8x32xf32>
      %417 = arith.subf %416, %415 : vector<8x32xf32>
      %418 = arith.mulf %1, %415 : vector<8x32xf32>
      %419 = vector.broadcast %3 : vector<1x32xf32> to vector<8x32xf32>
      %420 = arith.subf %419, %418 : vector<8x32xf32>
      %cst_111 = arith.constant dense<0.000000e+00> : vector<8x32xf32>
      %421 = tpu.matmul %413, %2, %cst_111 {dimension_numbers = #tpu.dot_dimension_numbers<[1], [0], [0], [1], [0, 0, 1, 1], [], []>} : vector<8x32xf32>, vector<32x32xf32>, vector<8x32xf32> -> vector<8x32xf32>
      %422 = arith.addf %421, %420 : vector<8x32xf32>
      %423 = arith.mulf %41, %417 : vector<8x32xf32>
      %424 = arith.addf %384, %423 : vector<8x32xf32>
      %425 = arith.mulf %41, %422 : vector<8x32xf32>
      %426 = arith.addf %393, %425 : vector<8x32xf32>
      %cst_112 = arith.constant 0.000000e+00 : f32
      %427 = vector.broadcast %cst_112 : f32 to vector<8x32xf32>
      %428 = arith.subf %427, %426 : vector<8x32xf32>
      %429 = arith.mulf %1, %426 : vector<8x32xf32>
      %430 = vector.broadcast %3 : vector<1x32xf32> to vector<8x32xf32>
      %431 = arith.subf %430, %429 : vector<8x32xf32>
      %cst_113 = arith.constant dense<0.000000e+00> : vector<8x32xf32>
      %432 = tpu.matmul %424, %2, %cst_113 {dimension_numbers = #tpu.dot_dimension_numbers<[1], [0], [0], [1], [0, 0, 1, 1], [], []>} : vector<8x32xf32>, vector<32x32xf32>, vector<8x32xf32> -> vector<8x32xf32>
      %433 = arith.addf %432, %431 : vector<8x32xf32>
      %cst_114 = arith.constant 2.000000e+00 : f32
      %434 = vector.broadcast %cst_114 : f32 to vector<8x32xf32>
      %435 = arith.mulf %434, %406 : vector<8x32xf32>
      %436 = arith.addf %395, %435 : vector<8x32xf32>
      %cst_115 = arith.constant 2.000000e+00 : f32
      %437 = vector.broadcast %cst_115 : f32 to vector<8x32xf32>
      %438 = arith.mulf %437, %417 : vector<8x32xf32>
      %439 = arith.addf %436, %438 : vector<8x32xf32>
      %440 = arith.addf %439, %428 : vector<8x32xf32>
      %441 = arith.mulf %45, %440 : vector<8x32xf32>
      %442 = arith.addf %384, %441 : vector<8x32xf32>
      %cst_116 = arith.constant 2.000000e+00 : f32
      %443 = vector.broadcast %cst_116 : f32 to vector<8x32xf32>
      %444 = arith.mulf %443, %411 : vector<8x32xf32>
      %445 = arith.addf %400, %444 : vector<8x32xf32>
      %cst_117 = arith.constant 2.000000e+00 : f32
      %446 = vector.broadcast %cst_117 : f32 to vector<8x32xf32>
      %447 = arith.mulf %446, %422 : vector<8x32xf32>
      %448 = arith.addf %445, %447 : vector<8x32xf32>
      %449 = arith.addf %448, %433 : vector<8x32xf32>
      %450 = arith.mulf %45, %449 : vector<8x32xf32>
      %451 = arith.addf %393, %450 : vector<8x32xf32>
      %cst_118 = arith.constant 0.000000e+00 : f32
      %452 = vector.broadcast %cst_118 : f32 to vector<8x32xf32>
      %453 = arith.subf %452, %451 : vector<8x32xf32>
      %454 = arith.mulf %1, %451 : vector<8x32xf32>
      %455 = vector.broadcast %3 : vector<1x32xf32> to vector<8x32xf32>
      %456 = arith.subf %455, %454 : vector<8x32xf32>
      %cst_119 = arith.constant dense<0.000000e+00> : vector<8x32xf32>
      %457 = tpu.matmul %442, %2, %cst_119 {dimension_numbers = #tpu.dot_dimension_numbers<[1], [0], [0], [1], [0, 0, 1, 1], [], []>} : vector<8x32xf32>, vector<32x32xf32>, vector<8x32xf32> -> vector<8x32xf32>
      %458 = arith.addf %457, %456 : vector<8x32xf32>
      %459 = arith.mulf %43, %453 : vector<8x32xf32>
      %460 = arith.addf %442, %459 : vector<8x32xf32>
      %461 = arith.mulf %43, %458 : vector<8x32xf32>
      %462 = arith.addf %451, %461 : vector<8x32xf32>
      %cst_120 = arith.constant 0.000000e+00 : f32
      %463 = vector.broadcast %cst_120 : f32 to vector<8x32xf32>
      %464 = arith.subf %463, %462 : vector<8x32xf32>
      %465 = arith.mulf %1, %462 : vector<8x32xf32>
      %466 = vector.broadcast %3 : vector<1x32xf32> to vector<8x32xf32>
      %467 = arith.subf %466, %465 : vector<8x32xf32>
      %cst_121 = arith.constant dense<0.000000e+00> : vector<8x32xf32>
      %468 = tpu.matmul %460, %2, %cst_121 {dimension_numbers = #tpu.dot_dimension_numbers<[1], [0], [0], [1], [0, 0, 1, 1], [], []>} : vector<8x32xf32>, vector<32x32xf32>, vector<8x32xf32> -> vector<8x32xf32>
      %469 = arith.addf %468, %467 : vector<8x32xf32>
      %470 = arith.mulf %43, %464 : vector<8x32xf32>
      %471 = arith.addf %442, %470 : vector<8x32xf32>
      %472 = arith.mulf %43, %469 : vector<8x32xf32>
      %473 = arith.addf %451, %472 : vector<8x32xf32>
      %cst_122 = arith.constant 0.000000e+00 : f32
      %474 = vector.broadcast %cst_122 : f32 to vector<8x32xf32>
      %475 = arith.subf %474, %473 : vector<8x32xf32>
      %476 = arith.mulf %1, %473 : vector<8x32xf32>
      %477 = vector.broadcast %3 : vector<1x32xf32> to vector<8x32xf32>
      %478 = arith.subf %477, %476 : vector<8x32xf32>
      %cst_123 = arith.constant dense<0.000000e+00> : vector<8x32xf32>
      %479 = tpu.matmul %471, %2, %cst_123 {dimension_numbers = #tpu.dot_dimension_numbers<[1], [0], [0], [1], [0, 0, 1, 1], [], []>} : vector<8x32xf32>, vector<32x32xf32>, vector<8x32xf32> -> vector<8x32xf32>
      %480 = arith.addf %479, %478 : vector<8x32xf32>
      %481 = arith.mulf %41, %475 : vector<8x32xf32>
      %482 = arith.addf %442, %481 : vector<8x32xf32>
      %483 = arith.mulf %41, %480 : vector<8x32xf32>
      %484 = arith.addf %451, %483 : vector<8x32xf32>
      %cst_124 = arith.constant 0.000000e+00 : f32
      %485 = vector.broadcast %cst_124 : f32 to vector<8x32xf32>
      %486 = arith.subf %485, %484 : vector<8x32xf32>
      %487 = arith.mulf %1, %484 : vector<8x32xf32>
      %488 = vector.broadcast %3 : vector<1x32xf32> to vector<8x32xf32>
      %489 = arith.subf %488, %487 : vector<8x32xf32>
      %cst_125 = arith.constant dense<0.000000e+00> : vector<8x32xf32>
      %490 = tpu.matmul %482, %2, %cst_125 {dimension_numbers = #tpu.dot_dimension_numbers<[1], [0], [0], [1], [0, 0, 1, 1], [], []>} : vector<8x32xf32>, vector<32x32xf32>, vector<8x32xf32> -> vector<8x32xf32>
      %491 = arith.addf %490, %489 : vector<8x32xf32>
      %cst_126 = arith.constant 2.000000e+00 : f32
      %492 = vector.broadcast %cst_126 : f32 to vector<8x32xf32>
      %493 = arith.mulf %492, %464 : vector<8x32xf32>
      %494 = arith.addf %453, %493 : vector<8x32xf32>
      %cst_127 = arith.constant 2.000000e+00 : f32
      %495 = vector.broadcast %cst_127 : f32 to vector<8x32xf32>
      %496 = arith.mulf %495, %475 : vector<8x32xf32>
      %497 = arith.addf %494, %496 : vector<8x32xf32>
      %498 = arith.addf %497, %486 : vector<8x32xf32>
      %499 = arith.mulf %45, %498 : vector<8x32xf32>
      %500 = arith.addf %442, %499 : vector<8x32xf32>
      %cst_128 = arith.constant 2.000000e+00 : f32
      %501 = vector.broadcast %cst_128 : f32 to vector<8x32xf32>
      %502 = arith.mulf %501, %469 : vector<8x32xf32>
      %503 = arith.addf %458, %502 : vector<8x32xf32>
      %cst_129 = arith.constant 2.000000e+00 : f32
      %504 = vector.broadcast %cst_129 : f32 to vector<8x32xf32>
      %505 = arith.mulf %504, %480 : vector<8x32xf32>
      %506 = arith.addf %503, %505 : vector<8x32xf32>
      %507 = arith.addf %506, %491 : vector<8x32xf32>
      %508 = arith.mulf %45, %507 : vector<8x32xf32>
      %509 = arith.addf %451, %508 : vector<8x32xf32>
      %cst_130 = arith.constant 0.000000e+00 : f32
      %510 = vector.broadcast %cst_130 : f32 to vector<8x32xf32>
      %511 = arith.subf %510, %509 : vector<8x32xf32>
      %512 = arith.mulf %1, %509 : vector<8x32xf32>
      %513 = vector.broadcast %3 : vector<1x32xf32> to vector<8x32xf32>
      %514 = arith.subf %513, %512 : vector<8x32xf32>
      %cst_131 = arith.constant dense<0.000000e+00> : vector<8x32xf32>
      %515 = tpu.matmul %500, %2, %cst_131 {dimension_numbers = #tpu.dot_dimension_numbers<[1], [0], [0], [1], [0, 0, 1, 1], [], []>} : vector<8x32xf32>, vector<32x32xf32>, vector<8x32xf32> -> vector<8x32xf32>
      %516 = arith.addf %515, %514 : vector<8x32xf32>
      %517 = arith.mulf %43, %511 : vector<8x32xf32>
      %518 = arith.addf %500, %517 : vector<8x32xf32>
      %519 = arith.mulf %43, %516 : vector<8x32xf32>
      %520 = arith.addf %509, %519 : vector<8x32xf32>
      %cst_132 = arith.constant 0.000000e+00 : f32
      %521 = vector.broadcast %cst_132 : f32 to vector<8x32xf32>
      %522 = arith.subf %521, %520 : vector<8x32xf32>
      %523 = arith.mulf %1, %520 : vector<8x32xf32>
      %524 = vector.broadcast %3 : vector<1x32xf32> to vector<8x32xf32>
      %525 = arith.subf %524, %523 : vector<8x32xf32>
      %cst_133 = arith.constant dense<0.000000e+00> : vector<8x32xf32>
      %526 = tpu.matmul %518, %2, %cst_133 {dimension_numbers = #tpu.dot_dimension_numbers<[1], [0], [0], [1], [0, 0, 1, 1], [], []>} : vector<8x32xf32>, vector<32x32xf32>, vector<8x32xf32> -> vector<8x32xf32>
      %527 = arith.addf %526, %525 : vector<8x32xf32>
      %528 = arith.mulf %43, %522 : vector<8x32xf32>
      %529 = arith.addf %500, %528 : vector<8x32xf32>
      %530 = arith.mulf %43, %527 : vector<8x32xf32>
      %531 = arith.addf %509, %530 : vector<8x32xf32>
      %cst_134 = arith.constant 0.000000e+00 : f32
      %532 = vector.broadcast %cst_134 : f32 to vector<8x32xf32>
      %533 = arith.subf %532, %531 : vector<8x32xf32>
      %534 = arith.mulf %1, %531 : vector<8x32xf32>
      %535 = vector.broadcast %3 : vector<1x32xf32> to vector<8x32xf32>
      %536 = arith.subf %535, %534 : vector<8x32xf32>
      %cst_135 = arith.constant dense<0.000000e+00> : vector<8x32xf32>
      %537 = tpu.matmul %529, %2, %cst_135 {dimension_numbers = #tpu.dot_dimension_numbers<[1], [0], [0], [1], [0, 0, 1, 1], [], []>} : vector<8x32xf32>, vector<32x32xf32>, vector<8x32xf32> -> vector<8x32xf32>
      %538 = arith.addf %537, %536 : vector<8x32xf32>
      %539 = arith.mulf %41, %533 : vector<8x32xf32>
      %540 = arith.addf %500, %539 : vector<8x32xf32>
      %541 = arith.mulf %41, %538 : vector<8x32xf32>
      %542 = arith.addf %509, %541 : vector<8x32xf32>
      %cst_136 = arith.constant 0.000000e+00 : f32
      %543 = vector.broadcast %cst_136 : f32 to vector<8x32xf32>
      %544 = arith.subf %543, %542 : vector<8x32xf32>
      %545 = arith.mulf %1, %542 : vector<8x32xf32>
      %546 = vector.broadcast %3 : vector<1x32xf32> to vector<8x32xf32>
      %547 = arith.subf %546, %545 : vector<8x32xf32>
      %cst_137 = arith.constant dense<0.000000e+00> : vector<8x32xf32>
      %548 = tpu.matmul %540, %2, %cst_137 {dimension_numbers = #tpu.dot_dimension_numbers<[1], [0], [0], [1], [0, 0, 1, 1], [], []>} : vector<8x32xf32>, vector<32x32xf32>, vector<8x32xf32> -> vector<8x32xf32>
      %549 = arith.addf %548, %547 : vector<8x32xf32>
      %cst_138 = arith.constant 2.000000e+00 : f32
      %550 = vector.broadcast %cst_138 : f32 to vector<8x32xf32>
      %551 = arith.mulf %550, %522 : vector<8x32xf32>
      %552 = arith.addf %511, %551 : vector<8x32xf32>
      %cst_139 = arith.constant 2.000000e+00 : f32
      %553 = vector.broadcast %cst_139 : f32 to vector<8x32xf32>
      %554 = arith.mulf %553, %533 : vector<8x32xf32>
      %555 = arith.addf %552, %554 : vector<8x32xf32>
      %556 = arith.addf %555, %544 : vector<8x32xf32>
      %557 = arith.mulf %45, %556 : vector<8x32xf32>
      %558 = arith.addf %500, %557 : vector<8x32xf32>
      %cst_140 = arith.constant 2.000000e+00 : f32
      %559 = vector.broadcast %cst_140 : f32 to vector<8x32xf32>
      %560 = arith.mulf %559, %527 : vector<8x32xf32>
      %561 = arith.addf %516, %560 : vector<8x32xf32>
      %cst_141 = arith.constant 2.000000e+00 : f32
      %562 = vector.broadcast %cst_141 : f32 to vector<8x32xf32>
      %563 = arith.mulf %562, %538 : vector<8x32xf32>
      %564 = arith.addf %561, %563 : vector<8x32xf32>
      %565 = arith.addf %564, %549 : vector<8x32xf32>
      %566 = arith.mulf %45, %565 : vector<8x32xf32>
      %567 = arith.addf %509, %566 : vector<8x32xf32>
      %cst_142 = arith.constant 0.000000e+00 : f32
      %568 = vector.broadcast %cst_142 : f32 to vector<8x32xf32>
      %569 = arith.subf %568, %567 : vector<8x32xf32>
      %570 = arith.mulf %1, %567 : vector<8x32xf32>
      %571 = vector.broadcast %3 : vector<1x32xf32> to vector<8x32xf32>
      %572 = arith.subf %571, %570 : vector<8x32xf32>
      %cst_143 = arith.constant dense<0.000000e+00> : vector<8x32xf32>
      %573 = tpu.matmul %558, %2, %cst_143 {dimension_numbers = #tpu.dot_dimension_numbers<[1], [0], [0], [1], [0, 0, 1, 1], [], []>} : vector<8x32xf32>, vector<32x32xf32>, vector<8x32xf32> -> vector<8x32xf32>
      %574 = arith.addf %573, %572 : vector<8x32xf32>
      %575 = arith.mulf %43, %569 : vector<8x32xf32>
      %576 = arith.addf %558, %575 : vector<8x32xf32>
      %577 = arith.mulf %43, %574 : vector<8x32xf32>
      %578 = arith.addf %567, %577 : vector<8x32xf32>
      %cst_144 = arith.constant 0.000000e+00 : f32
      %579 = vector.broadcast %cst_144 : f32 to vector<8x32xf32>
      %580 = arith.subf %579, %578 : vector<8x32xf32>
      %581 = arith.mulf %1, %578 : vector<8x32xf32>
      %582 = vector.broadcast %3 : vector<1x32xf32> to vector<8x32xf32>
      %583 = arith.subf %582, %581 : vector<8x32xf32>
      %cst_145 = arith.constant dense<0.000000e+00> : vector<8x32xf32>
      %584 = tpu.matmul %576, %2, %cst_145 {dimension_numbers = #tpu.dot_dimension_numbers<[1], [0], [0], [1], [0, 0, 1, 1], [], []>} : vector<8x32xf32>, vector<32x32xf32>, vector<8x32xf32> -> vector<8x32xf32>
      %585 = arith.addf %584, %583 : vector<8x32xf32>
      %586 = arith.mulf %43, %580 : vector<8x32xf32>
      %587 = arith.addf %558, %586 : vector<8x32xf32>
      %588 = arith.mulf %43, %585 : vector<8x32xf32>
      %589 = arith.addf %567, %588 : vector<8x32xf32>
      %cst_146 = arith.constant 0.000000e+00 : f32
      %590 = vector.broadcast %cst_146 : f32 to vector<8x32xf32>
      %591 = arith.subf %590, %589 : vector<8x32xf32>
      %592 = arith.mulf %1, %589 : vector<8x32xf32>
      %593 = vector.broadcast %3 : vector<1x32xf32> to vector<8x32xf32>
      %594 = arith.subf %593, %592 : vector<8x32xf32>
      %cst_147 = arith.constant dense<0.000000e+00> : vector<8x32xf32>
      %595 = tpu.matmul %587, %2, %cst_147 {dimension_numbers = #tpu.dot_dimension_numbers<[1], [0], [0], [1], [0, 0, 1, 1], [], []>} : vector<8x32xf32>, vector<32x32xf32>, vector<8x32xf32> -> vector<8x32xf32>
      %596 = arith.addf %595, %594 : vector<8x32xf32>
      %597 = arith.mulf %41, %591 : vector<8x32xf32>
      %598 = arith.addf %558, %597 : vector<8x32xf32>
      %599 = arith.mulf %41, %596 : vector<8x32xf32>
      %600 = arith.addf %567, %599 : vector<8x32xf32>
      %cst_148 = arith.constant 0.000000e+00 : f32
      %601 = vector.broadcast %cst_148 : f32 to vector<8x32xf32>
      %602 = arith.subf %601, %600 : vector<8x32xf32>
      %603 = arith.mulf %1, %600 : vector<8x32xf32>
      %604 = vector.broadcast %3 : vector<1x32xf32> to vector<8x32xf32>
      %605 = arith.subf %604, %603 : vector<8x32xf32>
      %cst_149 = arith.constant dense<0.000000e+00> : vector<8x32xf32>
      %606 = tpu.matmul %598, %2, %cst_149 {dimension_numbers = #tpu.dot_dimension_numbers<[1], [0], [0], [1], [0, 0, 1, 1], [], []>} : vector<8x32xf32>, vector<32x32xf32>, vector<8x32xf32> -> vector<8x32xf32>
      %607 = arith.addf %606, %605 : vector<8x32xf32>
      %cst_150 = arith.constant 2.000000e+00 : f32
      %608 = vector.broadcast %cst_150 : f32 to vector<8x32xf32>
      %609 = arith.mulf %608, %580 : vector<8x32xf32>
      %610 = arith.addf %569, %609 : vector<8x32xf32>
      %cst_151 = arith.constant 2.000000e+00 : f32
      %611 = vector.broadcast %cst_151 : f32 to vector<8x32xf32>
      %612 = arith.mulf %611, %591 : vector<8x32xf32>
      %613 = arith.addf %610, %612 : vector<8x32xf32>
      %614 = arith.addf %613, %602 : vector<8x32xf32>
      %615 = arith.mulf %45, %614 : vector<8x32xf32>
      %616 = arith.addf %558, %615 : vector<8x32xf32>
      %cst_152 = arith.constant 2.000000e+00 : f32
      %617 = vector.broadcast %cst_152 : f32 to vector<8x32xf32>
      %618 = arith.mulf %617, %585 : vector<8x32xf32>
      %619 = arith.addf %574, %618 : vector<8x32xf32>
      %cst_153 = arith.constant 2.000000e+00 : f32
      %620 = vector.broadcast %cst_153 : f32 to vector<8x32xf32>
      %621 = arith.mulf %620, %596 : vector<8x32xf32>
      %622 = arith.addf %619, %621 : vector<8x32xf32>
      %623 = arith.addf %622, %607 : vector<8x32xf32>
      %624 = arith.mulf %45, %623 : vector<8x32xf32>
      %625 = arith.addf %567, %624 : vector<8x32xf32>
      %cst_154 = arith.constant 0.000000e+00 : f32
      %626 = vector.broadcast %cst_154 : f32 to vector<8x32xf32>
      %627 = arith.subf %626, %625 : vector<8x32xf32>
      %628 = arith.mulf %1, %625 : vector<8x32xf32>
      %629 = vector.broadcast %3 : vector<1x32xf32> to vector<8x32xf32>
      %630 = arith.subf %629, %628 : vector<8x32xf32>
      %cst_155 = arith.constant dense<0.000000e+00> : vector<8x32xf32>
      %631 = tpu.matmul %616, %2, %cst_155 {dimension_numbers = #tpu.dot_dimension_numbers<[1], [0], [0], [1], [0, 0, 1, 1], [], []>} : vector<8x32xf32>, vector<32x32xf32>, vector<8x32xf32> -> vector<8x32xf32>
      %632 = arith.addf %631, %630 : vector<8x32xf32>
      %633 = arith.mulf %43, %627 : vector<8x32xf32>
      %634 = arith.addf %616, %633 : vector<8x32xf32>
      %635 = arith.mulf %43, %632 : vector<8x32xf32>
      %636 = arith.addf %625, %635 : vector<8x32xf32>
      %cst_156 = arith.constant 0.000000e+00 : f32
      %637 = vector.broadcast %cst_156 : f32 to vector<8x32xf32>
      %638 = arith.subf %637, %636 : vector<8x32xf32>
      %639 = arith.mulf %1, %636 : vector<8x32xf32>
      %640 = vector.broadcast %3 : vector<1x32xf32> to vector<8x32xf32>
      %641 = arith.subf %640, %639 : vector<8x32xf32>
      %cst_157 = arith.constant dense<0.000000e+00> : vector<8x32xf32>
      %642 = tpu.matmul %634, %2, %cst_157 {dimension_numbers = #tpu.dot_dimension_numbers<[1], [0], [0], [1], [0, 0, 1, 1], [], []>} : vector<8x32xf32>, vector<32x32xf32>, vector<8x32xf32> -> vector<8x32xf32>
      %643 = arith.addf %642, %641 : vector<8x32xf32>
      %644 = arith.mulf %43, %638 : vector<8x32xf32>
      %645 = arith.addf %616, %644 : vector<8x32xf32>
      %646 = arith.mulf %43, %643 : vector<8x32xf32>
      %647 = arith.addf %625, %646 : vector<8x32xf32>
      %cst_158 = arith.constant 0.000000e+00 : f32
      %648 = vector.broadcast %cst_158 : f32 to vector<8x32xf32>
      %649 = arith.subf %648, %647 : vector<8x32xf32>
      %650 = arith.mulf %1, %647 : vector<8x32xf32>
      %651 = vector.broadcast %3 : vector<1x32xf32> to vector<8x32xf32>
      %652 = arith.subf %651, %650 : vector<8x32xf32>
      %cst_159 = arith.constant dense<0.000000e+00> : vector<8x32xf32>
      %653 = tpu.matmul %645, %2, %cst_159 {dimension_numbers = #tpu.dot_dimension_numbers<[1], [0], [0], [1], [0, 0, 1, 1], [], []>} : vector<8x32xf32>, vector<32x32xf32>, vector<8x32xf32> -> vector<8x32xf32>
      %654 = arith.addf %653, %652 : vector<8x32xf32>
      %655 = arith.mulf %41, %649 : vector<8x32xf32>
      %656 = arith.addf %616, %655 : vector<8x32xf32>
      %657 = arith.mulf %41, %654 : vector<8x32xf32>
      %658 = arith.addf %625, %657 : vector<8x32xf32>
      %cst_160 = arith.constant 0.000000e+00 : f32
      %659 = vector.broadcast %cst_160 : f32 to vector<8x32xf32>
      %660 = arith.subf %659, %658 : vector<8x32xf32>
      %661 = arith.mulf %1, %658 : vector<8x32xf32>
      %662 = vector.broadcast %3 : vector<1x32xf32> to vector<8x32xf32>
      %663 = arith.subf %662, %661 : vector<8x32xf32>
      %cst_161 = arith.constant dense<0.000000e+00> : vector<8x32xf32>
      %664 = tpu.matmul %656, %2, %cst_161 {dimension_numbers = #tpu.dot_dimension_numbers<[1], [0], [0], [1], [0, 0, 1, 1], [], []>} : vector<8x32xf32>, vector<32x32xf32>, vector<8x32xf32> -> vector<8x32xf32>
      %665 = arith.addf %664, %663 : vector<8x32xf32>
      %cst_162 = arith.constant 2.000000e+00 : f32
      %666 = vector.broadcast %cst_162 : f32 to vector<8x32xf32>
      %667 = arith.mulf %666, %638 : vector<8x32xf32>
      %668 = arith.addf %627, %667 : vector<8x32xf32>
      %cst_163 = arith.constant 2.000000e+00 : f32
      %669 = vector.broadcast %cst_163 : f32 to vector<8x32xf32>
      %670 = arith.mulf %669, %649 : vector<8x32xf32>
      %671 = arith.addf %668, %670 : vector<8x32xf32>
      %672 = arith.addf %671, %660 : vector<8x32xf32>
      %673 = arith.mulf %45, %672 : vector<8x32xf32>
      %674 = arith.addf %616, %673 : vector<8x32xf32>
      %cst_164 = arith.constant 2.000000e+00 : f32
      %675 = vector.broadcast %cst_164 : f32 to vector<8x32xf32>
      %676 = arith.mulf %675, %643 : vector<8x32xf32>
      %677 = arith.addf %632, %676 : vector<8x32xf32>
      %cst_165 = arith.constant 2.000000e+00 : f32
      %678 = vector.broadcast %cst_165 : f32 to vector<8x32xf32>
      %679 = arith.mulf %678, %654 : vector<8x32xf32>
      %680 = arith.addf %677, %679 : vector<8x32xf32>
      %681 = arith.addf %680, %665 : vector<8x32xf32>
      %682 = arith.mulf %45, %681 : vector<8x32xf32>
      %683 = arith.addf %625, %682 : vector<8x32xf32>
      %cst_166 = arith.constant 0.000000e+00 : f32
      %684 = vector.broadcast %cst_166 : f32 to vector<8x32xf32>
      %685 = arith.subf %684, %683 : vector<8x32xf32>
      %686 = arith.mulf %1, %683 : vector<8x32xf32>
      %687 = vector.broadcast %3 : vector<1x32xf32> to vector<8x32xf32>
      %688 = arith.subf %687, %686 : vector<8x32xf32>
      %cst_167 = arith.constant dense<0.000000e+00> : vector<8x32xf32>
      %689 = tpu.matmul %674, %2, %cst_167 {dimension_numbers = #tpu.dot_dimension_numbers<[1], [0], [0], [1], [0, 0, 1, 1], [], []>} : vector<8x32xf32>, vector<32x32xf32>, vector<8x32xf32> -> vector<8x32xf32>
      %690 = arith.addf %689, %688 : vector<8x32xf32>
      %691 = arith.mulf %43, %685 : vector<8x32xf32>
      %692 = arith.addf %674, %691 : vector<8x32xf32>
      %693 = arith.mulf %43, %690 : vector<8x32xf32>
      %694 = arith.addf %683, %693 : vector<8x32xf32>
      %cst_168 = arith.constant 0.000000e+00 : f32
      %695 = vector.broadcast %cst_168 : f32 to vector<8x32xf32>
      %696 = arith.subf %695, %694 : vector<8x32xf32>
      %697 = arith.mulf %1, %694 : vector<8x32xf32>
      %698 = vector.broadcast %3 : vector<1x32xf32> to vector<8x32xf32>
      %699 = arith.subf %698, %697 : vector<8x32xf32>
      %cst_169 = arith.constant dense<0.000000e+00> : vector<8x32xf32>
      %700 = tpu.matmul %692, %2, %cst_169 {dimension_numbers = #tpu.dot_dimension_numbers<[1], [0], [0], [1], [0, 0, 1, 1], [], []>} : vector<8x32xf32>, vector<32x32xf32>, vector<8x32xf32> -> vector<8x32xf32>
      %701 = arith.addf %700, %699 : vector<8x32xf32>
      %702 = arith.mulf %43, %696 : vector<8x32xf32>
      %703 = arith.addf %674, %702 : vector<8x32xf32>
      %704 = arith.mulf %43, %701 : vector<8x32xf32>
      %705 = arith.addf %683, %704 : vector<8x32xf32>
      %cst_170 = arith.constant 0.000000e+00 : f32
      %706 = vector.broadcast %cst_170 : f32 to vector<8x32xf32>
      %707 = arith.subf %706, %705 : vector<8x32xf32>
      %708 = arith.mulf %1, %705 : vector<8x32xf32>
      %709 = vector.broadcast %3 : vector<1x32xf32> to vector<8x32xf32>
      %710 = arith.subf %709, %708 : vector<8x32xf32>
      %cst_171 = arith.constant dense<0.000000e+00> : vector<8x32xf32>
      %711 = tpu.matmul %703, %2, %cst_171 {dimension_numbers = #tpu.dot_dimension_numbers<[1], [0], [0], [1], [0, 0, 1, 1], [], []>} : vector<8x32xf32>, vector<32x32xf32>, vector<8x32xf32> -> vector<8x32xf32>
      %712 = arith.addf %711, %710 : vector<8x32xf32>
      %713 = arith.mulf %41, %707 : vector<8x32xf32>
      %714 = arith.addf %674, %713 : vector<8x32xf32>
      %715 = arith.mulf %41, %712 : vector<8x32xf32>
      %716 = arith.addf %683, %715 : vector<8x32xf32>
      %cst_172 = arith.constant 0.000000e+00 : f32
      %717 = vector.broadcast %cst_172 : f32 to vector<8x32xf32>
      %718 = arith.subf %717, %716 : vector<8x32xf32>
      %719 = arith.mulf %1, %716 : vector<8x32xf32>
      %720 = vector.broadcast %3 : vector<1x32xf32> to vector<8x32xf32>
      %721 = arith.subf %720, %719 : vector<8x32xf32>
      %cst_173 = arith.constant dense<0.000000e+00> : vector<8x32xf32>
      %722 = tpu.matmul %714, %2, %cst_173 {dimension_numbers = #tpu.dot_dimension_numbers<[1], [0], [0], [1], [0, 0, 1, 1], [], []>} : vector<8x32xf32>, vector<32x32xf32>, vector<8x32xf32> -> vector<8x32xf32>
      %723 = arith.addf %722, %721 : vector<8x32xf32>
      %cst_174 = arith.constant 2.000000e+00 : f32
      %724 = vector.broadcast %cst_174 : f32 to vector<8x32xf32>
      %725 = arith.mulf %724, %696 : vector<8x32xf32>
      %726 = arith.addf %685, %725 : vector<8x32xf32>
      %cst_175 = arith.constant 2.000000e+00 : f32
      %727 = vector.broadcast %cst_175 : f32 to vector<8x32xf32>
      %728 = arith.mulf %727, %707 : vector<8x32xf32>
      %729 = arith.addf %726, %728 : vector<8x32xf32>
      %730 = arith.addf %729, %718 : vector<8x32xf32>
      %731 = arith.mulf %45, %730 : vector<8x32xf32>
      %732 = arith.addf %674, %731 : vector<8x32xf32>
      %cst_176 = arith.constant 2.000000e+00 : f32
      %733 = vector.broadcast %cst_176 : f32 to vector<8x32xf32>
      %734 = arith.mulf %733, %701 : vector<8x32xf32>
      %735 = arith.addf %690, %734 : vector<8x32xf32>
      %cst_177 = arith.constant 2.000000e+00 : f32
      %736 = vector.broadcast %cst_177 : f32 to vector<8x32xf32>
      %737 = arith.mulf %736, %712 : vector<8x32xf32>
      %738 = arith.addf %735, %737 : vector<8x32xf32>
      %739 = arith.addf %738, %723 : vector<8x32xf32>
      %740 = arith.mulf %45, %739 : vector<8x32xf32>
      %741 = arith.addf %683, %740 : vector<8x32xf32>
      %cst_178 = arith.constant 0.000000e+00 : f32
      %742 = vector.broadcast %cst_178 : f32 to vector<8x32xf32>
      %743 = arith.subf %742, %741 : vector<8x32xf32>
      %744 = arith.mulf %1, %741 : vector<8x32xf32>
      %745 = vector.broadcast %3 : vector<1x32xf32> to vector<8x32xf32>
      %746 = arith.subf %745, %744 : vector<8x32xf32>
      %cst_179 = arith.constant dense<0.000000e+00> : vector<8x32xf32>
      %747 = tpu.matmul %732, %2, %cst_179 {dimension_numbers = #tpu.dot_dimension_numbers<[1], [0], [0], [1], [0, 0, 1, 1], [], []>} : vector<8x32xf32>, vector<32x32xf32>, vector<8x32xf32> -> vector<8x32xf32>
      %748 = arith.addf %747, %746 : vector<8x32xf32>
      %749 = arith.mulf %43, %743 : vector<8x32xf32>
      %750 = arith.addf %732, %749 : vector<8x32xf32>
      %751 = arith.mulf %43, %748 : vector<8x32xf32>
      %752 = arith.addf %741, %751 : vector<8x32xf32>
      %cst_180 = arith.constant 0.000000e+00 : f32
      %753 = vector.broadcast %cst_180 : f32 to vector<8x32xf32>
      %754 = arith.subf %753, %752 : vector<8x32xf32>
      %755 = arith.mulf %1, %752 : vector<8x32xf32>
      %756 = vector.broadcast %3 : vector<1x32xf32> to vector<8x32xf32>
      %757 = arith.subf %756, %755 : vector<8x32xf32>
      %cst_181 = arith.constant dense<0.000000e+00> : vector<8x32xf32>
      %758 = tpu.matmul %750, %2, %cst_181 {dimension_numbers = #tpu.dot_dimension_numbers<[1], [0], [0], [1], [0, 0, 1, 1], [], []>} : vector<8x32xf32>, vector<32x32xf32>, vector<8x32xf32> -> vector<8x32xf32>
      %759 = arith.addf %758, %757 : vector<8x32xf32>
      %760 = arith.mulf %43, %754 : vector<8x32xf32>
      %761 = arith.addf %732, %760 : vector<8x32xf32>
      %762 = arith.mulf %43, %759 : vector<8x32xf32>
      %763 = arith.addf %741, %762 : vector<8x32xf32>
      %cst_182 = arith.constant 0.000000e+00 : f32
      %764 = vector.broadcast %cst_182 : f32 to vector<8x32xf32>
      %765 = arith.subf %764, %763 : vector<8x32xf32>
      %766 = arith.mulf %1, %763 : vector<8x32xf32>
      %767 = vector.broadcast %3 : vector<1x32xf32> to vector<8x32xf32>
      %768 = arith.subf %767, %766 : vector<8x32xf32>
      %cst_183 = arith.constant dense<0.000000e+00> : vector<8x32xf32>
      %769 = tpu.matmul %761, %2, %cst_183 {dimension_numbers = #tpu.dot_dimension_numbers<[1], [0], [0], [1], [0, 0, 1, 1], [], []>} : vector<8x32xf32>, vector<32x32xf32>, vector<8x32xf32> -> vector<8x32xf32>
      %770 = arith.addf %769, %768 : vector<8x32xf32>
      %771 = arith.mulf %41, %765 : vector<8x32xf32>
      %772 = arith.addf %732, %771 : vector<8x32xf32>
      %773 = arith.mulf %41, %770 : vector<8x32xf32>
      %774 = arith.addf %741, %773 : vector<8x32xf32>
      %cst_184 = arith.constant 0.000000e+00 : f32
      %775 = vector.broadcast %cst_184 : f32 to vector<8x32xf32>
      %776 = arith.subf %775, %774 : vector<8x32xf32>
      %777 = arith.mulf %1, %774 : vector<8x32xf32>
      %778 = vector.broadcast %3 : vector<1x32xf32> to vector<8x32xf32>
      %779 = arith.subf %778, %777 : vector<8x32xf32>
      %cst_185 = arith.constant dense<0.000000e+00> : vector<8x32xf32>
      %780 = tpu.matmul %772, %2, %cst_185 {dimension_numbers = #tpu.dot_dimension_numbers<[1], [0], [0], [1], [0, 0, 1, 1], [], []>} : vector<8x32xf32>, vector<32x32xf32>, vector<8x32xf32> -> vector<8x32xf32>
      %781 = arith.addf %780, %779 : vector<8x32xf32>
      %cst_186 = arith.constant 2.000000e+00 : f32
      %782 = vector.broadcast %cst_186 : f32 to vector<8x32xf32>
      %783 = arith.mulf %782, %754 : vector<8x32xf32>
      %784 = arith.addf %743, %783 : vector<8x32xf32>
      %cst_187 = arith.constant 2.000000e+00 : f32
      %785 = vector.broadcast %cst_187 : f32 to vector<8x32xf32>
      %786 = arith.mulf %785, %765 : vector<8x32xf32>
      %787 = arith.addf %784, %786 : vector<8x32xf32>
      %788 = arith.addf %787, %776 : vector<8x32xf32>
      %789 = arith.mulf %45, %788 : vector<8x32xf32>
      %790 = arith.addf %732, %789 : vector<8x32xf32>
      %cst_188 = arith.constant 2.000000e+00 : f32
      %791 = vector.broadcast %cst_188 : f32 to vector<8x32xf32>
      %792 = arith.mulf %791, %759 : vector<8x32xf32>
      %793 = arith.addf %748, %792 : vector<8x32xf32>
      %cst_189 = arith.constant 2.000000e+00 : f32
      %794 = vector.broadcast %cst_189 : f32 to vector<8x32xf32>
      %795 = arith.mulf %794, %770 : vector<8x32xf32>
      %796 = arith.addf %793, %795 : vector<8x32xf32>
      %797 = arith.addf %796, %781 : vector<8x32xf32>
      %798 = arith.mulf %45, %797 : vector<8x32xf32>
      %799 = arith.addf %741, %798 : vector<8x32xf32>
      %cst_190 = arith.constant 0.000000e+00 : f32
      %800 = vector.broadcast %cst_190 : f32 to vector<8x32xf32>
      %801 = arith.subf %800, %799 : vector<8x32xf32>
      %802 = arith.mulf %1, %799 : vector<8x32xf32>
      %803 = vector.broadcast %3 : vector<1x32xf32> to vector<8x32xf32>
      %804 = arith.subf %803, %802 : vector<8x32xf32>
      %cst_191 = arith.constant dense<0.000000e+00> : vector<8x32xf32>
      %805 = tpu.matmul %790, %2, %cst_191 {dimension_numbers = #tpu.dot_dimension_numbers<[1], [0], [0], [1], [0, 0, 1, 1], [], []>} : vector<8x32xf32>, vector<32x32xf32>, vector<8x32xf32> -> vector<8x32xf32>
      %806 = arith.addf %805, %804 : vector<8x32xf32>
      %807 = arith.mulf %43, %801 : vector<8x32xf32>
      %808 = arith.addf %790, %807 : vector<8x32xf32>
      %809 = arith.mulf %43, %806 : vector<8x32xf32>
      %810 = arith.addf %799, %809 : vector<8x32xf32>
      %cst_192 = arith.constant 0.000000e+00 : f32
      %811 = vector.broadcast %cst_192 : f32 to vector<8x32xf32>
      %812 = arith.subf %811, %810 : vector<8x32xf32>
      %813 = arith.mulf %1, %810 : vector<8x32xf32>
      %814 = vector.broadcast %3 : vector<1x32xf32> to vector<8x32xf32>
      %815 = arith.subf %814, %813 : vector<8x32xf32>
      %cst_193 = arith.constant dense<0.000000e+00> : vector<8x32xf32>
      %816 = tpu.matmul %808, %2, %cst_193 {dimension_numbers = #tpu.dot_dimension_numbers<[1], [0], [0], [1], [0, 0, 1, 1], [], []>} : vector<8x32xf32>, vector<32x32xf32>, vector<8x32xf32> -> vector<8x32xf32>
      %817 = arith.addf %816, %815 : vector<8x32xf32>
      %818 = arith.mulf %43, %812 : vector<8x32xf32>
      %819 = arith.addf %790, %818 : vector<8x32xf32>
      %820 = arith.mulf %43, %817 : vector<8x32xf32>
      %821 = arith.addf %799, %820 : vector<8x32xf32>
      %cst_194 = arith.constant 0.000000e+00 : f32
      %822 = vector.broadcast %cst_194 : f32 to vector<8x32xf32>
      %823 = arith.subf %822, %821 : vector<8x32xf32>
      %824 = arith.mulf %1, %821 : vector<8x32xf32>
      %825 = vector.broadcast %3 : vector<1x32xf32> to vector<8x32xf32>
      %826 = arith.subf %825, %824 : vector<8x32xf32>
      %cst_195 = arith.constant dense<0.000000e+00> : vector<8x32xf32>
      %827 = tpu.matmul %819, %2, %cst_195 {dimension_numbers = #tpu.dot_dimension_numbers<[1], [0], [0], [1], [0, 0, 1, 1], [], []>} : vector<8x32xf32>, vector<32x32xf32>, vector<8x32xf32> -> vector<8x32xf32>
      %828 = arith.addf %827, %826 : vector<8x32xf32>
      %829 = arith.mulf %41, %823 : vector<8x32xf32>
      %830 = arith.addf %790, %829 : vector<8x32xf32>
      %831 = arith.mulf %41, %828 : vector<8x32xf32>
      %832 = arith.addf %799, %831 : vector<8x32xf32>
      %cst_196 = arith.constant 0.000000e+00 : f32
      %833 = vector.broadcast %cst_196 : f32 to vector<8x32xf32>
      %834 = arith.subf %833, %832 : vector<8x32xf32>
      %835 = arith.mulf %1, %832 : vector<8x32xf32>
      %836 = vector.broadcast %3 : vector<1x32xf32> to vector<8x32xf32>
      %837 = arith.subf %836, %835 : vector<8x32xf32>
      %cst_197 = arith.constant dense<0.000000e+00> : vector<8x32xf32>
      %838 = tpu.matmul %830, %2, %cst_197 {dimension_numbers = #tpu.dot_dimension_numbers<[1], [0], [0], [1], [0, 0, 1, 1], [], []>} : vector<8x32xf32>, vector<32x32xf32>, vector<8x32xf32> -> vector<8x32xf32>
      %839 = arith.addf %838, %837 : vector<8x32xf32>
      %cst_198 = arith.constant 2.000000e+00 : f32
      %840 = vector.broadcast %cst_198 : f32 to vector<8x32xf32>
      %841 = arith.mulf %840, %812 : vector<8x32xf32>
      %842 = arith.addf %801, %841 : vector<8x32xf32>
      %cst_199 = arith.constant 2.000000e+00 : f32
      %843 = vector.broadcast %cst_199 : f32 to vector<8x32xf32>
      %844 = arith.mulf %843, %823 : vector<8x32xf32>
      %845 = arith.addf %842, %844 : vector<8x32xf32>
      %846 = arith.addf %845, %834 : vector<8x32xf32>
      %847 = arith.mulf %45, %846 : vector<8x32xf32>
      %848 = arith.addf %790, %847 : vector<8x32xf32>
      %cst_200 = arith.constant 2.000000e+00 : f32
      %849 = vector.broadcast %cst_200 : f32 to vector<8x32xf32>
      %850 = arith.mulf %849, %817 : vector<8x32xf32>
      %851 = arith.addf %806, %850 : vector<8x32xf32>
      %cst_201 = arith.constant 2.000000e+00 : f32
      %852 = vector.broadcast %cst_201 : f32 to vector<8x32xf32>
      %853 = arith.mulf %852, %828 : vector<8x32xf32>
      %854 = arith.addf %851, %853 : vector<8x32xf32>
      %855 = arith.addf %854, %839 : vector<8x32xf32>
      %856 = arith.mulf %45, %855 : vector<8x32xf32>
      %857 = arith.addf %799, %856 : vector<8x32xf32>
      %cst_202 = arith.constant 0.000000e+00 : f32
      %858 = vector.broadcast %cst_202 : f32 to vector<8x32xf32>
      %859 = arith.subf %858, %857 : vector<8x32xf32>
      %860 = arith.mulf %1, %857 : vector<8x32xf32>
      %861 = vector.broadcast %3 : vector<1x32xf32> to vector<8x32xf32>
      %862 = arith.subf %861, %860 : vector<8x32xf32>
      %cst_203 = arith.constant dense<0.000000e+00> : vector<8x32xf32>
      %863 = tpu.matmul %848, %2, %cst_203 {dimension_numbers = #tpu.dot_dimension_numbers<[1], [0], [0], [1], [0, 0, 1, 1], [], []>} : vector<8x32xf32>, vector<32x32xf32>, vector<8x32xf32> -> vector<8x32xf32>
      %864 = arith.addf %863, %862 : vector<8x32xf32>
      %865 = arith.mulf %43, %859 : vector<8x32xf32>
      %866 = arith.addf %848, %865 : vector<8x32xf32>
      %867 = arith.mulf %43, %864 : vector<8x32xf32>
      %868 = arith.addf %857, %867 : vector<8x32xf32>
      %cst_204 = arith.constant 0.000000e+00 : f32
      %869 = vector.broadcast %cst_204 : f32 to vector<8x32xf32>
      %870 = arith.subf %869, %868 : vector<8x32xf32>
      %871 = arith.mulf %1, %868 : vector<8x32xf32>
      %872 = vector.broadcast %3 : vector<1x32xf32> to vector<8x32xf32>
      %873 = arith.subf %872, %871 : vector<8x32xf32>
      %cst_205 = arith.constant dense<0.000000e+00> : vector<8x32xf32>
      %874 = tpu.matmul %866, %2, %cst_205 {dimension_numbers = #tpu.dot_dimension_numbers<[1], [0], [0], [1], [0, 0, 1, 1], [], []>} : vector<8x32xf32>, vector<32x32xf32>, vector<8x32xf32> -> vector<8x32xf32>
      %875 = arith.addf %874, %873 : vector<8x32xf32>
      %876 = arith.mulf %43, %870 : vector<8x32xf32>
      %877 = arith.addf %848, %876 : vector<8x32xf32>
      %878 = arith.mulf %43, %875 : vector<8x32xf32>
      %879 = arith.addf %857, %878 : vector<8x32xf32>
      %cst_206 = arith.constant 0.000000e+00 : f32
      %880 = vector.broadcast %cst_206 : f32 to vector<8x32xf32>
      %881 = arith.subf %880, %879 : vector<8x32xf32>
      %882 = arith.mulf %1, %879 : vector<8x32xf32>
      %883 = vector.broadcast %3 : vector<1x32xf32> to vector<8x32xf32>
      %884 = arith.subf %883, %882 : vector<8x32xf32>
      %cst_207 = arith.constant dense<0.000000e+00> : vector<8x32xf32>
      %885 = tpu.matmul %877, %2, %cst_207 {dimension_numbers = #tpu.dot_dimension_numbers<[1], [0], [0], [1], [0, 0, 1, 1], [], []>} : vector<8x32xf32>, vector<32x32xf32>, vector<8x32xf32> -> vector<8x32xf32>
      %886 = arith.addf %885, %884 : vector<8x32xf32>
      %887 = arith.mulf %41, %881 : vector<8x32xf32>
      %888 = arith.addf %848, %887 : vector<8x32xf32>
      %889 = arith.mulf %41, %886 : vector<8x32xf32>
      %890 = arith.addf %857, %889 : vector<8x32xf32>
      %cst_208 = arith.constant 0.000000e+00 : f32
      %891 = vector.broadcast %cst_208 : f32 to vector<8x32xf32>
      %892 = arith.subf %891, %890 : vector<8x32xf32>
      %893 = arith.mulf %1, %890 : vector<8x32xf32>
      %894 = vector.broadcast %3 : vector<1x32xf32> to vector<8x32xf32>
      %895 = arith.subf %894, %893 : vector<8x32xf32>
      %cst_209 = arith.constant dense<0.000000e+00> : vector<8x32xf32>
      %896 = tpu.matmul %888, %2, %cst_209 {dimension_numbers = #tpu.dot_dimension_numbers<[1], [0], [0], [1], [0, 0, 1, 1], [], []>} : vector<8x32xf32>, vector<32x32xf32>, vector<8x32xf32> -> vector<8x32xf32>
      %897 = arith.addf %896, %895 : vector<8x32xf32>
      %cst_210 = arith.constant 2.000000e+00 : f32
      %898 = vector.broadcast %cst_210 : f32 to vector<8x32xf32>
      %899 = arith.mulf %898, %870 : vector<8x32xf32>
      %900 = arith.addf %859, %899 : vector<8x32xf32>
      %cst_211 = arith.constant 2.000000e+00 : f32
      %901 = vector.broadcast %cst_211 : f32 to vector<8x32xf32>
      %902 = arith.mulf %901, %881 : vector<8x32xf32>
      %903 = arith.addf %900, %902 : vector<8x32xf32>
      %904 = arith.addf %903, %892 : vector<8x32xf32>
      %905 = arith.mulf %45, %904 : vector<8x32xf32>
      %906 = arith.addf %848, %905 : vector<8x32xf32>
      %cst_212 = arith.constant 2.000000e+00 : f32
      %907 = vector.broadcast %cst_212 : f32 to vector<8x32xf32>
      %908 = arith.mulf %907, %875 : vector<8x32xf32>
      %909 = arith.addf %864, %908 : vector<8x32xf32>
      %cst_213 = arith.constant 2.000000e+00 : f32
      %910 = vector.broadcast %cst_213 : f32 to vector<8x32xf32>
      %911 = arith.mulf %910, %886 : vector<8x32xf32>
      %912 = arith.addf %909, %911 : vector<8x32xf32>
      %913 = arith.addf %912, %897 : vector<8x32xf32>
      %914 = arith.mulf %45, %913 : vector<8x32xf32>
      %915 = arith.addf %857, %914 : vector<8x32xf32>
      %cst_214 = arith.constant 0.000000e+00 : f32
      %916 = vector.broadcast %cst_214 : f32 to vector<8x32xf32>
      %917 = arith.subf %916, %915 : vector<8x32xf32>
      %918 = arith.mulf %1, %915 : vector<8x32xf32>
      %919 = vector.broadcast %3 : vector<1x32xf32> to vector<8x32xf32>
      %920 = arith.subf %919, %918 : vector<8x32xf32>
      %cst_215 = arith.constant dense<0.000000e+00> : vector<8x32xf32>
      %921 = tpu.matmul %906, %2, %cst_215 {dimension_numbers = #tpu.dot_dimension_numbers<[1], [0], [0], [1], [0, 0, 1, 1], [], []>} : vector<8x32xf32>, vector<32x32xf32>, vector<8x32xf32> -> vector<8x32xf32>
      %922 = arith.addf %921, %920 : vector<8x32xf32>
      %923 = arith.mulf %43, %917 : vector<8x32xf32>
      %924 = arith.addf %906, %923 : vector<8x32xf32>
      %925 = arith.mulf %43, %922 : vector<8x32xf32>
      %926 = arith.addf %915, %925 : vector<8x32xf32>
      %cst_216 = arith.constant 0.000000e+00 : f32
      %927 = vector.broadcast %cst_216 : f32 to vector<8x32xf32>
      %928 = arith.subf %927, %926 : vector<8x32xf32>
      %929 = arith.mulf %1, %926 : vector<8x32xf32>
      %930 = vector.broadcast %3 : vector<1x32xf32> to vector<8x32xf32>
      %931 = arith.subf %930, %929 : vector<8x32xf32>
      %cst_217 = arith.constant dense<0.000000e+00> : vector<8x32xf32>
      %932 = tpu.matmul %924, %2, %cst_217 {dimension_numbers = #tpu.dot_dimension_numbers<[1], [0], [0], [1], [0, 0, 1, 1], [], []>} : vector<8x32xf32>, vector<32x32xf32>, vector<8x32xf32> -> vector<8x32xf32>
      %933 = arith.addf %932, %931 : vector<8x32xf32>
      %934 = arith.mulf %43, %928 : vector<8x32xf32>
      %935 = arith.addf %906, %934 : vector<8x32xf32>
      %936 = arith.mulf %43, %933 : vector<8x32xf32>
      %937 = arith.addf %915, %936 : vector<8x32xf32>
      %cst_218 = arith.constant 0.000000e+00 : f32
      %938 = vector.broadcast %cst_218 : f32 to vector<8x32xf32>
      %939 = arith.subf %938, %937 : vector<8x32xf32>
      %940 = arith.mulf %1, %937 : vector<8x32xf32>
      %941 = vector.broadcast %3 : vector<1x32xf32> to vector<8x32xf32>
      %942 = arith.subf %941, %940 : vector<8x32xf32>
      %cst_219 = arith.constant dense<0.000000e+00> : vector<8x32xf32>
      %943 = tpu.matmul %935, %2, %cst_219 {dimension_numbers = #tpu.dot_dimension_numbers<[1], [0], [0], [1], [0, 0, 1, 1], [], []>} : vector<8x32xf32>, vector<32x32xf32>, vector<8x32xf32> -> vector<8x32xf32>
      %944 = arith.addf %943, %942 : vector<8x32xf32>
      %945 = arith.mulf %41, %939 : vector<8x32xf32>
      %946 = arith.addf %906, %945 : vector<8x32xf32>
      %947 = arith.mulf %41, %944 : vector<8x32xf32>
      %948 = arith.addf %915, %947 : vector<8x32xf32>
      %cst_220 = arith.constant 0.000000e+00 : f32
      %949 = vector.broadcast %cst_220 : f32 to vector<8x32xf32>
      %950 = arith.subf %949, %948 : vector<8x32xf32>
      %951 = arith.mulf %1, %948 : vector<8x32xf32>
      %952 = vector.broadcast %3 : vector<1x32xf32> to vector<8x32xf32>
      %953 = arith.subf %952, %951 : vector<8x32xf32>
      %cst_221 = arith.constant dense<0.000000e+00> : vector<8x32xf32>
      %954 = tpu.matmul %946, %2, %cst_221 {dimension_numbers = #tpu.dot_dimension_numbers<[1], [0], [0], [1], [0, 0, 1, 1], [], []>} : vector<8x32xf32>, vector<32x32xf32>, vector<8x32xf32> -> vector<8x32xf32>
      %955 = arith.addf %954, %953 : vector<8x32xf32>
      %cst_222 = arith.constant 2.000000e+00 : f32
      %956 = vector.broadcast %cst_222 : f32 to vector<8x32xf32>
      %957 = arith.mulf %956, %928 : vector<8x32xf32>
      %958 = arith.addf %917, %957 : vector<8x32xf32>
      %cst_223 = arith.constant 2.000000e+00 : f32
      %959 = vector.broadcast %cst_223 : f32 to vector<8x32xf32>
      %960 = arith.mulf %959, %939 : vector<8x32xf32>
      %961 = arith.addf %958, %960 : vector<8x32xf32>
      %962 = arith.addf %961, %950 : vector<8x32xf32>
      %963 = arith.mulf %45, %962 : vector<8x32xf32>
      %964 = arith.addf %906, %963 : vector<8x32xf32>
      %cst_224 = arith.constant 2.000000e+00 : f32
      %965 = vector.broadcast %cst_224 : f32 to vector<8x32xf32>
      %966 = arith.mulf %965, %933 : vector<8x32xf32>
      %967 = arith.addf %922, %966 : vector<8x32xf32>
      %cst_225 = arith.constant 2.000000e+00 : f32
      %968 = vector.broadcast %cst_225 : f32 to vector<8x32xf32>
      %969 = arith.mulf %968, %944 : vector<8x32xf32>
      %970 = arith.addf %967, %969 : vector<8x32xf32>
      %971 = arith.addf %970, %955 : vector<8x32xf32>
      %972 = arith.mulf %45, %971 : vector<8x32xf32>
      %973 = arith.addf %915, %972 : vector<8x32xf32>
      %974 = arith.index_cast %arg15 : i32 to index
      %c0_226 = arith.constant 0 : index
      %c0_227 = arith.constant 0 : index
      %975 = vector.load %arg14[%974, %c0_226, %c0_227] : memref<8x8x32xf32, #tpu.memory_space<vmem>>, vector<1x8x32xf32>
      %976 = vector.shape_cast %975 : vector<1x8x32xf32> to vector<8x32xf32>
      %977 = vector.shape_cast %964 : vector<8x32xf32> to vector<1x8x32xf32>
      tpu.vector_store %arg14[%974, %c0_226, %c0_227], %977 {strides = array<i32>} : memref<8x8x32xf32, #tpu.memory_space<vmem>>, vector<1x8x32xf32>,
      scf.yield %964, %973 : vector<8x32xf32>, vector<8x32xf32>
    }
    %c8_i32_5 = arith.constant 8 : i32
    return
  }
  func.func @transform_0(%arg0: i32) -> (i32, i32, i32) {
    %c0_i32 = arith.constant 0 : i32
    %c0_i32_0 = arith.constant 0 : i32
    %c0_i32_1 = arith.constant 0 : i32
    %c0_i32_2 = arith.constant 0 : i32
    return %c0_i32, %c0_i32_0, %c0_i32_1 : i32, i32, i32
  }
  func.func @transform_1(%arg0: i32) -> (i32, i32, i32) {
    %c0_i32 = arith.constant 0 : i32
    %c0_i32_0 = arith.constant 0 : i32
    %c0_i32_1 = arith.constant 0 : i32
    %c0_i32_2 = arith.constant 0 : i32
    return %c0_i32, %c0_i32_0, %c0_i32_1 : i32, i32, i32
  }
  func.func @transform_2(%arg0: i32) -> i32 {
    %c0_i32 = arith.constant 0 : i32
    %c0_i32_0 = arith.constant 0 : i32
    return %c0_i32 : i32
  }
  func.func @transform_3(%arg0: i32) -> (i32, i32) {
    %c0_i32 = arith.constant 0 : i32
    %c0_i32_0 = arith.constant 0 : i32
    %c0_i32_1 = arith.constant 0 : i32
    return %c0_i32, %c0_i32_0 : i32, i32
  }
  func.func @transform_4(%arg0: i32) -> (i32, i32) {
    %c0_i32 = arith.constant 0 : i32
    %c0_i32_0 = arith.constant 0 : i32
    %c0_i32_1 = arith.constant 0 : i32
    return %c0_i32, %c0_i32_0 : i32, i32
  }
  func.func @transform_5(%arg0: i32) -> (i32, i32) {
    %c0_i32 = arith.constant 0 : i32
    %c0_i32_0 = arith.constant 0 : i32
    %c0_i32_1 = arith.constant 0 : i32
    return %c0_i32, %c0_i32_0 : i32, i32
  }
  func.func @transform_6(%arg0: i32) -> (i32, i32) {
    %c0_i32 = arith.constant 0 : i32
    %c0_i32_0 = arith.constant 0 : i32
    %c0_i32_1 = arith.constant 0 : i32
    return %c0_i32, %c0_i32_0 : i32, i32
  }
  func.func @transform_7(%arg0: i32) -> (i32, i32) {
    %c0_i32 = arith.constant 0 : i32
    %c0_i32_0 = arith.constant 0 : i32
    %c0_i32_1 = arith.constant 0 : i32
    return %c0_i32, %c0_i32_0 : i32, i32
  }
  func.func @transform_8(%arg0: i32) -> (i32, i32) {
    %c0_i32 = arith.constant 0 : i32
    %c0_i32_0 = arith.constant 0 : i32
    %c0_i32_1 = arith.constant 0 : i32
    return %c0_i32, %c0_i32_0 : i32, i32
  }
  func.func @transform_9(%arg0: i32) -> (i32, i32) {
    %c0_i32 = arith.constant 0 : i32
    %c0_i32_0 = arith.constant 0 : i32
    %c0_i32_1 = arith.constant 0 : i32
    return %c0_i32, %c0_i32_0 : i32, i32
  }
  func.func @transform_10(%arg0: i32) -> (i32, i32) {
    %c0_i32 = arith.constant 0 : i32
    %c0_i32_0 = arith.constant 0 : i32
    %c0_i32_1 = arith.constant 0 : i32
    return %c0_i32, %c0_i32_0 : i32, i32
  }
  func.func @transform_11(%arg0: i32) -> (i32, i32) {
    %c0_i32 = arith.constant 0 : i32
    %c0_i32_0 = arith.constant 0 : i32
    %c0_i32_1 = arith.constant 0 : i32
    return %c0_i32, %c0_i32_0 : i32, i32
  }
  func.func @transform_12(%arg0: i32) -> (i32, i32) {
    %c0_i32 = arith.constant 0 : i32
    %c0_i32_0 = arith.constant 0 : i32
    %c0_i32_1 = arith.constant 0 : i32
    return %c0_i32, %c0_i32_0 : i32, i32
  }
  func.func @transform_13(%arg0: i32) -> (i32, i32, i32) {
    %c0_i32 = arith.constant 0 : i32
    %c0_i32_0 = arith.constant 0 : i32
    %c0_i32_1 = arith.constant 0 : i32
    %c0_i32_2 = arith.constant 0 : i32
    return %c0_i32, %c0_i32_0, %c0_i32_1 : i32, i32, i32
  }
}

</mosaic_0001>

<bundles_post_ra>
// kernel: ghb_forward.1
= control target key start
LH: loop header
LB: loop body
LE: loop exit
PB: predicated region body
PF: predicated region fallthrough
CT: control target
= control target key end

     0   :  { %v7148_v6 = vmov 0.0   ;;  %v7150_v7 = vmov 0.0   ;;  %s7152_s19 = smov 0   ;;  %s8519_s0 = inlined_call_operand.vmem [shape: f32[8,8,1], index: 0, kind: input, shape index: {}]   ;;  %s8520_s1 = inlined_call_operand.vmem [shape: f32[8,8,8], index: 1, kind: input, shape index: {}]   ;;  %s8521_s2 = inlined_call_operand.<no memory space> [shape: f32[1], index: 2, kind: input, shape index: {}]   ;;  %s8522_s3 = inlined_call_operand.vmem [shape: f32[32,64], index: 3, kind: input, shape index: {}]   ;;  %s8523_s4 = inlined_call_operand.vmem [shape: f32[32,64], index: 4, kind: input, shape index: {}]   ;;  %s8524_s5 = inlined_call_operand.vmem [shape: f32[8,64], index: 5, kind: input, shape index: {}]   ;;  %s8525_s6 = inlined_call_operand.vmem [shape: f32[1,64], index: 6, kind: input, shape index: {}]   ;;  %s8526_s7 = inlined_call_operand.vmem [shape: f32[64,32], index: 7, kind: input, shape index: {}]   ;;  %s8527_s8 = inlined_call_operand.vmem [shape: f32[64,32], index: 8, kind: input, shape index: {}]   ;;  %s8528_s9 = inlined_call_operand.vmem [shape: f32[1,32], index: 9, kind: input, shape index: {}]   ;;  %s8529_s10 = inlined_call_operand.vmem [shape: f32[1,32], index: 10, kind: input, shape index: {}]   ;;  %s8530_s11 = inlined_call_operand.vmem [shape: f32[32,32], index: 11, kind: input, shape index: {}]   ;;  %s8531_s12 = inlined_call_operand.vmem [shape: f32[1,32], index: 12, kind: input, shape index: {}]   ;;  %s8532_s13 = inlined_call_operand.vmem [shape: f32[8,8,32], index: 13, kind: output, shape index: {}]  }
   0x1   :  { %v7121_v0 = vstv %s8521_s2  ;;  %v7126_v1 = vld [vmem:[%s8530_s11] sm:$0xff]  ;;  %v7131_v2 = vld [vmem:[%s8530_s11 + $0x8] sm:$0xff]  ;;  %v7136_v3 = vld [vmem:[%s8530_s11 + $0x10] sm:$0xff] }
   0x2   :  { %v7141_v4 = vld [vmem:[%s8530_s11 + $0x18] sm:$0xff]  ;;  %v7146_v5 = vld [vmem:[%s8531_s12] ss:$0 sm:$0xff] }
   0x3 LB: > { %v72_v8 = vld [vmem:[%s8523_s4 + $0x18] sm:$0xff]  ;;  %v7045_v10 = vmov 0.0   ;;  %v71_v11 = vld [vmem:[%s8523_s4 + $0x10] sm:$0xff]  ;;  %v70_v13 = vld [vmem:[%s8523_s4 + $0x8] sm:$0xff]  ;;  %s7186_s30 = sshll.u32 %s7043_s19, 3  ;;  %vm73_vm0 = vcmask 261120   ;;  %s7043_s19 = sphi %s7152_s19, %s57_s19   ;;  %v7039_v7 = vphi %v7150_v7, %v5767_v7   ;;  %v7035_v6 = vphi %v7148_v6, %v5774_v6  }
   0x4   : > { %v68_v9 = vld [vmem:[%s8522_s3 + $0x18] sm:$0xff]  ;;  %6222 = vmatprep.subr.mxu0 %v7045_v10  ;;  %6233 = vmatprep.subr.mxu1 %v7045_v10  ;;  %v67_v12 = vld [vmem:[%s8522_s3 + $0x10] sm:$0xff]  ;;  %v66_v14 = vld [vmem:[%s8522_s3 + $0x8] sm:$0xff]  ;;  %vm7046_vm1 = vmmov 0   ;;  %s61_s11 = scalar_lea.vmem %s8520_s1, %s7186_s30  ;;  %vm221_vm2 = vcmask 64512   ;;  %s63_s12 = scalar_lea.vmem %s8519_s0, %s7186_s30  ;;  %v7047_v36 = vmov 0  }
   0x5   : > { %6223 = vmatpush3.msra.mxu0 %v72_v8  ;;  %6234 = vmatpush3.msra.mxu1 %v68_v9  ;;  %v69_v15 = vld [vmem:[%s8523_s4] sm:$0xff]  ;;  %v312_v19 = vld [vmem:[%s8526_s7 + $0x38] sm:$0xff]  ;;  %v311_v21 = vld [vmem:[%s8526_s7 + $0x30] sm:$0xff]  ;;  %vm320_vm3 = vcmask 523264   ;;  %s5775_s28 = scalar_lea.vmem %s8532_s13, %s7186_s30  ;;  %s57_s19 = sadd.s32 1, %s7043_s19  }
   0x6   : > { %6224 = vmatprep.subr.mxu0 %v7045_v10  ;;  %6235 = vmatprep.subr.mxu1 %v7045_v10  ;;  %v65_v16 = vld [vmem:[%s8522_s3] sm:$0xff]  ;;  %v402_v20 = vld [vmem:[%s8527_s8 + $0x38] sm:$0xff]  ;;  %v401_v22 = vld [vmem:[%s8527_s8 + $0x30] sm:$0xff]  ;;  %p54_p0 = scmp.ge.s32.totalorder %s57_s19, 8  }
   0x7   : > { %6225 = vmatpush3.msra.mxu0 %v71_v11  ;;  %6236 = vmatpush3.msra.mxu1 %v67_v12  ;;  %v220_v17 = vld [vmem:[%s8524_s5] sm:$0xff]  ;;  %v310_v23 = vld [vmem:[%s8526_s7 + $0x28] sm:$0xff]  ;;  %v308_v27 = vld [vmem:[%s8526_s7 + $0x18] sm:$0xff] }
   0x8   : > { %6226 = vmatprep.subr.mxu0 %v7045_v10  ;;  %6237 = vmatprep.subr.mxu1 %v7045_v10  ;;  %v62_v18 = vld [vmem:[%s61_s11] sm:$0xff]  ;;  %v400_v24 = vld [vmem:[%s8527_s8 + $0x28] sm:$0xff]  ;;  %v398_v28 = vld [vmem:[%s8527_s8 + $0x18] sm:$0xff] }
   0x9   : > { %6227 = vmatpush3.msra.mxu0 %v70_v13  ;;  %6238 = vmatpush3.msra.mxu1 %v66_v14  ;;  %v309_v25 = vld [vmem:[%s8526_s7 + $0x20] sm:$0xff]  ;;  %v307_v29 = vld [vmem:[%s8526_s7 + $0x10] sm:$0xff]  ;;  %v306_v31 = vld [vmem:[%s8526_s7 + $0x8] sm:$0xff] }
   0xa   : > { %6228 = vmatprep.subr.mxu0 %v7045_v10  ;;  %6230 = vmatprep.mubr.msk.f32.mxu0 %vm7046_vm1, %v7045_v10  ;;  %v399_v26 = vld [vmem:[%s8527_s8 + $0x20] sm:$0xff]  ;;  %v397_v30 = vld [vmem:[%s8527_s8 + $0x10] sm:$0xff]  ;;  %v396_v32 = vld [vmem:[%s8527_s8 + $0x8] sm:$0xff] }
   0xb   : > { %6229 = vmatpush3.msra.mxu0 %v69_v15  ;;  %6239 = vmatprep.subr.mxu1 %v7045_v10  ;;  %v305_v33 = vld [vmem:[%s8526_s7] sm:$0xff] }
   0xc   : > { %6231 = vmatmul.mubr.msk.f32.vlgmr.msra.gmra.mxu0 %vm73_vm0, %v7035_v6  ;;  %6240 = vmatpush3.msra.mxu1 %v65_v16  ;;  %v395_v34 = vld [vmem:[%s8527_s8] sm:$0xff] }
   0xd   : > { %6241 = vmatprep.mubr.msk.f32.mxu1 %vm7046_vm1, %v7045_v10  ;;  %6244 = vmatprep.subr.mxu0 %v7045_v10  ;;  %v64_v35 = vld [vmem:[%s63_s12] sm:$0xff] }
   0xe   : > { %6242 = vmatmul.mubr.msk.f32.vlgmr.msra.gmra.mxu1 %vm73_vm0, %v7039_v7  ;;  %6245 = vmatpush3.msra.mxu0 %v220_v17  ;;  %v481_v37 = vmul.f32 0.0625, %v64_v35  ;;  %v5802_v44 = vld [vmem:[%s8525_s6] ss:$0 sm:$0xff] }
   0xf   : > { %6246 = vmatprep.mubr.msk.f32.mxu0 %vm7046_vm1, %v7045_v10  ;;  %6249 = vmatprep.subr.mxu1 %v7045_v10  ;;  %v5803_v49 = vld [vmem:[%s8528_s9] ss:$0 sm:$0xff] }
  0x10   : > { %6247 = vmatmul.mubr.msk.f32.vlgmr.msra.gmra.mxu0 %vm221_vm2, %v62_v18  ;;  %6268 = vmatprep.subr.mxu0 %v7045_v10  ;;  %v5805_v50 = vld [vmem:[%s8529_s10] ss:$0 sm:$0xff] }
  0x11   : > { %6265 = vmatprep.mubr.msk.f32.mxu1 %vm7046_vm1, %v7045_v10  ;;  %6284 = vmatprep.mubr.msk.f32.mxu0 %vm7046_vm1, %v7045_v10 }
  0x12   : > { %6250 = vmatpush3.msra.mxu1 %v312_v19  ;;  %6269 = vmatpush3.msra.mxu0 %v402_v20 }
  0x13   : > { %6251 = vmatprep.subr.mxu1 %v7045_v10  ;;  %6270 = vmatprep.subr.mxu0 %v7045_v10 }
  0x14   : > { %6252 = vmatpush3.msra.mxu1 %v311_v21  ;;  %6271 = vmatpush3.msra.mxu0 %v401_v22 }
  0x15   : > { %6253 = vmatprep.subr.mxu1 %v7045_v10  ;;  %6272 = vmatprep.subr.mxu0 %v7045_v10 }
  0x16   : > { %6254 = vmatpush3.msra.mxu1 %v310_v23  ;;  %6273 = vmatpush3.msra.mxu0 %v400_v24 }
  0x17   : > { %6255 = vmatprep.subr.mxu1 %v7045_v10  ;;  %6274 = vmatprep.subr.mxu0 %v7045_v10 }
  0x18   : > { %6256 = vmatpush3.msra.mxu1 %v309_v25  ;;  %6275 = vmatpush3.msra.mxu0 %v399_v26 }
  0x19   : > { %6257 = vmatprep.subr.mxu1 %v7045_v10  ;;  %6276 = vmatprep.subr.mxu0 %v7045_v10 }
  0x1a   : > { %6258 = vmatpush3.msra.mxu1 %v308_v27  ;;  %6277 = vmatpush3.msra.mxu0 %v398_v28 }
  0x1b   : > { %6259 = vmatprep.subr.mxu1 %v7045_v10  ;;  %6278 = vmatprep.subr.mxu0 %v7045_v10 }
  0x1c   : > { %6260 = vmatpush3.msra.mxu1 %v307_v29  ;;  %6279 = vmatpush3.msra.mxu0 %v397_v30 }
  0x1d   : > { %6261 = vmatprep.subr.mxu1 %v7045_v10  ;;  %6280 = vmatprep.subr.mxu0 %v7045_v10 }
  0x1e   : > { %6262 = vmatpush3.msra.mxu1 %v306_v31  ;;  %6281 = vmatpush3.msra.mxu0 %v396_v32 }
  0x1f   : > { %6263 = vmatprep.subr.mxu1 %v7045_v10  ;;  %6282 = vmatprep.subr.mxu0 %v7045_v10 }
  0x20   : > { %6264 = vmatpush3.msra.mxu1 %v305_v33  ;;  %6283 = vmatpush3.msra.mxu0 %v395_v34 }
  0x21   : > { %7018 = vset.pattern.permute.xlu0 %v7047_v36  ;;  %6287 = vmatprep.subr.mxu1 %v7045_v10 }
  0x22   : > { %6298 = vmatprep.subr.mxu0 %v7045_v10  ;;  %484 = vperm.xlu0 %7018, %v481_v37  }
  0x9d   : > { %v7319_v51 = vpop.permute.xlu0 %484 }
  0x9e   : > { %v7328_v60 = vmul.f32 0.5, %v7319_v51 }
  0xcc   : > { %v143_v38 = vpop.f32.mrf.mxu0 }
  0xce   : > { %v216_v39 = vpop.f32.mrf.mxu1  ;;  %v6232_v40 = vpop.f32.mrf.mxu0 }
  0xcf   : > { %v217_v41 = vadd.f32 %v216_v39, %v143_v38 }
  0xd0   : > { %v6243_v42 = vpop.f32.mrf.mxu1  ;;  %v291_v43 = vpop.f32.mrf.mxu0 }
  0xd1   : > { %v295_v45 = vadd.f32 %v291_v43, %v217_v41 }
  0xd2   : > { %v6248_v46 = vpop.f32.mrf.mxu0 }
  0xd3   : > { %v303_v47 = vadd.f32 %v5802_v44, %v295_v45  ;;  %v7397_v44 = vmul.f32 0.16666667, %v7319_v51 }
  0xd5   : > { %7019 = vtanh.f32 %v303_v47 }
  0xe2   : > { %v7020_v48 = vpop.eup %7019 }
  0xe3   : > { %6266 = vmatmul.mubr.msk.f32.vlgmr.msra.gmra.mxu1 %vm320_vm3, %v7020_v48  ;;  %6285 = vmatmul.mubr.msk.f32.vlgmr.msra.gmra.mxu0 %vm320_vm3, %v7020_v48 }
  0xe4   : > { %6288 = vmatpush3.msra.mxu1 %v7141_v4  ;;  %6295 = vmatprep.mubr.msk.f32.mxu1 %vm7046_vm1, %v7045_v10 }
  0xe5   : > { %6289 = vmatprep.subr.mxu1 %v7045_v10  ;;  %6299 = vmatpush3.msra.mxu0 %v7141_v4 }
  0xe6   : > { %6290 = vmatpush3.msra.mxu1 %v7136_v3  ;;  %6300 = vmatprep.subr.mxu0 %v7045_v10 }
  0xe7   : > { %6291 = vmatprep.subr.mxu1 %v7045_v10  ;;  %6301 = vmatpush3.msra.mxu0 %v7136_v3 }
  0xe8   : > { %6292 = vmatpush3.msra.mxu1 %v7131_v2  ;;  %6302 = vmatprep.subr.mxu0 %v7045_v10 }
  0xe9   : > { %6293 = vmatprep.subr.mxu1 %v7045_v10  ;;  %6303 = vmatpush3.msra.mxu0 %v7131_v2 }
  0xea   : > { %6294 = vmatpush3.msra.mxu1 %v7126_v1  ;;  %6304 = vmatprep.subr.mxu0 %v7045_v10 }
  0xeb   : > { %6305 = vmatpush3.msra.mxu0 %v7126_v1  ;;  %6306 = vmatprep.mubr.msk.f32.mxu0 %vm7046_vm1, %v7045_v10 }
  0xec   : > { %6309 = vmatprep.subr.mxu1 %v7045_v10  ;;  %6320 = vmatprep.subr.mxu0 %v7045_v10 }
 0x1a3   : > { %v390_v52 = vpop.f32.mrf.mxu1  ;;  %v476_v53 = vpop.f32.mrf.mxu0 }
 0x1a4   : > { %v391_v54 = vadd.f32 %v5803_v49, %v390_v52  ;;  %v477_v55 = vadd.f32 %v5805_v50, %v476_v53 }
 0x1a5   : > { %v6267_v56 = vpop.f32.mrf.mxu1  ;;  %v6286_v57 = vpop.f32.mrf.mxu0 }
 0x1a6   : > { %v7322_v58 = vadd.f32 %v7039_v7, %v391_v54  ;;  %v7325_v59 = vadd.f32 %v7035_v6, %v477_v55 }
 0x1a8   : > { %6296 = vmatmul.mubr.msk.f32.vlgmr.msra.gmra.mxu1 %vm73_vm0, %v7322_v58  ;;  %v489_v61 = vsub.f32 0.0, %v7325_v59  ;;  %v490_v6 = vmul.f32 %v7325_v59, %v7121_v0 }
 0x1a9   : > { %6310 = vmatpush3.msra.mxu1 %v7141_v4  ;;  %6317 = vmatprep.mubr.msk.f32.mxu1 %vm7046_vm1, %v7045_v10 }
 0x1aa   : > { %v571_v62 = vmul.f32 %v489_v61, %v7328_v60  ;;  %6311 = vmatprep.subr.mxu1 %v7045_v10  ;;  %v497_v7 = vsub.f32 %v7146_v5, %v490_v6 }
 0x1ab   : > { %6312 = vmatpush3.msra.mxu1 %v7136_v3 }
 0x1ac   : > { %v572_v63 = vadd.f32 %v571_v62, %v7322_v58  ;;  %6313 = vmatprep.subr.mxu1 %v7045_v10 }
 0x1ad   : > { %6314 = vmatpush3.msra.mxu1 %v7131_v2 }
 0x1ae   : > { %6307 = vmatmul.mubr.msk.f32.vlgmr.msra.gmra.mxu0 %vm73_vm0, %v572_v63  ;;  %6315 = vmatprep.subr.mxu1 %v7045_v10 }
 0x1af   : > { %6316 = vmatpush3.msra.mxu1 %v7126_v1  ;;  %6321 = vmatpush3.msra.mxu0 %v7141_v4 }
 0x1b0   : > { %6322 = vmatprep.subr.mxu0 %v7045_v10  ;;  %6328 = vmatprep.mubr.msk.f32.mxu0 %vm7046_vm1, %v7045_v10 }
 0x1b1   : > { %6323 = vmatpush3.msra.mxu0 %v7136_v3  ;;  %6331 = vmatprep.subr.mxu1 %v7045_v10 }
 0x1b2   : > { %6324 = vmatprep.subr.mxu0 %v7045_v10 }
 0x1b3   : > { %6325 = vmatpush3.msra.mxu0 %v7131_v2 }
 0x1b4   : > { %6326 = vmatprep.subr.mxu0 %v7045_v10 }
 0x1b5   : > { %6327 = vmatpush3.msra.mxu0 %v7126_v1 }
 0x1b6   : > { %6342 = vmatprep.subr.mxu0 %v7045_v10 }
 0x268   : > { %v567_v8 = vpop.f32.mrf.mxu1 }
 0x269   : > { %v568_v9 = vadd.f32 %v567_v8, %v497_v7 }
 0x26a   : > { %v6297_v11 = vpop.f32.mrf.mxu1 }
 0x26b   : > { %v573_v12 = vmul.f32 %v568_v9, %v7328_v60 }
 0x26d   : > { %v574_v13 = vadd.f32 %v573_v12, %v7325_v59 }
 0x26e   : > { %v647_v14 = vpop.f32.mrf.mxu0 }
 0x26f   : > { %v575_v15 = vsub.f32 0.0, %v574_v13  ;;  %v576_v16 = vmul.f32 %v574_v13, %v7121_v0 }
 0x270   : > { %v6308_v17 = vpop.f32.mrf.mxu0 }
 0x271   : > { %v651_v18 = vmul.f32 %v575_v15, %v7328_v60  ;;  %v577_v19 = vsub.f32 %v7146_v5, %v576_v16  ;;  %v811_v24 = vmul.f32 2.0, %v575_v15 }
 0x273   : > { %v652_v20 = vadd.f32 %v651_v18, %v7322_v58  ;;  %v648_v21 = vadd.f32 %v647_v14, %v577_v19  ;;  %v812_v28 = vadd.f32 %v811_v24, %v489_v61 }
 0x275   : > { %v653_v22 = vmul.f32 %v648_v21, %v7328_v60  ;;  %v818_v23 = vmul.f32 2.0, %v648_v21  ;;  %6318 = vmatmul.mubr.msk.f32.vlgmr.msra.gmra.mxu1 %vm73_vm0, %v652_v20 }
 0x276   : > { %6332 = vmatpush3.msra.mxu1 %v7141_v4  ;;  %6339 = vmatprep.mubr.msk.f32.mxu1 %vm7046_vm1, %v7045_v10 }
 0x277   : > { %v654_v25 = vadd.f32 %v653_v22, %v7325_v59  ;;  %v819_v26 = vadd.f32 %v818_v23, %v568_v9  ;;  %6333 = vmatprep.subr.mxu1 %v7045_v10 }
 0x278   : > { %6334 = vmatpush3.msra.mxu1 %v7136_v3 }
 0x279   : > { %v655_v27 = vsub.f32 0.0, %v654_v25  ;;  %6335 = vmatprep.subr.mxu1 %v7045_v10  ;;  %v656_v33 = vmul.f32 %v654_v25, %v7121_v0 }
 0x27a   : > { %6336 = vmatpush3.msra.mxu1 %v7131_v2 }
 0x27b   : > { %v731_v29 = vmul.f32 %v655_v27, %v7319_v51  ;;  %v813_v30 = vmul.f32 2.0, %v655_v27  ;;  %6337 = vmatprep.subr.mxu1 %v7045_v10  ;;  %v657_v34 = vsub.f32 %v7146_v5, %v656_v33 }
 0x27c   : > { %6338 = vmatpush3.msra.mxu1 %v7126_v1 }
 0x27d   : > { %v732_v31 = vadd.f32 %v731_v29, %v7322_v58  ;;  %v814_v32 = vadd.f32 %v813_v30, %v812_v28  ;;  %6353 = vmatprep.subr.mxu1 %v7045_v10 }
 0x27f   : > { %6329 = vmatmul.mubr.msk.f32.vlgmr.msra.gmra.mxu0 %vm73_vm0, %v732_v31 }
 0x280   : > { %6343 = vmatpush3.msra.mxu0 %v7141_v4  ;;  %6350 = vmatprep.mubr.msk.f32.mxu0 %vm7046_vm1, %v7045_v10 }
 0x281   : > { %6344 = vmatprep.subr.mxu0 %v7045_v10 }
 0x282   : > { %6345 = vmatpush3.msra.mxu0 %v7136_v3 }
 0x283   : > { %6346 = vmatprep.subr.mxu0 %v7045_v10 }
 0x284   : > { %6347 = vmatpush3.msra.mxu0 %v7131_v2 }
 0x285   : > { %6348 = vmatprep.subr.mxu0 %v7045_v10 }
 0x286   : > { %6349 = vmatpush3.msra.mxu0 %v7126_v1 }
 0x287   : > { %6364 = vmatprep.subr.mxu0 %v7045_v10 }
 0x335   : > { %v727_v35 = vpop.f32.mrf.mxu1 }
 0x336   : > { %v728_v36 = vadd.f32 %v727_v35, %v657_v34 }
 0x337   : > { %v6319_v37 = vpop.f32.mrf.mxu1 }
 0x338   : > { %v733_v38 = vmul.f32 %v728_v36, %v7319_v51  ;;  %v820_v39 = vmul.f32 2.0, %v728_v36 }
 0x33a   : > { %v734_v40 = vadd.f32 %v733_v38, %v7325_v59  ;;  %v821_v41 = vadd.f32 %v820_v39, %v819_v26 }
 0x33c   : > { %v735_v42 = vsub.f32 0.0, %v734_v40  ;;  %v736_v43 = vmul.f32 %v734_v40, %v7121_v0 }
 0x33e   : > { %v815_v45 = vadd.f32 %v814_v32, %v735_v42  ;;  %v737_v46 = vsub.f32 %v7146_v5, %v736_v43 }
 0x33f   : > { %v807_v47 = vpop.f32.mrf.mxu0 }
 0x340   : > { %v816_v48 = vmul.f32 %v815_v45, %v7397_v44  ;;  %v808_v49 = vadd.f32 %v807_v47, %v737_v46 }
 0x341   : > { %v6330_v50 = vpop.f32.mrf.mxu0 }
 0x342   : > { %v822_v52 = vadd.f32 %v821_v41, %v808_v49  ;;  %v7402_v53 = vadd.f32 %v816_v48, %v7322_v58 }
 0x344   : > { %v823_v54 = vmul.f32 %v822_v52, %v7397_v44  ;;  %6340 = vmatmul.mubr.msk.f32.vlgmr.msra.gmra.mxu1 %vm73_vm0, %v7402_v53 }
 0x345   : > { %6354 = vmatpush3.msra.mxu1 %v7141_v4  ;;  %6361 = vmatprep.mubr.msk.f32.mxu1 %vm7046_vm1, %v7045_v10 }
 0x346   : > { %v7411_v55 = vadd.f32 %v823_v54, %v7325_v59  ;;  %6355 = vmatprep.subr.mxu1 %v7045_v10 }
 0x347   : > { %6356 = vmatpush3.msra.mxu1 %v7136_v3 }
 0x348   : > { %v825_v56 = vsub.f32 0.0, %v7411_v55  ;;  %6357 = vmatprep.subr.mxu1 %v7045_v10  ;;  %v826_v59 = vmul.f32 %v7411_v55, %v7121_v0 }
 0x349   : > { %6358 = vmatpush3.msra.mxu1 %v7131_v2 }
 0x34a   : > { %v901_v57 = vmul.f32 %v825_v56, %v7328_v60  ;;  %6359 = vmatprep.subr.mxu1 %v7045_v10  ;;  %v827_v61 = vsub.f32 %v7146_v5, %v826_v59 }
 0x34b   : > { %6360 = vmatpush3.msra.mxu1 %v7126_v1 }
 0x34c   : > { %v902_v58 = vadd.f32 %v901_v57, %v7402_v53  ;;  %6375 = vmatprep.subr.mxu1 %v7045_v10 }
 0x34e   : > { %6351 = vmatmul.mubr.msk.f32.vlgmr.msra.gmra.mxu0 %vm73_vm0, %v902_v58 }
 0x34f   : > { %6365 = vmatpush3.msra.mxu0 %v7141_v4  ;;  %6372 = vmatprep.mubr.msk.f32.mxu0 %vm7046_vm1, %v7045_v10 }
 0x350   : > { %6366 = vmatprep.subr.mxu0 %v7045_v10 }
 0x351   : > { %6367 = vmatpush3.msra.mxu0 %v7136_v3 }
 0x352   : > { %6368 = vmatprep.subr.mxu0 %v7045_v10 }
 0x353   : > { %6369 = vmatpush3.msra.mxu0 %v7131_v2 }
 0x354   : > { %6370 = vmatprep.subr.mxu0 %v7045_v10 }
 0x355   : > { %6371 = vmatpush3.msra.mxu0 %v7126_v1 }
 0x356   : > { %6386 = vmatprep.subr.mxu0 %v7045_v10 }
 0x404   : > { %v897_v62 = vpop.f32.mrf.mxu1 }
 0x405   : > { %v898_v63 = vadd.f32 %v897_v62, %v827_v61 }
 0x406   : > { %v6341_v6 = vpop.f32.mrf.mxu1 }
 0x407   : > { %v903_v7 = vmul.f32 %v898_v63, %v7328_v60 }
 0x409   : > { %v904_v8 = vadd.f32 %v903_v7, %v7411_v55 }
 0x40b   : > { %v905_v9 = vsub.f32 0.0, %v904_v8  ;;  %v906_v11 = vmul.f32 %v904_v8, %v7121_v0 }
 0x40d   : > { %v981_v12 = vmul.f32 %v905_v9, %v7328_v60  ;;  %v907_v13 = vsub.f32 %v7146_v5, %v906_v11  ;;  %v1141_v20 = vmul.f32 2.0, %v905_v9 }
 0x40e   : > { %v977_v14 = vpop.f32.mrf.mxu0 }
 0x40f   : > { %v982_v15 = vadd.f32 %v981_v12, %v7402_v53  ;;  %v978_v16 = vadd.f32 %v977_v14, %v907_v13  ;;  %v1142_v24 = vadd.f32 %v1141_v20, %v825_v56 }
 0x410   : > { %v6352_v17 = vpop.f32.mrf.mxu0 }
 0x411   : > { %v983_v18 = vmul.f32 %v978_v16, %v7328_v60  ;;  %v1148_v19 = vmul.f32 2.0, %v978_v16  ;;  %6362 = vmatmul.mubr.msk.f32.vlgmr.msra.gmra.mxu1 %vm73_vm0, %v982_v15 }
 0x412   : > { %6376 = vmatpush3.msra.mxu1 %v7141_v4  ;;  %6383 = vmatprep.mubr.msk.f32.mxu1 %vm7046_vm1, %v7045_v10 }
 0x413   : > { %v984_v21 = vadd.f32 %v983_v18, %v7411_v55  ;;  %v1149_v22 = vadd.f32 %v1148_v19, %v898_v63  ;;  %6377 = vmatprep.subr.mxu1 %v7045_v10 }
 0x414   : > { %6378 = vmatpush3.msra.mxu1 %v7136_v3 }
 0x415   : > { %v985_v23 = vsub.f32 0.0, %v984_v21  ;;  %6379 = vmatprep.subr.mxu1 %v7045_v10  ;;  %v986_v29 = vmul.f32 %v984_v21, %v7121_v0 }
 0x416   : > { %6380 = vmatpush3.msra.mxu1 %v7131_v2 }
 0x417   : > { %v1061_v25 = vmul.f32 %v985_v23, %v7319_v51  ;;  %v1143_v26 = vmul.f32 2.0, %v985_v23  ;;  %6381 = vmatprep.subr.mxu1 %v7045_v10  ;;  %v987_v30 = vsub.f32 %v7146_v5, %v986_v29 }
 0x418   : > { %6382 = vmatpush3.msra.mxu1 %v7126_v1 }
 0x419   : > { %v1062_v27 = vadd.f32 %v1061_v25, %v7402_v53  ;;  %v1144_v28 = vadd.f32 %v1143_v26, %v1142_v24  ;;  %6397 = vmatprep.subr.mxu1 %v7045_v10 }
 0x41b   : > { %6373 = vmatmul.mubr.msk.f32.vlgmr.msra.gmra.mxu0 %vm73_vm0, %v1062_v27 }
 0x41c   : > { %6387 = vmatpush3.msra.mxu0 %v7141_v4  ;;  %6394 = vmatprep.mubr.msk.f32.mxu0 %vm7046_vm1, %v7045_v10 }
 0x41d   : > { %6388 = vmatprep.subr.mxu0 %v7045_v10 }
 0x41e   : > { %6389 = vmatpush3.msra.mxu0 %v7136_v3 }
 0x41f   : > { %6390 = vmatprep.subr.mxu0 %v7045_v10 }
 0x420   : > { %6391 = vmatpush3.msra.mxu0 %v7131_v2 }
 0x421   : > { %6392 = vmatprep.subr.mxu0 %v7045_v10 }
 0x422   : > { %6393 = vmatpush3.msra.mxu0 %v7126_v1 }
 0x423   : > { %6408 = vmatprep.subr.mxu0 %v7045_v10 }
 0x4d1   : > { %v1057_v31 = vpop.f32.mrf.mxu1 }
 0x4d2   : > { %v1058_v32 = vadd.f32 %v1057_v31, %v987_v30 }
 0x4d3   : > { %v6363_v33 = vpop.f32.mrf.mxu1 }
 0x4d4   : > { %v1063_v34 = vmul.f32 %v1058_v32, %v7319_v51  ;;  %v1150_v35 = vmul.f32 2.0, %v1058_v32 }
 0x4d6   : > { %v1064_v36 = vadd.f32 %v1063_v34, %v7411_v55  ;;  %v1151_v37 = vadd.f32 %v1150_v35, %v1149_v22 }
 0x4d8   : > { %v1065_v38 = vsub.f32 0.0, %v1064_v36  ;;  %v1066_v39 = vmul.f32 %v1064_v36, %v7121_v0 }
 0x4da   : > { %v1145_v40 = vadd.f32 %v1144_v28, %v1065_v38  ;;  %v1067_v41 = vsub.f32 %v7146_v5, %v1066_v39 }
 0x4db   : > { %v1137_v42 = vpop.f32.mrf.mxu0 }
 0x4dc   : > { %v1146_v43 = vmul.f32 %v1145_v40, %v7397_v44  ;;  %v1138_v45 = vadd.f32 %v1137_v42, %v1067_v41 }
 0x4dd   : > { %v6374_v46 = vpop.f32.mrf.mxu0 }
 0x4de   : > { %v1152_v47 = vadd.f32 %v1151_v37, %v1138_v45  ;;  %v7477_v48 = vadd.f32 %v1146_v43, %v7402_v53 }
 0x4e0   : > { %v1153_v49 = vmul.f32 %v1152_v47, %v7397_v44  ;;  %6384 = vmatmul.mubr.msk.f32.vlgmr.msra.gmra.mxu1 %vm73_vm0, %v7477_v48 }
 0x4e1   : > { %6398 = vmatpush3.msra.mxu1 %v7141_v4  ;;  %6405 = vmatprep.mubr.msk.f32.mxu1 %vm7046_vm1, %v7045_v10 }
 0x4e2   : > { %v7486_v50 = vadd.f32 %v1153_v49, %v7411_v55  ;;  %6399 = vmatprep.subr.mxu1 %v7045_v10 }
 0x4e3   : > { %6400 = vmatpush3.msra.mxu1 %v7136_v3 }
 0x4e4   : > { %v1155_v52 = vsub.f32 0.0, %v7486_v50  ;;  %6401 = vmatprep.subr.mxu1 %v7045_v10  ;;  %v1156_v55 = vmul.f32 %v7486_v50, %v7121_v0 }
 0x4e5   : > { %6402 = vmatpush3.msra.mxu1 %v7131_v2 }
 0x4e6   : > { %v1231_v53 = vmul.f32 %v1155_v52, %v7328_v60  ;;  %6403 = vmatprep.subr.mxu1 %v7045_v10  ;;  %v1157_v56 = vsub.f32 %v7146_v5, %v1156_v55 }
 0x4e7   : > { %6404 = vmatpush3.msra.mxu1 %v7126_v1 }
 0x4e8   : > { %v1232_v54 = vadd.f32 %v1231_v53, %v7477_v48  ;;  %6419 = vmatprep.subr.mxu1 %v7045_v10 }
 0x4ea   : > { %6395 = vmatmul.mubr.msk.f32.vlgmr.msra.gmra.mxu0 %vm73_vm0, %v1232_v54 }
 0x4eb   : > { %6409 = vmatpush3.msra.mxu0 %v7141_v4  ;;  %6416 = vmatprep.mubr.msk.f32.mxu0 %vm7046_vm1, %v7045_v10 }
 0x4ec   : > { %6410 = vmatprep.subr.mxu0 %v7045_v10 }
 0x4ed   : > { %6411 = vmatpush3.msra.mxu0 %v7136_v3 }
 0x4ee   : > { %6412 = vmatprep.subr.mxu0 %v7045_v10 }
 0x4ef   : > { %6413 = vmatpush3.msra.mxu0 %v7131_v2 }
 0x4f0   : > { %6414 = vmatprep.subr.mxu0 %v7045_v10 }
 0x4f1   : > { %6415 = vmatpush3.msra.mxu0 %v7126_v1 }
 0x4f2   : > { %6430 = vmatprep.subr.mxu0 %v7045_v10 }
 0x5a0   : > { %v1227_v57 = vpop.f32.mrf.mxu1 }
 0x5a1   : > { %v1228_v58 = vadd.f32 %v1227_v57, %v1157_v56 }
 0x5a2   : > { %v6385_v59 = vpop.f32.mrf.mxu1 }
 0x5a3   : > { %v1233_v61 = vmul.f32 %v1228_v58, %v7328_v60 }
 0x5a5   : > { %v1234_v62 = vadd.f32 %v1233_v61, %v7486_v50 }
 0x5a7   : > { %v1235_v63 = vsub.f32 0.0, %v1234_v62  ;;  %v1236_v6 = vmul.f32 %v1234_v62, %v7121_v0 }
 0x5a9   : > { %v1311_v7 = vmul.f32 %v1235_v63, %v7328_v60  ;;  %v1237_v8 = vsub.f32 %v7146_v5, %v1236_v6  ;;  %v1471_v16 = vmul.f32 2.0, %v1235_v63 }
 0x5aa   : > { %v1307_v9 = vpop.f32.mrf.mxu0 }
 0x5ab   : > { %v1312_v11 = vadd.f32 %v1311_v7, %v7477_v48  ;;  %v1308_v12 = vadd.f32 %v1307_v9, %v1237_v8  ;;  %v1472_v20 = vadd.f32 %v1471_v16, %v1155_v52 }
 0x5ac   : > { %v6396_v13 = vpop.f32.mrf.mxu0 }
 0x5ad   : > { %v1313_v14 = vmul.f32 %v1308_v12, %v7328_v60  ;;  %v1478_v15 = vmul.f32 2.0, %v1308_v12  ;;  %6406 = vmatmul.mubr.msk.f32.vlgmr.msra.gmra.mxu1 %vm73_vm0, %v1312_v11 }
 0x5ae   : > { %6420 = vmatpush3.msra.mxu1 %v7141_v4  ;;  %6427 = vmatprep.mubr.msk.f32.mxu1 %vm7046_vm1, %v7045_v10 }
 0x5af   : > { %v1314_v17 = vadd.f32 %v1313_v14, %v7486_v50  ;;  %v1479_v18 = vadd.f32 %v1478_v15, %v1228_v58  ;;  %6421 = vmatprep.subr.mxu1 %v7045_v10 }
 0x5b0   : > { %6422 = vmatpush3.msra.mxu1 %v7136_v3 }
 0x5b1   : > { %v1315_v19 = vsub.f32 0.0, %v1314_v17  ;;  %6423 = vmatprep.subr.mxu1 %v7045_v10  ;;  %v1316_v25 = vmul.f32 %v1314_v17, %v7121_v0 }
 0x5b2   : > { %6424 = vmatpush3.msra.mxu1 %v7131_v2 }
 0x5b3   : > { %v1391_v21 = vmul.f32 %v1315_v19, %v7319_v51  ;;  %v1473_v22 = vmul.f32 2.0, %v1315_v19  ;;  %6425 = vmatprep.subr.mxu1 %v7045_v10  ;;  %v1317_v26 = vsub.f32 %v7146_v5, %v1316_v25 }
 0x5b4   : > { %6426 = vmatpush3.msra.mxu1 %v7126_v1 }
 0x5b5   : > { %v1392_v23 = vadd.f32 %v1391_v21, %v7477_v48  ;;  %v1474_v24 = vadd.f32 %v1473_v22, %v1472_v20  ;;  %6441 = vmatprep.subr.mxu1 %v7045_v10 }
 0x5b7   : > { %6417 = vmatmul.mubr.msk.f32.vlgmr.msra.gmra.mxu0 %vm73_vm0, %v1392_v23 }
 0x5b8   : > { %6431 = vmatpush3.msra.mxu0 %v7141_v4  ;;  %6438 = vmatprep.mubr.msk.f32.mxu0 %vm7046_vm1, %v7045_v10 }
 0x5b9   : > { %6432 = vmatprep.subr.mxu0 %v7045_v10 }
 0x5ba   : > { %6433 = vmatpush3.msra.mxu0 %v7136_v3 }
 0x5bb   : > { %6434 = vmatprep.subr.mxu0 %v7045_v10 }
 0x5bc   : > { %6435 = vmatpush3.msra.mxu0 %v7131_v2 }
 0x5bd   : > { %6436 = vmatprep.subr.mxu0 %v7045_v10 }
 0x5be   : > { %6437 = vmatpush3.msra.mxu0 %v7126_v1 }
 0x5bf   : > { %6452 = vmatprep.subr.mxu0 %v7045_v10 }
 0x66d   : > { %v1387_v27 = vpop.f32.mrf.mxu1 }
 0x66e   : > { %v1388_v28 = vadd.f32 %v1387_v27, %v1317_v26 }
 0x66f   : > { %v6407_v29 = vpop.f32.mrf.mxu1 }
 0x670   : > { %v1393_v30 = vmul.f32 %v1388_v28, %v7319_v51  ;;  %v1480_v31 = vmul.f32 2.0, %v1388_v28 }
 0x672   : > { %v1394_v32 = vadd.f32 %v1393_v30, %v7486_v50  ;;  %v1481_v33 = vadd.f32 %v1480_v31, %v1479_v18 }
 0x674   : > { %v1395_v34 = vsub.f32 0.0, %v1394_v32  ;;  %v1396_v35 = vmul.f32 %v1394_v32, %v7121_v0 }
 0x676   : > { %v1475_v36 = vadd.f32 %v1474_v24, %v1395_v34  ;;  %v1397_v37 = vsub.f32 %v7146_v5, %v1396_v35 }
 0x677   : > { %v1467_v38 = vpop.f32.mrf.mxu0 }
 0x678   : > { %v1476_v39 = vmul.f32 %v1475_v36, %v7397_v44  ;;  %v1468_v40 = vadd.f32 %v1467_v38, %v1397_v37 }
 0x679   : > { %v6418_v41 = vpop.f32.mrf.mxu0 }
 0x67a   : > { %v1482_v42 = vadd.f32 %v1481_v33, %v1468_v40  ;;  %v7552_v43 = vadd.f32 %v1476_v39, %v7477_v48 }
 0x67c   : > { %v1483_v45 = vmul.f32 %v1482_v42, %v7397_v44  ;;  %6428 = vmatmul.mubr.msk.f32.vlgmr.msra.gmra.mxu1 %vm73_vm0, %v7552_v43 }
 0x67d   : > { %6442 = vmatpush3.msra.mxu1 %v7141_v4  ;;  %6449 = vmatprep.mubr.msk.f32.mxu1 %vm7046_vm1, %v7045_v10 }
 0x67e   : > { %v7561_v46 = vadd.f32 %v1483_v45, %v7486_v50  ;;  %6443 = vmatprep.subr.mxu1 %v7045_v10 }
 0x67f   : > { %6444 = vmatpush3.msra.mxu1 %v7136_v3 }
 0x680   : > { %v1485_v47 = vsub.f32 0.0, %v7561_v46  ;;  %6445 = vmatprep.subr.mxu1 %v7045_v10  ;;  %v1486_v50 = vmul.f32 %v7561_v46, %v7121_v0 }
 0x681   : > { %6446 = vmatpush3.msra.mxu1 %v7131_v2 }
 0x682   : > { %v1561_v48 = vmul.f32 %v1485_v47, %v7328_v60  ;;  %6447 = vmatprep.subr.mxu1 %v7045_v10  ;;  %v1487_v52 = vsub.f32 %v7146_v5, %v1486_v50 }
 0x683   : > { %6448 = vmatpush3.msra.mxu1 %v7126_v1 }
 0x684   : > { %v1562_v49 = vadd.f32 %v1561_v48, %v7552_v43  ;;  %6463 = vmatprep.subr.mxu1 %v7045_v10 }
 0x686   : > { %6439 = vmatmul.mubr.msk.f32.vlgmr.msra.gmra.mxu0 %vm73_vm0, %v1562_v49 }
 0x687   : > { %6453 = vmatpush3.msra.mxu0 %v7141_v4  ;;  %6460 = vmatprep.mubr.msk.f32.mxu0 %vm7046_vm1, %v7045_v10 }
 0x688   : > { %6454 = vmatprep.subr.mxu0 %v7045_v10 }
 0x689   : > { %6455 = vmatpush3.msra.mxu0 %v7136_v3 }
 0x68a   : > { %6456 = vmatprep.subr.mxu0 %v7045_v10 }
 0x68b   : > { %6457 = vmatpush3.msra.mxu0 %v7131_v2 }
 0x68c   : > { %6458 = vmatprep.subr.mxu0 %v7045_v10 }
 0x68d   : > { %6459 = vmatpush3.msra.mxu0 %v7126_v1 }
 0x68e   : > { %6474 = vmatprep.subr.mxu0 %v7045_v10 }
 0x73c   : > { %v1557_v53 = vpop.f32.mrf.mxu1 }
 0x73d   : > { %v1558_v54 = vadd.f32 %v1557_v53, %v1487_v52 }
 0x73e   : > { %v6429_v55 = vpop.f32.mrf.mxu1 }
 0x73f   : > { %v1563_v56 = vmul.f32 %v1558_v54, %v7328_v60 }
 0x741   : > { %v1564_v57 = vadd.f32 %v1563_v56, %v7561_v46 }
 0x743   : > { %v1565_v58 = vsub.f32 0.0, %v1564_v57  ;;  %v1566_v59 = vmul.f32 %v1564_v57, %v7121_v0 }
 0x745   : > { %v1641_v61 = vmul.f32 %v1565_v58, %v7328_v60  ;;  %v1567_v62 = vsub.f32 %v7146_v5, %v1566_v59  ;;  %v1801_v12 = vmul.f32 2.0, %v1565_v58 }
 0x746   : > { %v1637_v63 = vpop.f32.mrf.mxu0 }
 0x747   : > { %v1642_v6 = vadd.f32 %v1641_v61, %v7552_v43  ;;  %v1638_v7 = vadd.f32 %v1637_v63, %v1567_v62  ;;  %v1802_v16 = vadd.f32 %v1801_v12, %v1485_v47 }
 0x748   : > { %v6440_v8 = vpop.f32.mrf.mxu0 }
 0x749   : > { %v1643_v9 = vmul.f32 %v1638_v7, %v7328_v60  ;;  %v1808_v11 = vmul.f32 2.0, %v1638_v7  ;;  %6450 = vmatmul.mubr.msk.f32.vlgmr.msra.gmra.mxu1 %vm73_vm0, %v1642_v6 }
 0x74a   : > { %6464 = vmatpush3.msra.mxu1 %v7141_v4  ;;  %6471 = vmatprep.mubr.msk.f32.mxu1 %vm7046_vm1, %v7045_v10 }
 0x74b   : > { %v1644_v13 = vadd.f32 %v1643_v9, %v7561_v46  ;;  %v1809_v14 = vadd.f32 %v1808_v11, %v1558_v54  ;;  %6465 = vmatprep.subr.mxu1 %v7045_v10 }
 0x74c   : > { %6466 = vmatpush3.msra.mxu1 %v7136_v3 }
 0x74d   : > { %v1645_v15 = vsub.f32 0.0, %v1644_v13  ;;  %6467 = vmatprep.subr.mxu1 %v7045_v10  ;;  %v1646_v21 = vmul.f32 %v1644_v13, %v7121_v0 }
 0x74e   : > { %6468 = vmatpush3.msra.mxu1 %v7131_v2 }
 0x74f   : > { %v1721_v17 = vmul.f32 %v1645_v15, %v7319_v51  ;;  %v1803_v18 = vmul.f32 2.0, %v1645_v15  ;;  %6469 = vmatprep.subr.mxu1 %v7045_v10  ;;  %v1647_v22 = vsub.f32 %v7146_v5, %v1646_v21 }
 0x750   : > { %6470 = vmatpush3.msra.mxu1 %v7126_v1 }
 0x751   : > { %v1722_v19 = vadd.f32 %v1721_v17, %v7552_v43  ;;  %v1804_v20 = vadd.f32 %v1803_v18, %v1802_v16  ;;  %6485 = vmatprep.subr.mxu1 %v7045_v10 }
 0x753   : > { %6461 = vmatmul.mubr.msk.f32.vlgmr.msra.gmra.mxu0 %vm73_vm0, %v1722_v19 }
 0x754   : > { %6475 = vmatpush3.msra.mxu0 %v7141_v4  ;;  %6482 = vmatprep.mubr.msk.f32.mxu0 %vm7046_vm1, %v7045_v10 }
 0x755   : > { %6476 = vmatprep.subr.mxu0 %v7045_v10 }
 0x756   : > { %6477 = vmatpush3.msra.mxu0 %v7136_v3 }
 0x757   : > { %6478 = vmatprep.subr.mxu0 %v7045_v10 }
 0x758   : > { %6479 = vmatpush3.msra.mxu0 %v7131_v2 }
 0x759   : > { %6480 = vmatprep.subr.mxu0 %v7045_v10 }
 0x75a   : > { %6481 = vmatpush3.msra.mxu0 %v7126_v1 }
 0x75b   : > { %6496 = vmatprep.subr.mxu0 %v7045_v10 }
 0x809   : > { %v1717_v23 = vpop.f32.mrf.mxu1 }
 0x80a   : > { %v1718_v24 = vadd.f32 %v1717_v23, %v1647_v22 }
 0x80b   : > { %v6451_v25 = vpop.f32.mrf.mxu1 }
 0x80c   : > { %v1723_v26 = vmul.f32 %v1718_v24, %v7319_v51  ;;  %v1810_v27 = vmul.f32 2.0, %v1718_v24 }
 0x80e   : > { %v1724_v28 = vadd.f32 %v1723_v26, %v7561_v46  ;;  %v1811_v29 = vadd.f32 %v1810_v27, %v1809_v14 }
 0x810   : > { %v1725_v30 = vsub.f32 0.0, %v1724_v28  ;;  %v1726_v31 = vmul.f32 %v1724_v28, %v7121_v0 }
 0x812   : > { %v1805_v32 = vadd.f32 %v1804_v20, %v1725_v30  ;;  %v1727_v33 = vsub.f32 %v7146_v5, %v1726_v31 }
 0x813   : > { %v1797_v34 = vpop.f32.mrf.mxu0 }
 0x814   : > { %v1806_v35 = vmul.f32 %v1805_v32, %v7397_v44  ;;  %v1798_v36 = vadd.f32 %v1797_v34, %v1727_v33 }
 0x815   : > { %v6462_v37 = vpop.f32.mrf.mxu0 }
 0x816   : > { %v1812_v38 = vadd.f32 %v1811_v29, %v1798_v36  ;;  %v7627_v39 = vadd.f32 %v1806_v35, %v7552_v43 }
 0x818   : > { %v1813_v40 = vmul.f32 %v1812_v38, %v7397_v44  ;;  %6472 = vmatmul.mubr.msk.f32.vlgmr.msra.gmra.mxu1 %vm73_vm0, %v7627_v39 }
 0x819   : > { %6486 = vmatpush3.msra.mxu1 %v7141_v4  ;;  %6493 = vmatprep.mubr.msk.f32.mxu1 %vm7046_vm1, %v7045_v10 }
 0x81a   : > { %v7636_v41 = vadd.f32 %v1813_v40, %v7561_v46  ;;  %6487 = vmatprep.subr.mxu1 %v7045_v10 }
 0x81b   : > { %6488 = vmatpush3.msra.mxu1 %v7136_v3 }
 0x81c   : > { %v1815_v42 = vsub.f32 0.0, %v7636_v41  ;;  %6489 = vmatprep.subr.mxu1 %v7045_v10  ;;  %v1816_v46 = vmul.f32 %v7636_v41, %v7121_v0 }
 0x81d   : > { %6490 = vmatpush3.msra.mxu1 %v7131_v2 }
 0x81e   : > { %v1891_v43 = vmul.f32 %v1815_v42, %v7328_v60  ;;  %6491 = vmatprep.subr.mxu1 %v7045_v10  ;;  %v1817_v47 = vsub.f32 %v7146_v5, %v1816_v46 }
 0x81f   : > { %6492 = vmatpush3.msra.mxu1 %v7126_v1 }
 0x820   : > { %v1892_v45 = vadd.f32 %v1891_v43, %v7627_v39  ;;  %6507 = vmatprep.subr.mxu1 %v7045_v10 }
 0x822   : > { %6483 = vmatmul.mubr.msk.f32.vlgmr.msra.gmra.mxu0 %vm73_vm0, %v1892_v45 }
 0x823   : > { %6497 = vmatpush3.msra.mxu0 %v7141_v4  ;;  %6504 = vmatprep.mubr.msk.f32.mxu0 %vm7046_vm1, %v7045_v10 }
 0x824   : > { %6498 = vmatprep.subr.mxu0 %v7045_v10 }
 0x825   : > { %6499 = vmatpush3.msra.mxu0 %v7136_v3 }
 0x826   : > { %6500 = vmatprep.subr.mxu0 %v7045_v10 }
 0x827   : > { %6501 = vmatpush3.msra.mxu0 %v7131_v2 }
 0x828   : > { %6502 = vmatprep.subr.mxu0 %v7045_v10 }
 0x829   : > { %6503 = vmatpush3.msra.mxu0 %v7126_v1 }
 0x82a   : > { %6518 = vmatprep.subr.mxu0 %v7045_v10 }
 0x8d8   : > { %v1887_v48 = vpop.f32.mrf.mxu1 }
 0x8d9   : > { %v1888_v49 = vadd.f32 %v1887_v48, %v1817_v47 }
 0x8da   : > { %v6473_v50 = vpop.f32.mrf.mxu1 }
 0x8db   : > { %v1893_v52 = vmul.f32 %v1888_v49, %v7328_v60 }
 0x8dd   : > { %v1894_v53 = vadd.f32 %v1893_v52, %v7636_v41 }
 0x8df   : > { %v1895_v54 = vsub.f32 0.0, %v1894_v53  ;;  %v1896_v55 = vmul.f32 %v1894_v53, %v7121_v0 }
 0x8e1   : > { %v1971_v56 = vmul.f32 %v1895_v54, %v7328_v60  ;;  %v1897_v57 = vsub.f32 %v7146_v5, %v1896_v55  ;;  %v2131_v7 = vmul.f32 2.0, %v1895_v54 }
 0x8e2   : > { %v1967_v58 = vpop.f32.mrf.mxu0 }
 0x8e3   : > { %v1972_v59 = vadd.f32 %v1971_v56, %v7627_v39  ;;  %v1968_v61 = vadd.f32 %v1967_v58, %v1897_v57  ;;  %v2132_v12 = vadd.f32 %v2131_v7, %v1815_v42 }
 0x8e4   : > { %v6484_v62 = vpop.f32.mrf.mxu0 }
 0x8e5   : > { %v1973_v63 = vmul.f32 %v1968_v61, %v7328_v60  ;;  %v2138_v6 = vmul.f32 2.0, %v1968_v61  ;;  %6494 = vmatmul.mubr.msk.f32.vlgmr.msra.gmra.mxu1 %vm73_vm0, %v1972_v59 }
 0x8e6   : > { %6508 = vmatpush3.msra.mxu1 %v7141_v4  ;;  %6515 = vmatprep.mubr.msk.f32.mxu1 %vm7046_vm1, %v7045_v10 }
 0x8e7   : > { %v1974_v8 = vadd.f32 %v1973_v63, %v7636_v41  ;;  %v2139_v9 = vadd.f32 %v2138_v6, %v1888_v49  ;;  %6509 = vmatprep.subr.mxu1 %v7045_v10 }
 0x8e8   : > { %6510 = vmatpush3.msra.mxu1 %v7136_v3 }
 0x8e9   : > { %v1975_v11 = vsub.f32 0.0, %v1974_v8  ;;  %6511 = vmatprep.subr.mxu1 %v7045_v10  ;;  %v1976_v17 = vmul.f32 %v1974_v8, %v7121_v0 }
 0x8ea   : > { %6512 = vmatpush3.msra.mxu1 %v7131_v2 }
 0x8eb   : > { %v2051_v13 = vmul.f32 %v1975_v11, %v7319_v51  ;;  %v2133_v14 = vmul.f32 2.0, %v1975_v11  ;;  %6513 = vmatprep.subr.mxu1 %v7045_v10  ;;  %v1977_v18 = vsub.f32 %v7146_v5, %v1976_v17 }
 0x8ec   : > { %6514 = vmatpush3.msra.mxu1 %v7126_v1 }
 0x8ed   : > { %v2052_v15 = vadd.f32 %v2051_v13, %v7627_v39  ;;  %v2134_v16 = vadd.f32 %v2133_v14, %v2132_v12  ;;  %6529 = vmatprep.subr.mxu1 %v7045_v10 }
 0x8ef   : > { %6505 = vmatmul.mubr.msk.f32.vlgmr.msra.gmra.mxu0 %vm73_vm0, %v2052_v15 }
 0x8f0   : > { %6519 = vmatpush3.msra.mxu0 %v7141_v4  ;;  %6526 = vmatprep.mubr.msk.f32.mxu0 %vm7046_vm1, %v7045_v10 }
 0x8f1   : > { %6520 = vmatprep.subr.mxu0 %v7045_v10 }
 0x8f2   : > { %6521 = vmatpush3.msra.mxu0 %v7136_v3 }
 0x8f3   : > { %6522 = vmatprep.subr.mxu0 %v7045_v10 }
 0x8f4   : > { %6523 = vmatpush3.msra.mxu0 %v7131_v2 }
 0x8f5   : > { %6524 = vmatprep.subr.mxu0 %v7045_v10 }
 0x8f6   : > { %6525 = vmatpush3.msra.mxu0 %v7126_v1 }
 0x8f7   : > { %6540 = vmatprep.subr.mxu0 %v7045_v10 }
 0x9a5   : > { %v2047_v19 = vpop.f32.mrf.mxu1 }
 0x9a6   : > { %v2048_v20 = vadd.f32 %v2047_v19, %v1977_v18 }
 0x9a7   : > { %v6495_v21 = vpop.f32.mrf.mxu1 }
 0x9a8   : > { %v2053_v22 = vmul.f32 %v2048_v20, %v7319_v51  ;;  %v2140_v23 = vmul.f32 2.0, %v2048_v20 }
 0x9aa   : > { %v2054_v24 = vadd.f32 %v2053_v22, %v7636_v41  ;;  %v2141_v25 = vadd.f32 %v2140_v23, %v2139_v9 }
 0x9ac   : > { %v2055_v26 = vsub.f32 0.0, %v2054_v24  ;;  %v2056_v27 = vmul.f32 %v2054_v24, %v7121_v0 }
 0x9ae   : > { %v2135_v28 = vadd.f32 %v2134_v16, %v2055_v26  ;;  %v2057_v29 = vsub.f32 %v7146_v5, %v2056_v27 }
 0x9af   : > { %v2127_v30 = vpop.f32.mrf.mxu0 }
 0x9b0   : > { %v2136_v31 = vmul.f32 %v2135_v28, %v7397_v44  ;;  %v2128_v32 = vadd.f32 %v2127_v30, %v2057_v29 }
 0x9b1   : > { %v6506_v33 = vpop.f32.mrf.mxu0 }
 0x9b2   : > { %v2142_v34 = vadd.f32 %v2141_v25, %v2128_v32  ;;  %v7702_v35 = vadd.f32 %v2136_v31, %v7627_v39 }
 0x9b4   : > { %v2143_v36 = vmul.f32 %v2142_v34, %v7397_v44  ;;  %6516 = vmatmul.mubr.msk.f32.vlgmr.msra.gmra.mxu1 %vm73_vm0, %v7702_v35 }
 0x9b5   : > { %6530 = vmatpush3.msra.mxu1 %v7141_v4  ;;  %6537 = vmatprep.mubr.msk.f32.mxu1 %vm7046_vm1, %v7045_v10 }
 0x9b6   : > { %v7711_v37 = vadd.f32 %v2143_v36, %v7636_v41  ;;  %6531 = vmatprep.subr.mxu1 %v7045_v10 }
 0x9b7   : > { %6532 = vmatpush3.msra.mxu1 %v7136_v3 }
 0x9b8   : > { %v2145_v38 = vsub.f32 0.0, %v7711_v37  ;;  %6533 = vmatprep.subr.mxu1 %v7045_v10  ;;  %v2146_v41 = vmul.f32 %v7711_v37, %v7121_v0 }
 0x9b9   : > { %6534 = vmatpush3.msra.mxu1 %v7131_v2 }
 0x9ba   : > { %v2221_v39 = vmul.f32 %v2145_v38, %v7328_v60  ;;  %6535 = vmatprep.subr.mxu1 %v7045_v10  ;;  %v2147_v42 = vsub.f32 %v7146_v5, %v2146_v41 }
 0x9bb   : > { %6536 = vmatpush3.msra.mxu1 %v7126_v1 }
 0x9bc   : > { %v2222_v40 = vadd.f32 %v2221_v39, %v7702_v35  ;;  %6551 = vmatprep.subr.mxu1 %v7045_v10 }
 0x9be   : > { %6527 = vmatmul.mubr.msk.f32.vlgmr.msra.gmra.mxu0 %vm73_vm0, %v2222_v40 }
 0x9bf   : > { %6541 = vmatpush3.msra.mxu0 %v7141_v4  ;;  %6548 = vmatprep.mubr.msk.f32.mxu0 %vm7046_vm1, %v7045_v10 }
 0x9c0   : > { %6542 = vmatprep.subr.mxu0 %v7045_v10 }
 0x9c1   : > { %6543 = vmatpush3.msra.mxu0 %v7136_v3 }
 0x9c2   : > { %6544 = vmatprep.subr.mxu0 %v7045_v10 }
 0x9c3   : > { %6545 = vmatpush3.msra.mxu0 %v7131_v2 }
 0x9c4   : > { %6546 = vmatprep.subr.mxu0 %v7045_v10 }
 0x9c5   : > { %6547 = vmatpush3.msra.mxu0 %v7126_v1 }
 0x9c6   : > { %6562 = vmatprep.subr.mxu0 %v7045_v10 }
 0xa74   : > { %v2217_v43 = vpop.f32.mrf.mxu1 }
 0xa75   : > { %v2218_v45 = vadd.f32 %v2217_v43, %v2147_v42 }
 0xa76   : > { %v6517_v46 = vpop.f32.mrf.mxu1 }
 0xa77   : > { %v2223_v47 = vmul.f32 %v2218_v45, %v7328_v60 }
 0xa79   : > { %v2224_v48 = vadd.f32 %v2223_v47, %v7711_v37 }
 0xa7b   : > { %v2225_v49 = vsub.f32 0.0, %v2224_v48  ;;  %v2226_v50 = vmul.f32 %v2224_v48, %v7121_v0 }
 0xa7d   : > { %v2301_v52 = vmul.f32 %v2225_v49, %v7328_v60  ;;  %v2227_v53 = vsub.f32 %v7146_v5, %v2226_v50  ;;  %v2461_v61 = vmul.f32 2.0, %v2225_v49 }
 0xa7e   : > { %v2297_v54 = vpop.f32.mrf.mxu0 }
 0xa7f   : > { %v2302_v55 = vadd.f32 %v2301_v52, %v7702_v35  ;;  %v2298_v56 = vadd.f32 %v2297_v54, %v2227_v53  ;;  %v2462_v7 = vadd.f32 %v2461_v61, %v2145_v38 }
 0xa80   : > { %v6528_v57 = vpop.f32.mrf.mxu0 }
 0xa81   : > { %v2303_v58 = vmul.f32 %v2298_v56, %v7328_v60  ;;  %v2468_v59 = vmul.f32 2.0, %v2298_v56  ;;  %6538 = vmatmul.mubr.msk.f32.vlgmr.msra.gmra.mxu1 %vm73_vm0, %v2302_v55 }
 0xa82   : > { %6552 = vmatpush3.msra.mxu1 %v7141_v4  ;;  %6559 = vmatprep.mubr.msk.f32.mxu1 %vm7046_vm1, %v7045_v10 }
 0xa83   : > { %v2304_v62 = vadd.f32 %v2303_v58, %v7711_v37  ;;  %v2469_v63 = vadd.f32 %v2468_v59, %v2218_v45  ;;  %6553 = vmatprep.subr.mxu1 %v7045_v10 }
 0xa84   : > { %6554 = vmatpush3.msra.mxu1 %v7136_v3 }
 0xa85   : > { %v2305_v6 = vsub.f32 0.0, %v2304_v62  ;;  %6555 = vmatprep.subr.mxu1 %v7045_v10  ;;  %v2306_v13 = vmul.f32 %v2304_v62, %v7121_v0 }
 0xa86   : > { %6556 = vmatpush3.msra.mxu1 %v7131_v2 }
 0xa87   : > { %v2381_v8 = vmul.f32 %v2305_v6, %v7319_v51  ;;  %v2463_v9 = vmul.f32 2.0, %v2305_v6  ;;  %6557 = vmatprep.subr.mxu1 %v7045_v10  ;;  %v2307_v14 = vsub.f32 %v7146_v5, %v2306_v13 }
 0xa88   : > { %6558 = vmatpush3.msra.mxu1 %v7126_v1 }
 0xa89   : > { %v2382_v11 = vadd.f32 %v2381_v8, %v7702_v35  ;;  %v2464_v12 = vadd.f32 %v2463_v9, %v2462_v7  ;;  %6573 = vmatprep.subr.mxu1 %v7045_v10 }
 0xa8b   : > { %6549 = vmatmul.mubr.msk.f32.vlgmr.msra.gmra.mxu0 %vm73_vm0, %v2382_v11 }
 0xa8c   : > { %6563 = vmatpush3.msra.mxu0 %v7141_v4  ;;  %6570 = vmatprep.mubr.msk.f32.mxu0 %vm7046_vm1, %v7045_v10 }
 0xa8d   : > { %6564 = vmatprep.subr.mxu0 %v7045_v10 }
 0xa8e   : > { %6565 = vmatpush3.msra.mxu0 %v7136_v3 }
 0xa8f   : > { %6566 = vmatprep.subr.mxu0 %v7045_v10 }
 0xa90   : > { %6567 = vmatpush3.msra.mxu0 %v7131_v2 }
 0xa91   : > { %6568 = vmatprep.subr.mxu0 %v7045_v10 }
 0xa92   : > { %6569 = vmatpush3.msra.mxu0 %v7126_v1 }
 0xa93   : > { %6584 = vmatprep.subr.mxu0 %v7045_v10 }
 0xb41   : > { %v2377_v15 = vpop.f32.mrf.mxu1 }
 0xb42   : > { %v2378_v16 = vadd.f32 %v2377_v15, %v2307_v14 }
 0xb43   : > { %v6539_v17 = vpop.f32.mrf.mxu1 }
 0xb44   : > { %v2383_v18 = vmul.f32 %v2378_v16, %v7319_v51  ;;  %v2470_v19 = vmul.f32 2.0, %v2378_v16 }
 0xb46   : > { %v2384_v20 = vadd.f32 %v2383_v18, %v7711_v37  ;;  %v2471_v21 = vadd.f32 %v2470_v19, %v2469_v63 }
 0xb48   : > { %v2385_v22 = vsub.f32 0.0, %v2384_v20  ;;  %v2386_v23 = vmul.f32 %v2384_v20, %v7121_v0 }
 0xb4a   : > { %v2465_v24 = vadd.f32 %v2464_v12, %v2385_v22  ;;  %v2387_v25 = vsub.f32 %v7146_v5, %v2386_v23 }
 0xb4b   : > { %v2457_v26 = vpop.f32.mrf.mxu0 }
 0xb4c   : > { %v2466_v27 = vmul.f32 %v2465_v24, %v7397_v44  ;;  %v2458_v28 = vadd.f32 %v2457_v26, %v2387_v25 }
 0xb4d   : > { %v6550_v29 = vpop.f32.mrf.mxu0 }
 0xb4e   : > { %v2472_v30 = vadd.f32 %v2471_v21, %v2458_v28  ;;  %v7777_v31 = vadd.f32 %v2466_v27, %v7702_v35 }
 0xb50   : > { %v2473_v32 = vmul.f32 %v2472_v30, %v7397_v44  ;;  %6560 = vmatmul.mubr.msk.f32.vlgmr.msra.gmra.mxu1 %vm73_vm0, %v7777_v31 }
 0xb51   : > { %6574 = vmatpush3.msra.mxu1 %v7141_v4  ;;  %6581 = vmatprep.mubr.msk.f32.mxu1 %vm7046_vm1, %v7045_v10 }
 0xb52   : > { %v7786_v33 = vadd.f32 %v2473_v32, %v7711_v37  ;;  %6575 = vmatprep.subr.mxu1 %v7045_v10 }
 0xb53   : > { %6576 = vmatpush3.msra.mxu1 %v7136_v3 }
 0xb54   : > { %v2475_v34 = vsub.f32 0.0, %v7786_v33  ;;  %6577 = vmatprep.subr.mxu1 %v7045_v10  ;;  %v2476_v37 = vmul.f32 %v7786_v33, %v7121_v0 }
 0xb55   : > { %6578 = vmatpush3.msra.mxu1 %v7131_v2 }
 0xb56   : > { %v2551_v35 = vmul.f32 %v2475_v34, %v7328_v60  ;;  %6579 = vmatprep.subr.mxu1 %v7045_v10  ;;  %v2477_v38 = vsub.f32 %v7146_v5, %v2476_v37 }
 0xb57   : > { %6580 = vmatpush3.msra.mxu1 %v7126_v1 }
 0xb58   : > { %v2552_v36 = vadd.f32 %v2551_v35, %v7777_v31  ;;  %6595 = vmatprep.subr.mxu1 %v7045_v10 }
 0xb5a   : > { %6571 = vmatmul.mubr.msk.f32.vlgmr.msra.gmra.mxu0 %vm73_vm0, %v2552_v36 }
 0xb5b   : > { %6585 = vmatpush3.msra.mxu0 %v7141_v4  ;;  %6592 = vmatprep.mubr.msk.f32.mxu0 %vm7046_vm1, %v7045_v10 }
 0xb5c   : > { %6586 = vmatprep.subr.mxu0 %v7045_v10 }
 0xb5d   : > { %6587 = vmatpush3.msra.mxu0 %v7136_v3 }
 0xb5e   : > { %6588 = vmatprep.subr.mxu0 %v7045_v10 }
 0xb5f   : > { %6589 = vmatpush3.msra.mxu0 %v7131_v2 }
 0xb60   : > { %6590 = vmatprep.subr.mxu0 %v7045_v10 }
 0xb61   : > { %6591 = vmatpush3.msra.mxu0 %v7126_v1 }
 0xb62   : > { %6606 = vmatprep.subr.mxu0 %v7045_v10 }
 0xc10   : > { %v2547_v39 = vpop.f32.mrf.mxu1 }
 0xc11   : > { %v2548_v40 = vadd.f32 %v2547_v39, %v2477_v38 }
 0xc12   : > { %v6561_v41 = vpop.f32.mrf.mxu1 }
 0xc13   : > { %v2553_v42 = vmul.f32 %v2548_v40, %v7328_v60 }
 0xc15   : > { %v2554_v43 = vadd.f32 %v2553_v42, %v7786_v33 }
 0xc17   : > { %v2555_v45 = vsub.f32 0.0, %v2554_v43  ;;  %v2556_v46 = vmul.f32 %v2554_v43, %v7121_v0 }
 0xc19   : > { %v2631_v47 = vmul.f32 %v2555_v45, %v7328_v60  ;;  %v2557_v48 = vsub.f32 %v7146_v5, %v2556_v46  ;;  %v2791_v56 = vmul.f32 2.0, %v2555_v45 }
 0xc1a   : > { %v2627_v49 = vpop.f32.mrf.mxu0 }
 0xc1b   : > { %v2632_v50 = vadd.f32 %v2631_v47, %v7777_v31  ;;  %v2628_v52 = vadd.f32 %v2627_v49, %v2557_v48  ;;  %v2792_v61 = vadd.f32 %v2791_v56, %v2475_v34 }
 0xc1c   : > { %v6572_v53 = vpop.f32.mrf.mxu0 }
 0xc1d   : > { %v2633_v54 = vmul.f32 %v2628_v52, %v7328_v60  ;;  %v2798_v55 = vmul.f32 2.0, %v2628_v52  ;;  %6582 = vmatmul.mubr.msk.f32.vlgmr.msra.gmra.mxu1 %vm73_vm0, %v2632_v50 }
 0xc1e   : > { %6596 = vmatpush3.msra.mxu1 %v7141_v4  ;;  %6603 = vmatprep.mubr.msk.f32.mxu1 %vm7046_vm1, %v7045_v10 }
 0xc1f   : > { %v2634_v57 = vadd.f32 %v2633_v54, %v7786_v33  ;;  %v2799_v58 = vadd.f32 %v2798_v55, %v2548_v40  ;;  %6597 = vmatprep.subr.mxu1 %v7045_v10 }
 0xc20   : > { %6598 = vmatpush3.msra.mxu1 %v7136_v3 }
 0xc21   : > { %v2635_v59 = vsub.f32 0.0, %v2634_v57  ;;  %6599 = vmatprep.subr.mxu1 %v7045_v10  ;;  %v2636_v8 = vmul.f32 %v2634_v57, %v7121_v0 }
 0xc22   : > { %6600 = vmatpush3.msra.mxu1 %v7131_v2 }
 0xc23   : > { %v2711_v62 = vmul.f32 %v2635_v59, %v7319_v51  ;;  %v2793_v63 = vmul.f32 2.0, %v2635_v59  ;;  %6601 = vmatprep.subr.mxu1 %v7045_v10  ;;  %v2637_v9 = vsub.f32 %v7146_v5, %v2636_v8 }
 0xc24   : > { %6602 = vmatpush3.msra.mxu1 %v7126_v1 }
 0xc25   : > { %v2712_v6 = vadd.f32 %v2711_v62, %v7777_v31  ;;  %v2794_v7 = vadd.f32 %v2793_v63, %v2792_v61  ;;  %6617 = vmatprep.subr.mxu1 %v7045_v10 }
 0xc27   : > { %6593 = vmatmul.mubr.msk.f32.vlgmr.msra.gmra.mxu0 %vm73_vm0, %v2712_v6 }
 0xc28   : > { %6607 = vmatpush3.msra.mxu0 %v7141_v4  ;;  %6614 = vmatprep.mubr.msk.f32.mxu0 %vm7046_vm1, %v7045_v10 }
 0xc29   : > { %6608 = vmatprep.subr.mxu0 %v7045_v10 }
 0xc2a   : > { %6609 = vmatpush3.msra.mxu0 %v7136_v3 }
 0xc2b   : > { %6610 = vmatprep.subr.mxu0 %v7045_v10 }
 0xc2c   : > { %6611 = vmatpush3.msra.mxu0 %v7131_v2 }
 0xc2d   : > { %6612 = vmatprep.subr.mxu0 %v7045_v10 }
 0xc2e   : > { %6613 = vmatpush3.msra.mxu0 %v7126_v1 }
 0xc2f   : > { %6628 = vmatprep.subr.mxu0 %v7045_v10 }
 0xcdd   : > { %v2707_v11 = vpop.f32.mrf.mxu1 }
 0xcde   : > { %v2708_v12 = vadd.f32 %v2707_v11, %v2637_v9 }
 0xcdf   : > { %v6583_v13 = vpop.f32.mrf.mxu1 }
 0xce0   : > { %v2713_v14 = vmul.f32 %v2708_v12, %v7319_v51  ;;  %v2800_v15 = vmul.f32 2.0, %v2708_v12 }
 0xce2   : > { %v2714_v16 = vadd.f32 %v2713_v14, %v7786_v33  ;;  %v2801_v17 = vadd.f32 %v2800_v15, %v2799_v58 }
 0xce4   : > { %v2715_v18 = vsub.f32 0.0, %v2714_v16  ;;  %v2716_v19 = vmul.f32 %v2714_v16, %v7121_v0 }
 0xce6   : > { %v2795_v20 = vadd.f32 %v2794_v7, %v2715_v18  ;;  %v2717_v21 = vsub.f32 %v7146_v5, %v2716_v19 }
 0xce7   : > { %v2787_v22 = vpop.f32.mrf.mxu0 }
 0xce8   : > { %v2796_v23 = vmul.f32 %v2795_v20, %v7397_v44  ;;  %v2788_v24 = vadd.f32 %v2787_v22, %v2717_v21 }
 0xce9   : > { %v6594_v25 = vpop.f32.mrf.mxu0 }
 0xcea   : > { %v2802_v26 = vadd.f32 %v2801_v17, %v2788_v24  ;;  %v7852_v27 = vadd.f32 %v2796_v23, %v7777_v31 }
 0xcec   : > { %v2803_v28 = vmul.f32 %v2802_v26, %v7397_v44  ;;  %6604 = vmatmul.mubr.msk.f32.vlgmr.msra.gmra.mxu1 %vm73_vm0, %v7852_v27 }
 0xced   : > { %6618 = vmatpush3.msra.mxu1 %v7141_v4  ;;  %6625 = vmatprep.mubr.msk.f32.mxu1 %vm7046_vm1, %v7045_v10 }
 0xcee   : > { %v7861_v29 = vadd.f32 %v2803_v28, %v7786_v33  ;;  %6619 = vmatprep.subr.mxu1 %v7045_v10 }
 0xcef   : > { %6620 = vmatpush3.msra.mxu1 %v7136_v3 }
 0xcf0   : > { %v2805_v30 = vsub.f32 0.0, %v7861_v29  ;;  %6621 = vmatprep.subr.mxu1 %v7045_v10  ;;  %v2806_v33 = vmul.f32 %v7861_v29, %v7121_v0 }
 0xcf1   : > { %6622 = vmatpush3.msra.mxu1 %v7131_v2 }
 0xcf2   : > { %v2881_v31 = vmul.f32 %v2805_v30, %v7328_v60  ;;  %6623 = vmatprep.subr.mxu1 %v7045_v10  ;;  %v2807_v34 = vsub.f32 %v7146_v5, %v2806_v33 }
 0xcf3   : > { %6624 = vmatpush3.msra.mxu1 %v7126_v1 }
 0xcf4   : > { %v2882_v32 = vadd.f32 %v2881_v31, %v7852_v27  ;;  %6639 = vmatprep.subr.mxu1 %v7045_v10 }
 0xcf6   : > { %6615 = vmatmul.mubr.msk.f32.vlgmr.msra.gmra.mxu0 %vm73_vm0, %v2882_v32 }
 0xcf7   : > { %6629 = vmatpush3.msra.mxu0 %v7141_v4  ;;  %6636 = vmatprep.mubr.msk.f32.mxu0 %vm7046_vm1, %v7045_v10 }
 0xcf8   : > { %6630 = vmatprep.subr.mxu0 %v7045_v10 }
 0xcf9   : > { %6631 = vmatpush3.msra.mxu0 %v7136_v3 }
 0xcfa   : > { %6632 = vmatprep.subr.mxu0 %v7045_v10 }
 0xcfb   : > { %6633 = vmatpush3.msra.mxu0 %v7131_v2 }
 0xcfc   : > { %6634 = vmatprep.subr.mxu0 %v7045_v10 }
 0xcfd   : > { %6635 = vmatpush3.msra.mxu0 %v7126_v1 }
 0xcfe   : > { %6650 = vmatprep.subr.mxu0 %v7045_v10 }
 0xdac   : > { %v2877_v35 = vpop.f32.mrf.mxu1 }
 0xdad   : > { %v2878_v36 = vadd.f32 %v2877_v35, %v2807_v34 }
 0xdae   : > { %v6605_v37 = vpop.f32.mrf.mxu1 }
 0xdaf   : > { %v2883_v38 = vmul.f32 %v2878_v36, %v7328_v60 }
 0xdb1   : > { %v2884_v39 = vadd.f32 %v2883_v38, %v7861_v29 }
 0xdb3   : > { %v2885_v40 = vsub.f32 0.0, %v2884_v39  ;;  %v2886_v41 = vmul.f32 %v2884_v39, %v7121_v0 }
 0xdb5   : > { %v2961_v42 = vmul.f32 %v2885_v40, %v7328_v60  ;;  %v2887_v43 = vsub.f32 %v7146_v5, %v2886_v41  ;;  %v3121_v52 = vmul.f32 2.0, %v2885_v40 }
 0xdb6   : > { %v2957_v45 = vpop.f32.mrf.mxu0 }
 0xdb7   : > { %v2962_v46 = vadd.f32 %v2961_v42, %v7852_v27  ;;  %v2958_v47 = vadd.f32 %v2957_v45, %v2887_v43  ;;  %v3122_v56 = vadd.f32 %v3121_v52, %v2805_v30 }
 0xdb8   : > { %v6616_v48 = vpop.f32.mrf.mxu0 }
 0xdb9   : > { %v2963_v49 = vmul.f32 %v2958_v47, %v7328_v60  ;;  %v3128_v50 = vmul.f32 2.0, %v2958_v47  ;;  %6626 = vmatmul.mubr.msk.f32.vlgmr.msra.gmra.mxu1 %vm73_vm0, %v2962_v46 }
 0xdba   : > { %6640 = vmatpush3.msra.mxu1 %v7141_v4  ;;  %6647 = vmatprep.mubr.msk.f32.mxu1 %vm7046_vm1, %v7045_v10 }
 0xdbb   : > { %v2964_v53 = vadd.f32 %v2963_v49, %v7861_v29  ;;  %v3129_v54 = vadd.f32 %v3128_v50, %v2878_v36  ;;  %6641 = vmatprep.subr.mxu1 %v7045_v10 }
 0xdbc   : > { %6642 = vmatpush3.msra.mxu1 %v7136_v3 }
 0xdbd   : > { %v2965_v55 = vsub.f32 0.0, %v2964_v53  ;;  %6643 = vmatprep.subr.mxu1 %v7045_v10  ;;  %v2966_v62 = vmul.f32 %v2964_v53, %v7121_v0 }
 0xdbe   : > { %6644 = vmatpush3.msra.mxu1 %v7131_v2 }
 0xdbf   : > { %v3041_v57 = vmul.f32 %v2965_v55, %v7319_v51  ;;  %v3123_v58 = vmul.f32 2.0, %v2965_v55  ;;  %6645 = vmatprep.subr.mxu1 %v7045_v10  ;;  %v2967_v63 = vsub.f32 %v7146_v5, %v2966_v62 }
 0xdc0   : > { %6646 = vmatpush3.msra.mxu1 %v7126_v1 }
 0xdc1   : > { %v3042_v59 = vadd.f32 %v3041_v57, %v7852_v27  ;;  %v3124_v61 = vadd.f32 %v3123_v58, %v3122_v56  ;;  %6661 = vmatprep.subr.mxu1 %v7045_v10 }
 0xdc3   : > { %6637 = vmatmul.mubr.msk.f32.vlgmr.msra.gmra.mxu0 %vm73_vm0, %v3042_v59 }
 0xdc4   : > { %6651 = vmatpush3.msra.mxu0 %v7141_v4  ;;  %6658 = vmatprep.mubr.msk.f32.mxu0 %vm7046_vm1, %v7045_v10 }
 0xdc5   : > { %6652 = vmatprep.subr.mxu0 %v7045_v10 }
 0xdc6   : > { %6653 = vmatpush3.msra.mxu0 %v7136_v3 }
 0xdc7   : > { %6654 = vmatprep.subr.mxu0 %v7045_v10 }
 0xdc8   : > { %6655 = vmatpush3.msra.mxu0 %v7131_v2 }
 0xdc9   : > { %6656 = vmatprep.subr.mxu0 %v7045_v10 }
 0xdca   : > { %6657 = vmatpush3.msra.mxu0 %v7126_v1 }
 0xdcb   : > { %6672 = vmatprep.subr.mxu0 %v7045_v10 }
 0xe79   : > { %v3037_v6 = vpop.f32.mrf.mxu1 }
 0xe7a   : > { %v3038_v7 = vadd.f32 %v3037_v6, %v2967_v63 }
 0xe7b   : > { %v6627_v8 = vpop.f32.mrf.mxu1 }
 0xe7c   : > { %v3043_v9 = vmul.f32 %v3038_v7, %v7319_v51  ;;  %v3130_v11 = vmul.f32 2.0, %v3038_v7 }
 0xe7e   : > { %v3044_v12 = vadd.f32 %v3043_v9, %v7861_v29  ;;  %v3131_v13 = vadd.f32 %v3130_v11, %v3129_v54 }
 0xe80   : > { %v3045_v14 = vsub.f32 0.0, %v3044_v12  ;;  %v3046_v15 = vmul.f32 %v3044_v12, %v7121_v0 }
 0xe82   : > { %v3125_v16 = vadd.f32 %v3124_v61, %v3045_v14  ;;  %v3047_v17 = vsub.f32 %v7146_v5, %v3046_v15 }
 0xe83   : > { %v3117_v18 = vpop.f32.mrf.mxu0 }
 0xe84   : > { %v3126_v19 = vmul.f32 %v3125_v16, %v7397_v44  ;;  %v3118_v20 = vadd.f32 %v3117_v18, %v3047_v17 }
 0xe85   : > { %v6638_v21 = vpop.f32.mrf.mxu0 }
 0xe86   : > { %v3132_v22 = vadd.f32 %v3131_v13, %v3118_v20  ;;  %v7927_v23 = vadd.f32 %v3126_v19, %v7852_v27 }
 0xe88   : > { %v3133_v24 = vmul.f32 %v3132_v22, %v7397_v44  ;;  %6648 = vmatmul.mubr.msk.f32.vlgmr.msra.gmra.mxu1 %vm73_vm0, %v7927_v23 }
 0xe89   : > { %6662 = vmatpush3.msra.mxu1 %v7141_v4  ;;  %6669 = vmatprep.mubr.msk.f32.mxu1 %vm7046_vm1, %v7045_v10 }
 0xe8a   : > { %v7936_v25 = vadd.f32 %v3133_v24, %v7861_v29  ;;  %6663 = vmatprep.subr.mxu1 %v7045_v10 }
 0xe8b   : > { %6664 = vmatpush3.msra.mxu1 %v7136_v3 }
 0xe8c   : > { %v3135_v26 = vsub.f32 0.0, %v7936_v25  ;;  %6665 = vmatprep.subr.mxu1 %v7045_v10  ;;  %v3136_v29 = vmul.f32 %v7936_v25, %v7121_v0 }
 0xe8d   : > { %6666 = vmatpush3.msra.mxu1 %v7131_v2 }
 0xe8e   : > { %v3211_v27 = vmul.f32 %v3135_v26, %v7328_v60  ;;  %6667 = vmatprep.subr.mxu1 %v7045_v10  ;;  %v3137_v30 = vsub.f32 %v7146_v5, %v3136_v29 }
 0xe8f   : > { %6668 = vmatpush3.msra.mxu1 %v7126_v1 }
 0xe90   : > { %v3212_v28 = vadd.f32 %v3211_v27, %v7927_v23  ;;  %6683 = vmatprep.subr.mxu1 %v7045_v10 }
 0xe92   : > { %6659 = vmatmul.mubr.msk.f32.vlgmr.msra.gmra.mxu0 %vm73_vm0, %v3212_v28 }
 0xe93   : > { %6673 = vmatpush3.msra.mxu0 %v7141_v4  ;;  %6680 = vmatprep.mubr.msk.f32.mxu0 %vm7046_vm1, %v7045_v10 }
 0xe94   : > { %6674 = vmatprep.subr.mxu0 %v7045_v10 }
 0xe95   : > { %6675 = vmatpush3.msra.mxu0 %v7136_v3 }
 0xe96   : > { %6676 = vmatprep.subr.mxu0 %v7045_v10 }
 0xe97   : > { %6677 = vmatpush3.msra.mxu0 %v7131_v2 }
 0xe98   : > { %6678 = vmatprep.subr.mxu0 %v7045_v10 }
 0xe99   : > { %6679 = vmatpush3.msra.mxu0 %v7126_v1 }
 0xe9a   : > { %6694 = vmatprep.subr.mxu0 %v7045_v10 }
 0xf48   : > { %v3207_v31 = vpop.f32.mrf.mxu1 }
 0xf49   : > { %v3208_v32 = vadd.f32 %v3207_v31, %v3137_v30 }
 0xf4a   : > { %v6649_v33 = vpop.f32.mrf.mxu1 }
 0xf4b   : > { %v3213_v34 = vmul.f32 %v3208_v32, %v7328_v60 }
 0xf4d   : > { %v3214_v35 = vadd.f32 %v3213_v34, %v7936_v25 }
 0xf4f   : > { %v3215_v36 = vsub.f32 0.0, %v3214_v35  ;;  %v3216_v37 = vmul.f32 %v3214_v35, %v7121_v0 }
 0xf51   : > { %v3291_v38 = vmul.f32 %v3215_v36, %v7328_v60  ;;  %v3217_v39 = vsub.f32 %v7146_v5, %v3216_v37  ;;  %v3451_v47 = vmul.f32 2.0, %v3215_v36 }
 0xf52   : > { %v3287_v40 = vpop.f32.mrf.mxu0 }
 0xf53   : > { %v3292_v41 = vadd.f32 %v3291_v38, %v7927_v23  ;;  %v3288_v42 = vadd.f32 %v3287_v40, %v3217_v39  ;;  %v3452_v52 = vadd.f32 %v3451_v47, %v3135_v26 }
 0xf54   : > { %v6660_v43 = vpop.f32.mrf.mxu0 }
 0xf55   : > { %v3293_v45 = vmul.f32 %v3288_v42, %v7328_v60  ;;  %v3458_v46 = vmul.f32 2.0, %v3288_v42  ;;  %6670 = vmatmul.mubr.msk.f32.vlgmr.msra.gmra.mxu1 %vm73_vm0, %v3292_v41 }
 0xf56   : > { %6684 = vmatpush3.msra.mxu1 %v7141_v4  ;;  %6691 = vmatprep.mubr.msk.f32.mxu1 %vm7046_vm1, %v7045_v10 }
 0xf57   : > { %v3294_v48 = vadd.f32 %v3293_v45, %v7936_v25  ;;  %v3459_v49 = vadd.f32 %v3458_v46, %v3208_v32  ;;  %6685 = vmatprep.subr.mxu1 %v7045_v10 }
 0xf58   : > { %6686 = vmatpush3.msra.mxu1 %v7136_v3 }
 0xf59   : > { %v3295_v50 = vsub.f32 0.0, %v3294_v48  ;;  %6687 = vmatprep.subr.mxu1 %v7045_v10  ;;  %v3296_v57 = vmul.f32 %v3294_v48, %v7121_v0 }
 0xf5a   : > { %6688 = vmatpush3.msra.mxu1 %v7131_v2 }
 0xf5b   : > { %v3371_v53 = vmul.f32 %v3295_v50, %v7319_v51  ;;  %v3453_v54 = vmul.f32 2.0, %v3295_v50  ;;  %6689 = vmatprep.subr.mxu1 %v7045_v10  ;;  %v3297_v58 = vsub.f32 %v7146_v5, %v3296_v57 }
 0xf5c   : > { %6690 = vmatpush3.msra.mxu1 %v7126_v1 }
 0xf5d   : > { %v3372_v55 = vadd.f32 %v3371_v53, %v7927_v23  ;;  %v3454_v56 = vadd.f32 %v3453_v54, %v3452_v52  ;;  %6705 = vmatprep.subr.mxu1 %v7045_v10 }
 0xf5f   : > { %6681 = vmatmul.mubr.msk.f32.vlgmr.msra.gmra.mxu0 %vm73_vm0, %v3372_v55 }
 0xf60   : > { %6695 = vmatpush3.msra.mxu0 %v7141_v4  ;;  %6702 = vmatprep.mubr.msk.f32.mxu0 %vm7046_vm1, %v7045_v10 }
 0xf61   : > { %6696 = vmatprep.subr.mxu0 %v7045_v10 }
 0xf62   : > { %6697 = vmatpush3.msra.mxu0 %v7136_v3 }
 0xf63   : > { %6698 = vmatprep.subr.mxu0 %v7045_v10 }
 0xf64   : > { %6699 = vmatpush3.msra.mxu0 %v7131_v2 }
 0xf65   : > { %6700 = vmatprep.subr.mxu0 %v7045_v10 }
 0xf66   : > { %6701 = vmatpush3.msra.mxu0 %v7126_v1 }
 0xf67   : > { %6716 = vmatprep.subr.mxu0 %v7045_v10 }
0x1015   : > { %v3367_v59 = vpop.f32.mrf.mxu1 }
0x1016   : > { %v3368_v61 = vadd.f32 %v3367_v59, %v3297_v58 }
0x1017   : > { %v6671_v62 = vpop.f32.mrf.mxu1 }
0x1018   : > { %v3373_v63 = vmul.f32 %v3368_v61, %v7319_v51  ;;  %v3460_v6 = vmul.f32 2.0, %v3368_v61 }
0x101a   : > { %v3374_v7 = vadd.f32 %v3373_v63, %v7936_v25  ;;  %v3461_v8 = vadd.f32 %v3460_v6, %v3459_v49 }
0x101c   : > { %v3375_v9 = vsub.f32 0.0, %v3374_v7  ;;  %v3376_v11 = vmul.f32 %v3374_v7, %v7121_v0 }
0x101e   : > { %v3455_v12 = vadd.f32 %v3454_v56, %v3375_v9  ;;  %v3377_v13 = vsub.f32 %v7146_v5, %v3376_v11 }
0x101f   : > { %v3447_v14 = vpop.f32.mrf.mxu0 }
0x1020   : > { %v3456_v15 = vmul.f32 %v3455_v12, %v7397_v44  ;;  %v3448_v16 = vadd.f32 %v3447_v14, %v3377_v13 }
0x1021   : > { %v6682_v17 = vpop.f32.mrf.mxu0 }
0x1022   : > { %v3462_v18 = vadd.f32 %v3461_v8, %v3448_v16  ;;  %v8002_v19 = vadd.f32 %v3456_v15, %v7927_v23 }
0x1024   : > { %v3463_v20 = vmul.f32 %v3462_v18, %v7397_v44  ;;  %6692 = vmatmul.mubr.msk.f32.vlgmr.msra.gmra.mxu1 %vm73_vm0, %v8002_v19 }
0x1025   : > { %6706 = vmatpush3.msra.mxu1 %v7141_v4  ;;  %6713 = vmatprep.mubr.msk.f32.mxu1 %vm7046_vm1, %v7045_v10 }
0x1026   : > { %v8011_v21 = vadd.f32 %v3463_v20, %v7936_v25  ;;  %6707 = vmatprep.subr.mxu1 %v7045_v10 }
0x1027   : > { %6708 = vmatpush3.msra.mxu1 %v7136_v3 }
0x1028   : > { %v3465_v22 = vsub.f32 0.0, %v8011_v21  ;;  %6709 = vmatprep.subr.mxu1 %v7045_v10  ;;  %v3466_v25 = vmul.f32 %v8011_v21, %v7121_v0 }
0x1029   : > { %6710 = vmatpush3.msra.mxu1 %v7131_v2 }
0x102a   : > { %v3541_v23 = vmul.f32 %v3465_v22, %v7328_v60  ;;  %6711 = vmatprep.subr.mxu1 %v7045_v10  ;;  %v3467_v26 = vsub.f32 %v7146_v5, %v3466_v25 }
0x102b   : > { %6712 = vmatpush3.msra.mxu1 %v7126_v1 }
0x102c   : > { %v3542_v24 = vadd.f32 %v3541_v23, %v8002_v19  ;;  %6727 = vmatprep.subr.mxu1 %v7045_v10 }
0x102e   : > { %6703 = vmatmul.mubr.msk.f32.vlgmr.msra.gmra.mxu0 %vm73_vm0, %v3542_v24 }
0x102f   : > { %6717 = vmatpush3.msra.mxu0 %v7141_v4  ;;  %6724 = vmatprep.mubr.msk.f32.mxu0 %vm7046_vm1, %v7045_v10 }
0x1030   : > { %6718 = vmatprep.subr.mxu0 %v7045_v10 }
0x1031   : > { %6719 = vmatpush3.msra.mxu0 %v7136_v3 }
0x1032   : > { %6720 = vmatprep.subr.mxu0 %v7045_v10 }
0x1033   : > { %6721 = vmatpush3.msra.mxu0 %v7131_v2 }
0x1034   : > { %6722 = vmatprep.subr.mxu0 %v7045_v10 }
0x1035   : > { %6723 = vmatpush3.msra.mxu0 %v7126_v1 }
0x1036   : > { %6738 = vmatprep.subr.mxu0 %v7045_v10 }
0x10e4   : > { %v3537_v27 = vpop.f32.mrf.mxu1 }
0x10e5   : > { %v3538_v28 = vadd.f32 %v3537_v27, %v3467_v26 }
0x10e6   : > { %v6693_v29 = vpop.f32.mrf.mxu1 }
0x10e7   : > { %v3543_v30 = vmul.f32 %v3538_v28, %v7328_v60 }
0x10e9   : > { %v3544_v31 = vadd.f32 %v3543_v30, %v8011_v21 }
0x10eb   : > { %v3545_v32 = vsub.f32 0.0, %v3544_v31  ;;  %v3546_v33 = vmul.f32 %v3544_v31, %v7121_v0 }
0x10ed   : > { %v3621_v34 = vmul.f32 %v3545_v32, %v7328_v60  ;;  %v3547_v35 = vsub.f32 %v7146_v5, %v3546_v33  ;;  %v3781_v42 = vmul.f32 2.0, %v3545_v32 }
0x10ee   : > { %v3617_v36 = vpop.f32.mrf.mxu0 }
0x10ef   : > { %v3622_v37 = vadd.f32 %v3621_v34, %v8002_v19  ;;  %v3618_v38 = vadd.f32 %v3617_v36, %v3547_v35  ;;  %v3782_v47 = vadd.f32 %v3781_v42, %v3465_v22 }
0x10f0   : > { %v6704_v39 = vpop.f32.mrf.mxu0 }
0x10f1   : > { %v3623_v40 = vmul.f32 %v3618_v38, %v7328_v60  ;;  %v3788_v41 = vmul.f32 2.0, %v3618_v38  ;;  %6714 = vmatmul.mubr.msk.f32.vlgmr.msra.gmra.mxu1 %vm73_vm0, %v3622_v37 }
0x10f2   : > { %6728 = vmatpush3.msra.mxu1 %v7141_v4  ;;  %6735 = vmatprep.mubr.msk.f32.mxu1 %vm7046_vm1, %v7045_v10 }
0x10f3   : > { %v3624_v43 = vadd.f32 %v3623_v40, %v8011_v21  ;;  %v3789_v45 = vadd.f32 %v3788_v41, %v3538_v28  ;;  %6729 = vmatprep.subr.mxu1 %v7045_v10 }
0x10f4   : > { %6730 = vmatpush3.msra.mxu1 %v7136_v3 }
0x10f5   : > { %v3625_v46 = vsub.f32 0.0, %v3624_v43  ;;  %6731 = vmatprep.subr.mxu1 %v7045_v10  ;;  %v3626_v53 = vmul.f32 %v3624_v43, %v7121_v0 }
0x10f6   : > { %6732 = vmatpush3.msra.mxu1 %v7131_v2 }
0x10f7   : > { %v3701_v48 = vmul.f32 %v3625_v46, %v7319_v51  ;;  %v3783_v49 = vmul.f32 2.0, %v3625_v46  ;;  %6733 = vmatprep.subr.mxu1 %v7045_v10  ;;  %v3627_v54 = vsub.f32 %v7146_v5, %v3626_v53 }
0x10f8   : > { %6734 = vmatpush3.msra.mxu1 %v7126_v1 }
0x10f9   : > { %v3702_v50 = vadd.f32 %v3701_v48, %v8002_v19  ;;  %v3784_v52 = vadd.f32 %v3783_v49, %v3782_v47  ;;  %6749 = vmatprep.subr.mxu1 %v7045_v10 }
0x10fb   : > { %6725 = vmatmul.mubr.msk.f32.vlgmr.msra.gmra.mxu0 %vm73_vm0, %v3702_v50 }
0x10fc   : > { %6739 = vmatpush3.msra.mxu0 %v7141_v4  ;;  %6746 = vmatprep.mubr.msk.f32.mxu0 %vm7046_vm1, %v7045_v10 }
0x10fd   : > { %6740 = vmatprep.subr.mxu0 %v7045_v10 }
0x10fe   : > { %6741 = vmatpush3.msra.mxu0 %v7136_v3 }
0x10ff   : > { %6742 = vmatprep.subr.mxu0 %v7045_v10 }
0x1100   : > { %6743 = vmatpush3.msra.mxu0 %v7131_v2 }
0x1101   : > { %6744 = vmatprep.subr.mxu0 %v7045_v10 }
0x1102   : > { %6745 = vmatpush3.msra.mxu0 %v7126_v1 }
0x1103   : > { %6760 = vmatprep.subr.mxu0 %v7045_v10 }
0x11b1   : > { %v3697_v55 = vpop.f32.mrf.mxu1 }
0x11b2   : > { %v3698_v56 = vadd.f32 %v3697_v55, %v3627_v54 }
0x11b3   : > { %v6715_v57 = vpop.f32.mrf.mxu1 }
0x11b4   : > { %v3703_v58 = vmul.f32 %v3698_v56, %v7319_v51  ;;  %v3790_v59 = vmul.f32 2.0, %v3698_v56 }
0x11b6   : > { %v3704_v61 = vadd.f32 %v3703_v58, %v8011_v21  ;;  %v3791_v62 = vadd.f32 %v3790_v59, %v3789_v45 }
0x11b8   : > { %v3705_v63 = vsub.f32 0.0, %v3704_v61  ;;  %v3706_v6 = vmul.f32 %v3704_v61, %v7121_v0 }
0x11ba   : > { %v3785_v7 = vadd.f32 %v3784_v52, %v3705_v63  ;;  %v3707_v8 = vsub.f32 %v7146_v5, %v3706_v6 }
0x11bb   : > { %v3777_v9 = vpop.f32.mrf.mxu0 }
0x11bc   : > { %v3786_v11 = vmul.f32 %v3785_v7, %v7397_v44  ;;  %v3778_v12 = vadd.f32 %v3777_v9, %v3707_v8 }
0x11bd   : > { %v6726_v13 = vpop.f32.mrf.mxu0 }
0x11be   : > { %v3792_v14 = vadd.f32 %v3791_v62, %v3778_v12  ;;  %v8077_v15 = vadd.f32 %v3786_v11, %v8002_v19 }
0x11c0   : > { %v3793_v16 = vmul.f32 %v3792_v14, %v7397_v44  ;;  %6736 = vmatmul.mubr.msk.f32.vlgmr.msra.gmra.mxu1 %vm73_vm0, %v8077_v15 }
0x11c1   : > { %6750 = vmatpush3.msra.mxu1 %v7141_v4  ;;  %6757 = vmatprep.mubr.msk.f32.mxu1 %vm7046_vm1, %v7045_v10 }
0x11c2   : > { %v8086_v17 = vadd.f32 %v3793_v16, %v8011_v21  ;;  %6751 = vmatprep.subr.mxu1 %v7045_v10 }
0x11c3   : > { %6752 = vmatpush3.msra.mxu1 %v7136_v3 }
0x11c4   : > { %v3795_v18 = vsub.f32 0.0, %v8086_v17  ;;  %6753 = vmatprep.subr.mxu1 %v7045_v10  ;;  %v3796_v21 = vmul.f32 %v8086_v17, %v7121_v0 }
0x11c5   : > { %6754 = vmatpush3.msra.mxu1 %v7131_v2 }
0x11c6   : > { %v3871_v19 = vmul.f32 %v3795_v18, %v7328_v60  ;;  %6755 = vmatprep.subr.mxu1 %v7045_v10  ;;  %v3797_v22 = vsub.f32 %v7146_v5, %v3796_v21 }
0x11c7   : > { %6756 = vmatpush3.msra.mxu1 %v7126_v1 }
0x11c8   : > { %v3872_v20 = vadd.f32 %v3871_v19, %v8077_v15  ;;  %6771 = vmatprep.subr.mxu1 %v7045_v10 }
0x11ca   : > { %6747 = vmatmul.mubr.msk.f32.vlgmr.msra.gmra.mxu0 %vm73_vm0, %v3872_v20 }
0x11cb   : > { %6761 = vmatpush3.msra.mxu0 %v7141_v4  ;;  %6768 = vmatprep.mubr.msk.f32.mxu0 %vm7046_vm1, %v7045_v10 }
0x11cc   : > { %6762 = vmatprep.subr.mxu0 %v7045_v10 }
0x11cd   : > { %6763 = vmatpush3.msra.mxu0 %v7136_v3 }
0x11ce   : > { %6764 = vmatprep.subr.mxu0 %v7045_v10 }
0x11cf   : > { %6765 = vmatpush3.msra.mxu0 %v7131_v2 }
0x11d0   : > { %6766 = vmatprep.subr.mxu0 %v7045_v10 }
0x11d1   : > { %6767 = vmatpush3.msra.mxu0 %v7126_v1 }
0x11d2   : > { %6782 = vmatprep.subr.mxu0 %v7045_v10 }
0x1280   : > { %v3867_v23 = vpop.f32.mrf.mxu1 }
0x1281   : > { %v3868_v24 = vadd.f32 %v3867_v23, %v3797_v22 }
0x1282   : > { %v6737_v25 = vpop.f32.mrf.mxu1 }
0x1283   : > { %v3873_v26 = vmul.f32 %v3868_v24, %v7328_v60 }
0x1285   : > { %v3874_v27 = vadd.f32 %v3873_v26, %v8086_v17 }
0x1287   : > { %v3875_v28 = vsub.f32 0.0, %v3874_v27  ;;  %v3876_v29 = vmul.f32 %v3874_v27, %v7121_v0 }
0x1289   : > { %v3951_v30 = vmul.f32 %v3875_v28, %v7328_v60  ;;  %v3877_v31 = vsub.f32 %v7146_v5, %v3876_v29  ;;  %v4111_v38 = vmul.f32 2.0, %v3875_v28 }
0x128a   : > { %v3947_v32 = vpop.f32.mrf.mxu0 }
0x128b   : > { %v3952_v33 = vadd.f32 %v3951_v30, %v8077_v15  ;;  %v3948_v34 = vadd.f32 %v3947_v32, %v3877_v31  ;;  %v4112_v42 = vadd.f32 %v4111_v38, %v3795_v18 }
0x128c   : > { %v6748_v35 = vpop.f32.mrf.mxu0 }
0x128d   : > { %v3953_v36 = vmul.f32 %v3948_v34, %v7328_v60  ;;  %v4118_v37 = vmul.f32 2.0, %v3948_v34  ;;  %6758 = vmatmul.mubr.msk.f32.vlgmr.msra.gmra.mxu1 %vm73_vm0, %v3952_v33 }
0x128e   : > { %6772 = vmatpush3.msra.mxu1 %v7141_v4  ;;  %6779 = vmatprep.mubr.msk.f32.mxu1 %vm7046_vm1, %v7045_v10 }
0x128f   : > { %v3954_v39 = vadd.f32 %v3953_v36, %v8086_v17  ;;  %v4119_v40 = vadd.f32 %v4118_v37, %v3868_v24  ;;  %6773 = vmatprep.subr.mxu1 %v7045_v10 }
0x1290   : > { %6774 = vmatpush3.msra.mxu1 %v7136_v3 }
0x1291   : > { %v3955_v41 = vsub.f32 0.0, %v3954_v39  ;;  %6775 = vmatprep.subr.mxu1 %v7045_v10  ;;  %v3956_v48 = vmul.f32 %v3954_v39, %v7121_v0 }
0x1292   : > { %6776 = vmatpush3.msra.mxu1 %v7131_v2 }
0x1293   : > { %v4031_v43 = vmul.f32 %v3955_v41, %v7319_v51  ;;  %v4113_v45 = vmul.f32 2.0, %v3955_v41  ;;  %6777 = vmatprep.subr.mxu1 %v7045_v10  ;;  %v3957_v49 = vsub.f32 %v7146_v5, %v3956_v48 }
0x1294   : > { %6778 = vmatpush3.msra.mxu1 %v7126_v1 }
0x1295   : > { %v4032_v46 = vadd.f32 %v4031_v43, %v8077_v15  ;;  %v4114_v47 = vadd.f32 %v4113_v45, %v4112_v42  ;;  %6793 = vmatprep.subr.mxu1 %v7045_v10 }
0x1297   : > { %6769 = vmatmul.mubr.msk.f32.vlgmr.msra.gmra.mxu0 %vm73_vm0, %v4032_v46 }
0x1298   : > { %6783 = vmatpush3.msra.mxu0 %v7141_v4  ;;  %6790 = vmatprep.mubr.msk.f32.mxu0 %vm7046_vm1, %v7045_v10 }
0x1299   : > { %6784 = vmatprep.subr.mxu0 %v7045_v10 }
0x129a   : > { %6785 = vmatpush3.msra.mxu0 %v7136_v3 }
0x129b   : > { %6786 = vmatprep.subr.mxu0 %v7045_v10 }
0x129c   : > { %6787 = vmatpush3.msra.mxu0 %v7131_v2 }
0x129d   : > { %6788 = vmatprep.subr.mxu0 %v7045_v10 }
0x129e   : > { %6789 = vmatpush3.msra.mxu0 %v7126_v1 }
0x129f   : > { %6804 = vmatprep.subr.mxu0 %v7045_v10 }
0x134d   : > { %v4027_v50 = vpop.f32.mrf.mxu1 }
0x134e   : > { %v4028_v52 = vadd.f32 %v4027_v50, %v3957_v49 }
0x134f   : > { %v6759_v53 = vpop.f32.mrf.mxu1 }
0x1350   : > { %v4033_v54 = vmul.f32 %v4028_v52, %v7319_v51  ;;  %v4120_v55 = vmul.f32 2.0, %v4028_v52 }
0x1352   : > { %v4034_v56 = vadd.f32 %v4033_v54, %v8086_v17  ;;  %v4121_v57 = vadd.f32 %v4120_v55, %v4119_v40 }
0x1354   : > { %v4035_v58 = vsub.f32 0.0, %v4034_v56  ;;  %v4036_v59 = vmul.f32 %v4034_v56, %v7121_v0 }
0x1356   : > { %v4115_v61 = vadd.f32 %v4114_v47, %v4035_v58  ;;  %v4037_v62 = vsub.f32 %v7146_v5, %v4036_v59 }
0x1357   : > { %v4107_v63 = vpop.f32.mrf.mxu0 }
0x1358   : > { %v4116_v6 = vmul.f32 %v4115_v61, %v7397_v44  ;;  %v4108_v7 = vadd.f32 %v4107_v63, %v4037_v62 }
0x1359   : > { %v6770_v8 = vpop.f32.mrf.mxu0 }
0x135a   : > { %v4122_v9 = vadd.f32 %v4121_v57, %v4108_v7  ;;  %v8152_v11 = vadd.f32 %v4116_v6, %v8077_v15 }
0x135c   : > { %v4123_v12 = vmul.f32 %v4122_v9, %v7397_v44  ;;  %6780 = vmatmul.mubr.msk.f32.vlgmr.msra.gmra.mxu1 %vm73_vm0, %v8152_v11 }
0x135d   : > { %6794 = vmatpush3.msra.mxu1 %v7141_v4  ;;  %6801 = vmatprep.mubr.msk.f32.mxu1 %vm7046_vm1, %v7045_v10 }
0x135e   : > { %v8161_v13 = vadd.f32 %v4123_v12, %v8086_v17  ;;  %6795 = vmatprep.subr.mxu1 %v7045_v10 }
0x135f   : > { %6796 = vmatpush3.msra.mxu1 %v7136_v3 }
0x1360   : > { %v4125_v14 = vsub.f32 0.0, %v8161_v13  ;;  %6797 = vmatprep.subr.mxu1 %v7045_v10  ;;  %v4126_v17 = vmul.f32 %v8161_v13, %v7121_v0 }
0x1361   : > { %6798 = vmatpush3.msra.mxu1 %v7131_v2 }
0x1362   : > { %v4201_v15 = vmul.f32 %v4125_v14, %v7328_v60  ;;  %6799 = vmatprep.subr.mxu1 %v7045_v10  ;;  %v4127_v18 = vsub.f32 %v7146_v5, %v4126_v17 }
0x1363   : > { %6800 = vmatpush3.msra.mxu1 %v7126_v1 }
0x1364   : > { %v4202_v16 = vadd.f32 %v4201_v15, %v8152_v11  ;;  %6815 = vmatprep.subr.mxu1 %v7045_v10 }
0x1366   : > { %6791 = vmatmul.mubr.msk.f32.vlgmr.msra.gmra.mxu0 %vm73_vm0, %v4202_v16 }
0x1367   : > { %6805 = vmatpush3.msra.mxu0 %v7141_v4  ;;  %6812 = vmatprep.mubr.msk.f32.mxu0 %vm7046_vm1, %v7045_v10 }
0x1368   : > { %6806 = vmatprep.subr.mxu0 %v7045_v10 }
0x1369   : > { %6807 = vmatpush3.msra.mxu0 %v7136_v3 }
0x136a   : > { %6808 = vmatprep.subr.mxu0 %v7045_v10 }
0x136b   : > { %6809 = vmatpush3.msra.mxu0 %v7131_v2 }
0x136c   : > { %6810 = vmatprep.subr.mxu0 %v7045_v10 }
0x136d   : > { %6811 = vmatpush3.msra.mxu0 %v7126_v1 }
0x136e   : > { %6826 = vmatprep.subr.mxu0 %v7045_v10 }
0x141c   : > { %v4197_v19 = vpop.f32.mrf.mxu1 }
0x141d   : > { %v4198_v20 = vadd.f32 %v4197_v19, %v4127_v18 }
0x141e   : > { %v6781_v21 = vpop.f32.mrf.mxu1 }
0x141f   : > { %v4203_v22 = vmul.f32 %v4198_v20, %v7328_v60 }
0x1421   : > { %v4204_v23 = vadd.f32 %v4203_v22, %v8161_v13 }
0x1423   : > { %v4205_v24 = vsub.f32 0.0, %v4204_v23  ;;  %v4206_v25 = vmul.f32 %v4204_v23, %v7121_v0 }
0x1425   : > { %v4281_v26 = vmul.f32 %v4205_v24, %v7328_v60  ;;  %v4207_v27 = vsub.f32 %v7146_v5, %v4206_v25  ;;  %v4441_v34 = vmul.f32 2.0, %v4205_v24 }
0x1426   : > { %v4277_v28 = vpop.f32.mrf.mxu0 }
0x1427   : > { %v4282_v29 = vadd.f32 %v4281_v26, %v8152_v11  ;;  %v4278_v30 = vadd.f32 %v4277_v28, %v4207_v27  ;;  %v4442_v38 = vadd.f32 %v4441_v34, %v4125_v14 }
0x1428   : > { %v6792_v31 = vpop.f32.mrf.mxu0 }
0x1429   : > { %v4283_v32 = vmul.f32 %v4278_v30, %v7328_v60  ;;  %v4448_v33 = vmul.f32 2.0, %v4278_v30  ;;  %6802 = vmatmul.mubr.msk.f32.vlgmr.msra.gmra.mxu1 %vm73_vm0, %v4282_v29 }
0x142a   : > { %6816 = vmatpush3.msra.mxu1 %v7141_v4  ;;  %6823 = vmatprep.mubr.msk.f32.mxu1 %vm7046_vm1, %v7045_v10 }
0x142b   : > { %v4284_v35 = vadd.f32 %v4283_v32, %v8161_v13  ;;  %v4449_v36 = vadd.f32 %v4448_v33, %v4198_v20  ;;  %6817 = vmatprep.subr.mxu1 %v7045_v10 }
0x142c   : > { %6818 = vmatpush3.msra.mxu1 %v7136_v3 }
0x142d   : > { %v4285_v37 = vsub.f32 0.0, %v4284_v35  ;;  %6819 = vmatprep.subr.mxu1 %v7045_v10  ;;  %v4286_v43 = vmul.f32 %v4284_v35, %v7121_v0 }
0x142e   : > { %6820 = vmatpush3.msra.mxu1 %v7131_v2 }
0x142f   : > { %v4361_v39 = vmul.f32 %v4285_v37, %v7319_v51  ;;  %v4443_v40 = vmul.f32 2.0, %v4285_v37  ;;  %6821 = vmatprep.subr.mxu1 %v7045_v10  ;;  %v4287_v45 = vsub.f32 %v7146_v5, %v4286_v43 }
0x1430   : > { %6822 = vmatpush3.msra.mxu1 %v7126_v1 }
0x1431   : > { %v4362_v41 = vadd.f32 %v4361_v39, %v8152_v11  ;;  %v4444_v42 = vadd.f32 %v4443_v40, %v4442_v38  ;;  %6837 = vmatprep.subr.mxu1 %v7045_v10 }
0x1433   : > { %6813 = vmatmul.mubr.msk.f32.vlgmr.msra.gmra.mxu0 %vm73_vm0, %v4362_v41 }
0x1434   : > { %6827 = vmatpush3.msra.mxu0 %v7141_v4  ;;  %6834 = vmatprep.mubr.msk.f32.mxu0 %vm7046_vm1, %v7045_v10 }
0x1435   : > { %6828 = vmatprep.subr.mxu0 %v7045_v10 }
0x1436   : > { %6829 = vmatpush3.msra.mxu0 %v7136_v3 }
0x1437   : > { %6830 = vmatprep.subr.mxu0 %v7045_v10 }
0x1438   : > { %6831 = vmatpush3.msra.mxu0 %v7131_v2 }
0x1439   : > { %6832 = vmatprep.subr.mxu0 %v7045_v10 }
0x143a   : > { %6833 = vmatpush3.msra.mxu0 %v7126_v1 }
0x143b   : > { %6848 = vmatprep.subr.mxu0 %v7045_v10 }
0x14e9   : > { %v4357_v46 = vpop.f32.mrf.mxu1 }
0x14ea   : > { %v4358_v47 = vadd.f32 %v4357_v46, %v4287_v45 }
0x14eb   : > { %v6803_v48 = vpop.f32.mrf.mxu1 }
0x14ec   : > { %v4363_v49 = vmul.f32 %v4358_v47, %v7319_v51  ;;  %v4450_v50 = vmul.f32 2.0, %v4358_v47 }
0x14ee   : > { %v4364_v52 = vadd.f32 %v4363_v49, %v8161_v13  ;;  %v4451_v53 = vadd.f32 %v4450_v50, %v4449_v36 }
0x14f0   : > { %v4365_v54 = vsub.f32 0.0, %v4364_v52  ;;  %v4366_v55 = vmul.f32 %v4364_v52, %v7121_v0 }
0x14f2   : > { %v4445_v56 = vadd.f32 %v4444_v42, %v4365_v54  ;;  %v4367_v57 = vsub.f32 %v7146_v5, %v4366_v55 }
0x14f3   : > { %v4437_v58 = vpop.f32.mrf.mxu0 }
0x14f4   : > { %v4446_v59 = vmul.f32 %v4445_v56, %v7397_v44  ;;  %v4438_v61 = vadd.f32 %v4437_v58, %v4367_v57 }
0x14f5   : > { %v6814_v62 = vpop.f32.mrf.mxu0 }
0x14f6   : > { %v4452_v63 = vadd.f32 %v4451_v53, %v4438_v61  ;;  %v8227_v6 = vadd.f32 %v4446_v59, %v8152_v11 }
0x14f8   : > { %v4453_v7 = vmul.f32 %v4452_v63, %v7397_v44  ;;  %6824 = vmatmul.mubr.msk.f32.vlgmr.msra.gmra.mxu1 %vm73_vm0, %v8227_v6 }
0x14f9   : > { %6838 = vmatpush3.msra.mxu1 %v7141_v4  ;;  %6845 = vmatprep.mubr.msk.f32.mxu1 %vm7046_vm1, %v7045_v10 }
0x14fa   : > { %v8236_v8 = vadd.f32 %v4453_v7, %v8161_v13  ;;  %6839 = vmatprep.subr.mxu1 %v7045_v10 }
0x14fb   : > { %6840 = vmatpush3.msra.mxu1 %v7136_v3 }
0x14fc   : > { %v4455_v9 = vsub.f32 0.0, %v8236_v8  ;;  %6841 = vmatprep.subr.mxu1 %v7045_v10  ;;  %v4456_v13 = vmul.f32 %v8236_v8, %v7121_v0 }
0x14fd   : > { %6842 = vmatpush3.msra.mxu1 %v7131_v2 }
0x14fe   : > { %v4531_v11 = vmul.f32 %v4455_v9, %v7328_v60  ;;  %6843 = vmatprep.subr.mxu1 %v7045_v10  ;;  %v4457_v14 = vsub.f32 %v7146_v5, %v4456_v13 }
0x14ff   : > { %6844 = vmatpush3.msra.mxu1 %v7126_v1 }
0x1500   : > { %v4532_v12 = vadd.f32 %v4531_v11, %v8227_v6  ;;  %6859 = vmatprep.subr.mxu1 %v7045_v10 }
0x1502   : > { %6835 = vmatmul.mubr.msk.f32.vlgmr.msra.gmra.mxu0 %vm73_vm0, %v4532_v12 }
0x1503   : > { %6849 = vmatpush3.msra.mxu0 %v7141_v4  ;;  %6856 = vmatprep.mubr.msk.f32.mxu0 %vm7046_vm1, %v7045_v10 }
0x1504   : > { %6850 = vmatprep.subr.mxu0 %v7045_v10 }
0x1505   : > { %6851 = vmatpush3.msra.mxu0 %v7136_v3 }
0x1506   : > { %6852 = vmatprep.subr.mxu0 %v7045_v10 }
0x1507   : > { %6853 = vmatpush3.msra.mxu0 %v7131_v2 }
0x1508   : > { %6854 = vmatprep.subr.mxu0 %v7045_v10 }
0x1509   : > { %6855 = vmatpush3.msra.mxu0 %v7126_v1 }
0x150a   : > { %6870 = vmatprep.subr.mxu0 %v7045_v10 }
0x15b8   : > { %v4527_v15 = vpop.f32.mrf.mxu1 }
0x15b9   : > { %v4528_v16 = vadd.f32 %v4527_v15, %v4457_v14 }
0x15ba   : > { %v6825_v17 = vpop.f32.mrf.mxu1 }
0x15bb   : > { %v4533_v18 = vmul.f32 %v4528_v16, %v7328_v60 }
0x15bd   : > { %v4534_v19 = vadd.f32 %v4533_v18, %v8236_v8 }
0x15bf   : > { %v4535_v20 = vsub.f32 0.0, %v4534_v19  ;;  %v4536_v21 = vmul.f32 %v4534_v19, %v7121_v0 }
0x15c1   : > { %v4611_v22 = vmul.f32 %v4535_v20, %v7328_v60  ;;  %v4537_v23 = vsub.f32 %v7146_v5, %v4536_v21  ;;  %v4771_v30 = vmul.f32 2.0, %v4535_v20 }
0x15c2   : > { %v4607_v24 = vpop.f32.mrf.mxu0 }
0x15c3   : > { %v4612_v25 = vadd.f32 %v4611_v22, %v8227_v6  ;;  %v4608_v26 = vadd.f32 %v4607_v24, %v4537_v23  ;;  %v4772_v34 = vadd.f32 %v4771_v30, %v4455_v9 }
0x15c4   : > { %v6836_v27 = vpop.f32.mrf.mxu0 }
0x15c5   : > { %v4613_v28 = vmul.f32 %v4608_v26, %v7328_v60  ;;  %v4778_v29 = vmul.f32 2.0, %v4608_v26  ;;  %6846 = vmatmul.mubr.msk.f32.vlgmr.msra.gmra.mxu1 %vm73_vm0, %v4612_v25 }
0x15c6   : > { %6860 = vmatpush3.msra.mxu1 %v7141_v4  ;;  %6867 = vmatprep.mubr.msk.f32.mxu1 %vm7046_vm1, %v7045_v10 }
0x15c7   : > { %v4614_v31 = vadd.f32 %v4613_v28, %v8236_v8  ;;  %v4779_v32 = vadd.f32 %v4778_v29, %v4528_v16  ;;  %6861 = vmatprep.subr.mxu1 %v7045_v10 }
0x15c8   : > { %6862 = vmatpush3.msra.mxu1 %v7136_v3 }
0x15c9   : > { %v4615_v33 = vsub.f32 0.0, %v4614_v31  ;;  %6863 = vmatprep.subr.mxu1 %v7045_v10  ;;  %v4616_v39 = vmul.f32 %v4614_v31, %v7121_v0 }
0x15ca   : > { %6864 = vmatpush3.msra.mxu1 %v7131_v2 }
0x15cb   : > { %v4691_v35 = vmul.f32 %v4615_v33, %v7319_v51  ;;  %v4773_v36 = vmul.f32 2.0, %v4615_v33  ;;  %6865 = vmatprep.subr.mxu1 %v7045_v10  ;;  %v4617_v40 = vsub.f32 %v7146_v5, %v4616_v39 }
0x15cc   : > { %6866 = vmatpush3.msra.mxu1 %v7126_v1 }
0x15cd   : > { %v4692_v37 = vadd.f32 %v4691_v35, %v8227_v6  ;;  %v4774_v38 = vadd.f32 %v4773_v36, %v4772_v34  ;;  %6881 = vmatprep.subr.mxu1 %v7045_v10 }
0x15cf   : > { %6857 = vmatmul.mubr.msk.f32.vlgmr.msra.gmra.mxu0 %vm73_vm0, %v4692_v37 }
0x15d0   : > { %6871 = vmatpush3.msra.mxu0 %v7141_v4  ;;  %6878 = vmatprep.mubr.msk.f32.mxu0 %vm7046_vm1, %v7045_v10 }
0x15d1   : > { %6872 = vmatprep.subr.mxu0 %v7045_v10 }
0x15d2   : > { %6873 = vmatpush3.msra.mxu0 %v7136_v3 }
0x15d3   : > { %6874 = vmatprep.subr.mxu0 %v7045_v10 }
0x15d4   : > { %6875 = vmatpush3.msra.mxu0 %v7131_v2 }
0x15d5   : > { %6876 = vmatprep.subr.mxu0 %v7045_v10 }
0x15d6   : > { %6877 = vmatpush3.msra.mxu0 %v7126_v1 }
0x15d7   : > { %6892 = vmatprep.subr.mxu0 %v7045_v10 }
0x1685   : > { %v4687_v41 = vpop.f32.mrf.mxu1 }
0x1686   : > { %v4688_v42 = vadd.f32 %v4687_v41, %v4617_v40 }
0x1687   : > { %v6847_v43 = vpop.f32.mrf.mxu1 }
0x1688   : > { %v4693_v45 = vmul.f32 %v4688_v42, %v7319_v51  ;;  %v4780_v46 = vmul.f32 2.0, %v4688_v42 }
0x168a   : > { %v4694_v47 = vadd.f32 %v4693_v45, %v8236_v8  ;;  %v4781_v48 = vadd.f32 %v4780_v46, %v4779_v32 }
0x168c   : > { %v4695_v49 = vsub.f32 0.0, %v4694_v47  ;;  %v4696_v50 = vmul.f32 %v4694_v47, %v7121_v0 }
0x168e   : > { %v4775_v52 = vadd.f32 %v4774_v38, %v4695_v49  ;;  %v4697_v53 = vsub.f32 %v7146_v5, %v4696_v50 }
0x168f   : > { %v4767_v54 = vpop.f32.mrf.mxu0 }
0x1690   : > { %v4776_v55 = vmul.f32 %v4775_v52, %v7397_v44  ;;  %v4768_v56 = vadd.f32 %v4767_v54, %v4697_v53 }
0x1691   : > { %v6858_v57 = vpop.f32.mrf.mxu0 }
0x1692   : > { %v4782_v58 = vadd.f32 %v4781_v48, %v4768_v56  ;;  %v8302_v59 = vadd.f32 %v4776_v55, %v8227_v6 }
0x1694   : > { %v4783_v61 = vmul.f32 %v4782_v58, %v7397_v44  ;;  %6868 = vmatmul.mubr.msk.f32.vlgmr.msra.gmra.mxu1 %vm73_vm0, %v8302_v59 }
0x1695   : > { %6882 = vmatpush3.msra.mxu1 %v7141_v4  ;;  %6889 = vmatprep.mubr.msk.f32.mxu1 %vm7046_vm1, %v7045_v10 }
0x1696   : > { %v8311_v62 = vadd.f32 %v4783_v61, %v8236_v8  ;;  %6883 = vmatprep.subr.mxu1 %v7045_v10 }
0x1697   : > { %6884 = vmatpush3.msra.mxu1 %v7136_v3 }
0x1698   : > { %v4785_v63 = vsub.f32 0.0, %v8311_v62  ;;  %6885 = vmatprep.subr.mxu1 %v7045_v10  ;;  %v4786_v8 = vmul.f32 %v8311_v62, %v7121_v0 }
0x1699   : > { %6886 = vmatpush3.msra.mxu1 %v7131_v2 }
0x169a   : > { %v4861_v6 = vmul.f32 %v4785_v63, %v7328_v60  ;;  %6887 = vmatprep.subr.mxu1 %v7045_v10  ;;  %v4787_v9 = vsub.f32 %v7146_v5, %v4786_v8 }
0x169b   : > { %6888 = vmatpush3.msra.mxu1 %v7126_v1 }
0x169c   : > { %v4862_v7 = vadd.f32 %v4861_v6, %v8302_v59  ;;  %6903 = vmatprep.subr.mxu1 %v7045_v10 }
0x169e   : > { %6879 = vmatmul.mubr.msk.f32.vlgmr.msra.gmra.mxu0 %vm73_vm0, %v4862_v7 }
0x169f   : > { %6893 = vmatpush3.msra.mxu0 %v7141_v4  ;;  %6900 = vmatprep.mubr.msk.f32.mxu0 %vm7046_vm1, %v7045_v10 }
0x16a0   : > { %6894 = vmatprep.subr.mxu0 %v7045_v10 }
0x16a1   : > { %6895 = vmatpush3.msra.mxu0 %v7136_v3 }
0x16a2   : > { %6896 = vmatprep.subr.mxu0 %v7045_v10 }
0x16a3   : > { %6897 = vmatpush3.msra.mxu0 %v7131_v2 }
0x16a4   : > { %6898 = vmatprep.subr.mxu0 %v7045_v10 }
0x16a5   : > { %6899 = vmatpush3.msra.mxu0 %v7126_v1 }
0x16a6   : > { %6914 = vmatprep.subr.mxu0 %v7045_v10 }
0x1754   : > { %v4857_v11 = vpop.f32.mrf.mxu1 }
0x1755   : > { %v4858_v12 = vadd.f32 %v4857_v11, %v4787_v9 }
0x1756   : > { %v6869_v13 = vpop.f32.mrf.mxu1 }
0x1757   : > { %v4863_v14 = vmul.f32 %v4858_v12, %v7328_v60 }
0x1759   : > { %v4864_v15 = vadd.f32 %v4863_v14, %v8311_v62 }
0x175b   : > { %v4865_v16 = vsub.f32 0.0, %v4864_v15  ;;  %v4866_v17 = vmul.f32 %v4864_v15, %v7121_v0 }
0x175d   : > { %v4941_v18 = vmul.f32 %v4865_v16, %v7328_v60  ;;  %v4867_v19 = vsub.f32 %v7146_v5, %v4866_v17  ;;  %v5101_v26 = vmul.f32 2.0, %v4865_v16 }
0x175e   : > { %v4937_v20 = vpop.f32.mrf.mxu0 }
0x175f   : > { %v4942_v21 = vadd.f32 %v4941_v18, %v8302_v59  ;;  %v4938_v22 = vadd.f32 %v4937_v20, %v4867_v19  ;;  %v5102_v30 = vadd.f32 %v5101_v26, %v4785_v63 }
0x1760   : > { %v6880_v23 = vpop.f32.mrf.mxu0 }
0x1761   : > { %v4943_v24 = vmul.f32 %v4938_v22, %v7328_v60  ;;  %v5108_v25 = vmul.f32 2.0, %v4938_v22  ;;  %6890 = vmatmul.mubr.msk.f32.vlgmr.msra.gmra.mxu1 %vm73_vm0, %v4942_v21 }
0x1762   : > { %6904 = vmatpush3.msra.mxu1 %v7141_v4  ;;  %6911 = vmatprep.mubr.msk.f32.mxu1 %vm7046_vm1, %v7045_v10 }
0x1763   : > { %v4944_v27 = vadd.f32 %v4943_v24, %v8311_v62  ;;  %v5109_v28 = vadd.f32 %v5108_v25, %v4858_v12  ;;  %6905 = vmatprep.subr.mxu1 %v7045_v10 }
0x1764   : > { %6906 = vmatpush3.msra.mxu1 %v7136_v3 }
0x1765   : > { %v4945_v29 = vsub.f32 0.0, %v4944_v27  ;;  %6907 = vmatprep.subr.mxu1 %v7045_v10  ;;  %v4946_v35 = vmul.f32 %v4944_v27, %v7121_v0 }
0x1766   : > { %6908 = vmatpush3.msra.mxu1 %v7131_v2 }
0x1767   : > { %v5021_v31 = vmul.f32 %v4945_v29, %v7319_v51  ;;  %v5103_v32 = vmul.f32 2.0, %v4945_v29  ;;  %6909 = vmatprep.subr.mxu1 %v7045_v10  ;;  %v4947_v36 = vsub.f32 %v7146_v5, %v4946_v35 }
0x1768   : > { %6910 = vmatpush3.msra.mxu1 %v7126_v1 }
0x1769   : > { %v5022_v33 = vadd.f32 %v5021_v31, %v8302_v59  ;;  %v5104_v34 = vadd.f32 %v5103_v32, %v5102_v30  ;;  %6925 = vmatprep.subr.mxu1 %v7045_v10 }
0x176b   : > { %6901 = vmatmul.mubr.msk.f32.vlgmr.msra.gmra.mxu0 %vm73_vm0, %v5022_v33 }
0x176c   : > { %6915 = vmatpush3.msra.mxu0 %v7141_v4  ;;  %6922 = vmatprep.mubr.msk.f32.mxu0 %vm7046_vm1, %v7045_v10 }
0x176d   : > { %6916 = vmatprep.subr.mxu0 %v7045_v10 }
0x176e   : > { %6917 = vmatpush3.msra.mxu0 %v7136_v3 }
0x176f   : > { %6918 = vmatprep.subr.mxu0 %v7045_v10 }
0x1770   : > { %6919 = vmatpush3.msra.mxu0 %v7131_v2 }
0x1771   : > { %6920 = vmatprep.subr.mxu0 %v7045_v10 }
0x1772   : > { %6921 = vmatpush3.msra.mxu0 %v7126_v1 }
0x1773   : > { %6936 = vmatprep.subr.mxu0 %v7045_v10 }
0x1821   : > { %v5017_v37 = vpop.f32.mrf.mxu1 }
0x1822   : > { %v5018_v38 = vadd.f32 %v5017_v37, %v4947_v36 }
0x1823   : > { %v6891_v39 = vpop.f32.mrf.mxu1 }
0x1824   : > { %v5023_v40 = vmul.f32 %v5018_v38, %v7319_v51  ;;  %v5110_v41 = vmul.f32 2.0, %v5018_v38 }
0x1826   : > { %v5024_v42 = vadd.f32 %v5023_v40, %v8311_v62  ;;  %v5111_v43 = vadd.f32 %v5110_v41, %v5109_v28 }
0x1828   : > { %v5025_v45 = vsub.f32 0.0, %v5024_v42  ;;  %v5026_v46 = vmul.f32 %v5024_v42, %v7121_v0 }
0x182a   : > { %v5105_v47 = vadd.f32 %v5104_v34, %v5025_v45  ;;  %v5027_v48 = vsub.f32 %v7146_v5, %v5026_v46 }
0x182b   : > { %v5097_v49 = vpop.f32.mrf.mxu0 }
0x182c   : > { %v5106_v50 = vmul.f32 %v5105_v47, %v7397_v44  ;;  %v5098_v52 = vadd.f32 %v5097_v49, %v5027_v48 }
0x182d   : > { %v6902_v53 = vpop.f32.mrf.mxu0 }
0x182e   : > { %v5112_v54 = vadd.f32 %v5111_v43, %v5098_v52  ;;  %v8377_v55 = vadd.f32 %v5106_v50, %v8302_v59 }
0x1830   : > { %v5113_v56 = vmul.f32 %v5112_v54, %v7397_v44  ;;  %6912 = vmatmul.mubr.msk.f32.vlgmr.msra.gmra.mxu1 %vm73_vm0, %v8377_v55 }
0x1831   : > { %6926 = vmatpush3.msra.mxu1 %v7141_v4  ;;  %6933 = vmatprep.mubr.msk.f32.mxu1 %vm7046_vm1, %v7045_v10 }
0x1832   : > { %v8386_v57 = vadd.f32 %v5113_v56, %v8311_v62  ;;  %6927 = vmatprep.subr.mxu1 %v7045_v10 }
0x1833   : > { %6928 = vmatpush3.msra.mxu1 %v7136_v3 }
0x1834   : > { %v5115_v58 = vsub.f32 0.0, %v8386_v57  ;;  %6929 = vmatprep.subr.mxu1 %v7045_v10  ;;  %v5116_v62 = vmul.f32 %v8386_v57, %v7121_v0 }
0x1835   : > { %6930 = vmatpush3.msra.mxu1 %v7131_v2 }
0x1836   : > { %v5191_v59 = vmul.f32 %v5115_v58, %v7328_v60  ;;  %6931 = vmatprep.subr.mxu1 %v7045_v10  ;;  %v5117_v63 = vsub.f32 %v7146_v5, %v5116_v62 }
0x1837   : > { %6932 = vmatpush3.msra.mxu1 %v7126_v1 }
0x1838   : > { %v5192_v61 = vadd.f32 %v5191_v59, %v8377_v55  ;;  %6947 = vmatprep.subr.mxu1 %v7045_v10 }
0x183a   : > { %6923 = vmatmul.mubr.msk.f32.vlgmr.msra.gmra.mxu0 %vm73_vm0, %v5192_v61 }
0x183b   : > { %6937 = vmatpush3.msra.mxu0 %v7141_v4  ;;  %6944 = vmatprep.mubr.msk.f32.mxu0 %vm7046_vm1, %v7045_v10 }
0x183c   : > { %6938 = vmatprep.subr.mxu0 %v7045_v10 }
0x183d   : > { %6939 = vmatpush3.msra.mxu0 %v7136_v3 }
0x183e   : > { %6940 = vmatprep.subr.mxu0 %v7045_v10 }
0x183f   : > { %6941 = vmatpush3.msra.mxu0 %v7131_v2 }
0x1840   : > { %6942 = vmatprep.subr.mxu0 %v7045_v10 }
0x1841   : > { %6943 = vmatpush3.msra.mxu0 %v7126_v1 }
0x1842   : > { %6958 = vmatprep.subr.mxu0 %v7045_v10 }
0x18f0   : > { %v5187_v6 = vpop.f32.mrf.mxu1 }
0x18f1   : > { %v5188_v7 = vadd.f32 %v5187_v6, %v5117_v63 }
0x18f2   : > { %v6913_v8 = vpop.f32.mrf.mxu1 }
0x18f3   : > { %v5193_v9 = vmul.f32 %v5188_v7, %v7328_v60 }
0x18f5   : > { %v5194_v11 = vadd.f32 %v5193_v9, %v8386_v57 }
0x18f7   : > { %v5195_v12 = vsub.f32 0.0, %v5194_v11  ;;  %v5196_v13 = vmul.f32 %v5194_v11, %v7121_v0 }
0x18f9   : > { %v5271_v14 = vmul.f32 %v5195_v12, %v7328_v60  ;;  %v5197_v15 = vsub.f32 %v7146_v5, %v5196_v13  ;;  %v5431_v22 = vmul.f32 2.0, %v5195_v12 }
0x18fa   : > { %v5267_v16 = vpop.f32.mrf.mxu0 }
0x18fb   : > { %v5272_v17 = vadd.f32 %v5271_v14, %v8377_v55  ;;  %v5268_v18 = vadd.f32 %v5267_v16, %v5197_v15  ;;  %v5432_v26 = vadd.f32 %v5431_v22, %v5115_v58 }
0x18fc   : > { %v6924_v19 = vpop.f32.mrf.mxu0 }
0x18fd   : > { %v5273_v20 = vmul.f32 %v5268_v18, %v7328_v60  ;;  %v5438_v21 = vmul.f32 2.0, %v5268_v18  ;;  %6934 = vmatmul.mubr.msk.f32.vlgmr.msra.gmra.mxu1 %vm73_vm0, %v5272_v17 }
0x18fe   : > { %6948 = vmatpush3.msra.mxu1 %v7141_v4  ;;  %6955 = vmatprep.mubr.msk.f32.mxu1 %vm7046_vm1, %v7045_v10 }
0x18ff   : > { %v5274_v23 = vadd.f32 %v5273_v20, %v8386_v57  ;;  %v5439_v24 = vadd.f32 %v5438_v21, %v5188_v7  ;;  %6949 = vmatprep.subr.mxu1 %v7045_v10 }
0x1900   : > { %6950 = vmatpush3.msra.mxu1 %v7136_v3 }
0x1901   : > { %v5275_v25 = vsub.f32 0.0, %v5274_v23  ;;  %6951 = vmatprep.subr.mxu1 %v7045_v10  ;;  %v5276_v31 = vmul.f32 %v5274_v23, %v7121_v0 }
0x1902   : > { %6952 = vmatpush3.msra.mxu1 %v7131_v2 }
0x1903   : > { %v5351_v27 = vmul.f32 %v5275_v25, %v7319_v51  ;;  %v5433_v28 = vmul.f32 2.0, %v5275_v25  ;;  %6953 = vmatprep.subr.mxu1 %v7045_v10  ;;  %v5277_v32 = vsub.f32 %v7146_v5, %v5276_v31 }
0x1904   : > { %6954 = vmatpush3.msra.mxu1 %v7126_v1 }
0x1905   : > { %v5352_v29 = vadd.f32 %v5351_v27, %v8377_v55  ;;  %v5434_v30 = vadd.f32 %v5433_v28, %v5432_v26  ;;  %6969 = vmatprep.subr.mxu1 %v7045_v10 }
0x1907   : > { %6945 = vmatmul.mubr.msk.f32.vlgmr.msra.gmra.mxu0 %vm73_vm0, %v5352_v29 }
0x1908   : > { %6959 = vmatpush3.msra.mxu0 %v7141_v4  ;;  %6966 = vmatprep.mubr.msk.f32.mxu0 %vm7046_vm1, %v7045_v10 }
0x1909   : > { %6960 = vmatprep.subr.mxu0 %v7045_v10 }
0x190a   : > { %6961 = vmatpush3.msra.mxu0 %v7136_v3 }
0x190b   : > { %6962 = vmatprep.subr.mxu0 %v7045_v10 }
0x190c   : > { %6963 = vmatpush3.msra.mxu0 %v7131_v2 }
0x190d   : > { %6964 = vmatprep.subr.mxu0 %v7045_v10 }
0x190e   : > { %6965 = vmatpush3.msra.mxu0 %v7126_v1 }
0x190f   : > { %6980 = vmatprep.subr.mxu0 %v7045_v10 }
0x19bd   : > { %v5347_v33 = vpop.f32.mrf.mxu1 }
0x19be   : > { %v5348_v34 = vadd.f32 %v5347_v33, %v5277_v32 }
0x19bf   : > { %v6935_v35 = vpop.f32.mrf.mxu1 }
0x19c0   : > { %v5353_v36 = vmul.f32 %v5348_v34, %v7319_v51  ;;  %v5440_v37 = vmul.f32 2.0, %v5348_v34 }
0x19c2   : > { %v5354_v38 = vadd.f32 %v5353_v36, %v8386_v57  ;;  %v5441_v39 = vadd.f32 %v5440_v37, %v5439_v24 }
0x19c4   : > { %v5355_v40 = vsub.f32 0.0, %v5354_v38  ;;  %v5356_v41 = vmul.f32 %v5354_v38, %v7121_v0 }
0x19c6   : > { %v5435_v42 = vadd.f32 %v5434_v30, %v5355_v40  ;;  %v5357_v43 = vsub.f32 %v7146_v5, %v5356_v41 }
0x19c7   : > { %v5427_v45 = vpop.f32.mrf.mxu0 }
0x19c8   : > { %v5436_v46 = vmul.f32 %v5435_v42, %v7397_v44  ;;  %v5428_v47 = vadd.f32 %v5427_v45, %v5357_v43 }
0x19c9   : > { %v6946_v48 = vpop.f32.mrf.mxu0 }
0x19ca   : > { %v5442_v49 = vadd.f32 %v5441_v39, %v5428_v47  ;;  %v8452_v50 = vadd.f32 %v5436_v46, %v8377_v55 }
0x19cc   : > { %v5443_v52 = vmul.f32 %v5442_v49, %v7397_v44  ;;  %6956 = vmatmul.mubr.msk.f32.vlgmr.msra.gmra.mxu1 %vm73_vm0, %v8452_v50 }
0x19cd   : > { %6970 = vmatpush3.msra.mxu1 %v7141_v4  ;;  %6977 = vmatprep.mubr.msk.f32.mxu1 %vm7046_vm1, %v7045_v10 }
0x19ce   : > { %v8461_v53 = vadd.f32 %v5443_v52, %v8386_v57  ;;  %6971 = vmatprep.subr.mxu1 %v7045_v10 }
0x19cf   : > { %6972 = vmatpush3.msra.mxu1 %v7136_v3 }
0x19d0   : > { %v5445_v54 = vsub.f32 0.0, %v8461_v53  ;;  %6973 = vmatprep.subr.mxu1 %v7045_v10  ;;  %v5446_v57 = vmul.f32 %v8461_v53, %v7121_v0 }
0x19d1   : > { %6974 = vmatpush3.msra.mxu1 %v7131_v2 }
0x19d2   : > { %v5521_v55 = vmul.f32 %v5445_v54, %v7328_v60  ;;  %6975 = vmatprep.subr.mxu1 %v7045_v10  ;;  %v5447_v58 = vsub.f32 %v7146_v5, %v5446_v57 }
0x19d3   : > { %6976 = vmatpush3.msra.mxu1 %v7126_v1 }
0x19d4   : > { %v5522_v56 = vadd.f32 %v5521_v55, %v8452_v50 }
0x19d6   : > { %6967 = vmatmul.mubr.msk.f32.vlgmr.msra.gmra.mxu0 %vm73_vm0, %v5522_v56 }
0x19d7   : > { %6981 = vmatpush3.msra.mxu0 %v7141_v4  ;;  %6988 = vmatprep.mubr.msk.f32.mxu0 %vm7046_vm1, %v7045_v10 }
0x19d8   : > { %6982 = vmatprep.subr.mxu0 %v7045_v10 }
0x19d9   : > { %6983 = vmatpush3.msra.mxu0 %v7136_v3 }
0x19da   : > { %6984 = vmatprep.subr.mxu0 %v7045_v10 }
0x19db   : > { %6985 = vmatpush3.msra.mxu0 %v7131_v2 }
0x19dc   : > { %6986 = vmatprep.subr.mxu0 %v7045_v10 }
0x19dd   : > { %6987 = vmatpush3.msra.mxu0 %v7126_v1 }
0x1a8c   : > { %v5517_v59 = vpop.f32.mrf.mxu1 }
0x1a8d   : > { %v5518_v61 = vadd.f32 %v5517_v59, %v5447_v58 }
0x1a8e   : > { %v6957_v62 = vpop.f32.mrf.mxu1 }
0x1a8f   : > { %v5523_v63 = vmul.f32 %v5518_v61, %v7328_v60 }
0x1a91   : > { %v5524_v6 = vadd.f32 %v5523_v63, %v8461_v53 }
0x1a93   : > { %v5525_v7 = vsub.f32 0.0, %v5524_v6  ;;  %v5526_v8 = vmul.f32 %v5524_v6, %v7121_v0 }
0x1a95   : > { %v5601_v9 = vmul.f32 %v5525_v7, %v7328_v60  ;;  %v5527_v10 = vsub.f32 %v7146_v5, %v5526_v8  ;;  %v5761_v17 = vmul.f32 2.0, %v5525_v7 }
0x1a96   : > { %v5597_v11 = vpop.f32.mrf.mxu0 }
0x1a97   : > { %v5602_v12 = vadd.f32 %v5601_v9, %v8452_v50  ;;  %v5598_v13 = vadd.f32 %v5597_v11, %v5527_v10  ;;  %v5762_v21 = vadd.f32 %v5761_v17, %v5445_v54 }
0x1a98   : > { %v6968_v14 = vpop.f32.mrf.mxu0 }
0x1a99   : > { %v5603_v15 = vmul.f32 %v5598_v13, %v7328_v60  ;;  %v5768_v16 = vmul.f32 2.0, %v5598_v13  ;;  %6978 = vmatmul.mubr.msk.f32.vlgmr.msra.gmra.mxu1 %vm73_vm0, %v5602_v12 }
0x1a9b   : > { %v5604_v18 = vadd.f32 %v5603_v15, %v8461_v53  ;;  %v5769_v19 = vadd.f32 %v5768_v16, %v5518_v61 }
0x1a9d   : > { %v5605_v20 = vsub.f32 0.0, %v5604_v18  ;;  %v5606_v26 = vmul.f32 %v5604_v18, %v7121_v0 }
0x1a9f   : > { %v5681_v22 = vmul.f32 %v5605_v20, %v7319_v51  ;;  %v5763_v23 = vmul.f32 2.0, %v5605_v20  ;;  %v5607_v60 = vsub.f32 %v7146_v5, %v5606_v26 }
0x1aa1   : > { %v5682_v24 = vadd.f32 %v5681_v22, %v8452_v50  ;;  %v5764_v25 = vadd.f32 %v5763_v23, %v5762_v21 }
0x1aa3   : > { %6989 = vmatmul.mubr.msk.f32.vlgmr.msra.gmra.mxu0 %vm73_vm0, %v5682_v24 }
0x1b59   : > { %v5677_v27 = vpop.f32.mrf.mxu1 }
0x1b5a   : > { %v5678_v28 = vadd.f32 %v5677_v27, %v5607_v60 }
0x1b5b   : > { %v6979_v29 = vpop.f32.mrf.mxu1 }
0x1b5c   : > { %v5683_v30 = vmul.f32 %v5678_v28, %v7319_v51  ;;  %v5770_v31 = vmul.f32 2.0, %v5678_v28 }
0x1b5e   : > { %v5684_v32 = vadd.f32 %v5683_v30, %v8461_v53  ;;  %v5771_v33 = vadd.f32 %v5770_v31, %v5769_v19 }
0x1b60   : > { %v5685_v34 = vsub.f32 0.0, %v5684_v32  ;;  %v5686_v35 = vmul.f32 %v5684_v32, %v7121_v0 }
0x1b62   : > { %v5765_v36 = vadd.f32 %v5764_v25, %v5685_v34  ;;  %v5687_v37 = vsub.f32 %v7146_v5, %v5686_v35 }
0x1b63   : > { %v5757_v38 = vpop.f32.mrf.mxu0 }
0x1b64   : > { %v5766_v39 = vmul.f32 %v5765_v36, %v7397_v44  ;;  %v5758_v40 = vadd.f32 %v5757_v38, %v5687_v37 }
0x1b65   : > { %v6990_v41 = vpop.f32.mrf.mxu0 }
0x1b66   : > { %v5767_v7 = vadd.f32 %v5766_v39, %v8452_v50   ;;  %v5772_v51 = vadd.f32 %v5771_v33, %v5758_v40  ;;  %56 = sbr.rel (!%p54_p0) target bundleno = 3 (0x3), region = 82 }
0x1b68   : > { %5776 = vst.msk [vmem:[%s5775_s28] sm:$0xff] %vm73_vm0, %v5767_v7  ;;  %v5773_v42 = vmul.f32 %v5772_v51, %v7397_v44 }
0x1b6a   : > { %v5774_v6 = vadd.f32 %v5773_v42, %v8461_v53  }

</bundles_post_ra>
